<compile_context>
chip_gen: v6e
topology: v6e:2x2x1
jax: 0.10.0
libtpu: 0.0.40
codegen_flags: <defaults>
</compile_context>

<pallas_src>
import functools

import jax
import jax.numpy as jnp
import numpy as np
from jax import lax
from jax.experimental import pallas as pl
from jax.experimental.pallas import tpu as pltpu

INPUT_SIZE = 3888       # = 3 * 36 * 36
HIDDEN = 200
H_PAD = 256             # lane-aligned hidden; gate blocks at 0/256/512/768
FC1 = 100
FC1_PAD = 128
GATES = 4 * H_PAD       # 1024 (gate-aligned layout used by the recurrence)
PROJ_TN = 128           # N-tile of the hoisted projection (7 tiles over 896)
GATES_TRIM = 896        # round_up(4*HIDDEN = 800, 128): projection width
UNROLL = 8              # bounded fori_loop unroll (full unroll at T=8)


def _round_up(x, m):
    return (x + m - 1) // m * m


# ----------------------------------------------------------------------------
# Kernel 1: hoisted input projection  XW = x2d @ W_ih^T + (b_ih + b_hh)
# bf16 x bf16 -> f32 on the MXU; grid = (N tiles, M tiles) with the weight
# block resident across the inner M axis (one HBM pass over the weight).
# ----------------------------------------------------------------------------
def proj_kernel(x_ref, w_ref, b_ref, o_ref):
    o_ref[...] = (
        jnp.dot(x_ref[...], w_ref[...], preferred_element_type=jnp.float32)
        + b_ref[...]
    ).astype(o_ref.dtype)


def input_projection(x2d_bf16, wih_p, b_p):
    """x2d_bf16: (M, 3888) bf16 -> (M, GATES_TRIM) f32 with bias folded in."""
    M, K = x2d_bf16.shape
    N = wih_p.shape[1]                       # 896
    # M tile: whole (row-padded) batch for small M, 256-row tiles otherwise.
    tm = _round_up(M, 16) if M <= 256 else 256
    m_pad = _round_up(M, tm)
    if m_pad != M:
        x2d_bf16 = jnp.pad(x2d_bf16, ((0, m_pad - M), (0, 0)))
    n_n = N // PROJ_TN
    n_m = m_pad // tm

    out = pl.pallas_call(
        proj_kernel,
        out_shape=jax.ShapeDtypeStruct((m_pad, N), jnp.float32),
        grid=(n_n, n_m),
        in_specs=[
            # x tiles stream over the inner M axis.
            pl.BlockSpec((tm, K), lambda j, i: (i, 0)),
            # Weight block index is constant across M -> read from HBM once.
            pl.BlockSpec((K, PROJ_TN), lambda j, i: (0, j)),
            pl.BlockSpec((1, PROJ_TN), lambda j, i: (0, j)),
        ],
        out_specs=pl.BlockSpec((tm, PROJ_TN), lambda j, i: (i, j)),
        compiler_params=pltpu.CompilerParams(
            # N axis parallel (7 tiles -> both v7x TCs get work); M arbitrary
            # so weight residency holds within each core.
            dimension_semantics=("parallel", "arbitrary"),
        ),
    )(x2d_bf16, wih_p, b_p)
    return out[:M] if m_pad != M else out


# ----------------------------------------------------------------------------
# Kernel 2: LSTM recurrence over T (in-kernel loop, bounded unroll) + fused
# MLP head.  Single grid point; xw / bf16 weights resident in VMEM; h/c are
# loop-carried f32 values (stay in vregs).
# ----------------------------------------------------------------------------
def lstm_head_kernel(xw_ref, whh_ref, w1_ref, b1_ref, w2_ref, b2_ref, o_ref):
    T, B = xw_ref.shape[0], xw_ref.shape[1]

    def step(t, carry):
        h, c = carry
        gates = xw_ref[t] + jnp.dot(
            h.astype(jnp.bfloat16), whh_ref[...],
            preferred_element_type=jnp.float32,
        )  # (B, 4*H_PAD), f32
        i_g = jax.nn.sigmoid(gates[:, 0 * H_PAD:1 * H_PAD])
        f_g = jax.nn.sigmoid(gates[:, 1 * H_PAD:2 * H_PAD])
        g_g = jnp.tanh(gates[:, 2 * H_PAD:3 * H_PAD])
        o_g = jax.nn.sigmoid(gates[:, 3 * H_PAD:4 * H_PAD])
        c_new = f_g * c + i_g * g_g
        h_new = o_g * jnp.tanh(c_new)
        return h_new, c_new

    h0 = jnp.zeros((B, H_PAD), jnp.float32)
    c0 = jnp.zeros((B, H_PAD), jnp.float32)
    h_last, _ = lax.fori_loop(0, T, step, (h0, c0), unroll=UNROLL)

    # Fused head: fc1 -> ReLU -> (dropout = identity in eval) -> fc2.
    y = jnp.dot(h_last.astype(jnp.bfloat16), w1_ref[...],
                preferred_element_type=jnp.float32) + b1_ref[...]
    y = jnp.maximum(y, 0.0)
    # TODO(synk): dropout(p=0.5) is identity because training=False (eval mode).
    o_ref[...] = (
        jnp.dot(y.astype(jnp.bfloat16), w2_ref[...],
                preferred_element_type=jnp.float32) + b2_ref[...]
    ).astype(o_ref.dtype)


def lstm_with_head(xw_tm, whh_p, w1_p, b1_p, w2_p, b2_p):
    """xw_tm: (T, B_pad, GATES) f32 -> (B_pad, nc_pad) f32 logits (padded)."""
    T, B, G = xw_tm.shape
    nc_pad = w2_p.shape[1]
    return pl.pallas_call(
        lstm_head_kernel,
        out_shape=jax.ShapeDtypeStruct((B, nc_pad), jnp.float32),
        grid=(1,),
        in_specs=[
            pl.BlockSpec((T, B, G), lambda i: (0, 0, 0)),
            pl.BlockSpec((H_PAD, G), lambda i: (0, 0)),
            pl.BlockSpec((H_PAD, FC1_PAD), lambda i: (0, 0)),
            pl.BlockSpec((1, FC1_PAD), lambda i: (0, 0)),
            pl.BlockSpec((FC1_PAD, nc_pad), lambda i: (0, 0)),
            pl.BlockSpec((1, nc_pad), lambda i: (0, 0)),
        ],
        out_specs=pl.BlockSpec((B, nc_pad), lambda i: (0, 0)),
        compiler_params=pltpu.CompilerParams(
            dimension_semantics=("arbitrary",),
        ),
    )(xw_tm, whh_p, w1_p, b1_p, w2_p, b2_p)


# ----------------------------------------------------------------------------
# Full forward (glue in plain JAX)
# ----------------------------------------------------------------------------
@functools.partial(jax.jit, static_argnames=("num_cls",))
def rnn_forward(x_btchw, params, *, num_cls):
    b, t = x_btchw.shape[0], x_btchw.shape[1]
    x2d = x_btchw.reshape(b * t, INPUT_SIZE).astype(jnp.bfloat16)

    # Hoisted projection over all b*t rows, trimmed to 896 columns.
    xw_trim = input_projection(x2d, params["wih_p"], params["b_p"])  # (b*t, 896) f32

    # Repack the tiny activation into the 4x256 gate-aligned layout (~50 KB),
    # pad batch to 8 sublanes and go time-major.  Kept as cheap JAX glue
    # (folding it into a kernel saves only a few microseconds of launch gap).
    M = b * t
    xw = xw_trim[:, :4 * HIDDEN].reshape(M, 4, HIDDEN)
    xw = jnp.pad(xw, ((0, 0), (0, 0), (0, H_PAD - HIDDEN))).reshape(M, GATES)
    xw = xw.reshape(b, t, GATES)
    b_pad = _round_up(b, 8)
    xw = jnp.pad(xw, ((0, b_pad - b), (0, 0), (0, 0)))
    xw_tm = jnp.transpose(xw, (1, 0, 2))               # (t, b_pad, 1024)

    out_p = lstm_with_head(
        xw_tm, params["whh_p"], params["w1_p"], params["b1_p"],
        params["w2_p"], params["b2_p"],
    )
    return out_p[:b, :num_cls]


# ----------------------------------------------------------------------------
# References
#  * rnn_forward_ref_mixed: mirrors the kernel's dtype choices (bf16 weights,
#    bf16 matmul inputs, f32 accumulation / state) -> tight comparison.
#  * rnn_forward_ref_f32:  full-f32 (HIGHEST precision) PyTorch semantics ->
#    loose comparison (bf16-weight quantization error only).
# ----------------------------------------------------------------------------
def rnn_forward_ref_mixed(x_btchw, params):
    b, t = x_btchw.shape[0], x_btchw.shape[1]
    x = x_btchw.reshape(b, t, INPUT_SIZE)
    wih_b = params["wih_t"].astype(jnp.bfloat16)
    whh_b = params["whh_t"].astype(jnp.bfloat16)
    w1_b = params["w1_t"].astype(jnp.bfloat16)
    w2_b = params["w2_t"].astype(jnp.bfloat16)

    xw = jnp.dot(x.reshape(b * t, INPUT_SIZE).astype(jnp.bfloat16), wih_b,
                 preferred_element_type=jnp.float32) + params["b_lstm"]
    xw = xw.reshape(b, t, 4 * HIDDEN)

    h = jnp.zeros((b, HIDDEN), jnp.float32)
    c = jnp.zeros((b, HIDDEN), jnp.float32)
    for ti in range(t):
        gates = xw[:, ti, :] + jnp.dot(h.astype(jnp.bfloat16), whh_b,
                                       preferred_element_type=jnp.float32)
        i_g = jax.nn.sigmoid(gates[:, 0 * HIDDEN:1 * HIDDEN])
        f_g = jax.nn.sigmoid(gates[:, 1 * HIDDEN:2 * HIDDEN])
        g_g = jnp.tanh(gates[:, 2 * HIDDEN:3 * HIDDEN])
        o_g = jax.nn.sigmoid(gates[:, 3 * HIDDEN:4 * HIDDEN])
        c = f_g * c + i_g * g_g
        h = o_g * jnp.tanh(c)

    y = jnp.maximum(
        jnp.dot(h.astype(jnp.bfloat16), w1_b,
                preferred_element_type=jnp.float32) + params["b1"], 0.0)
    return jnp.dot(y.astype(jnp.bfloat16), w2_b,
                   preferred_element_type=jnp.float32) + params["b2"]


def rnn_forward_ref_f32(x_btchw, params):
    b, t = x_btchw.shape[0], x_btchw.shape[1]
    hi = lax.Precision.HIGHEST
    x = x_btchw.reshape(b, t, INPUT_SIZE).astype(jnp.float32)
    h = jnp.zeros((b, HIDDEN), jnp.float32)
    c = jnp.zeros((b, HIDDEN), jnp.float32)
    for ti in range(t):
        gates = (jnp.dot(x[:, ti, :], params["wih_t"], precision=hi)
                 + jnp.dot(h, params["whh_t"], precision=hi) + params["b_lstm"])
        i_g = jax.nn.sigmoid(gates[:, 0 * HIDDEN:1 * HIDDEN])
        f_g = jax.nn.sigmoid(gates[:, 1 * HIDDEN:2 * HIDDEN])
        g_g = jnp.tanh(gates[:, 2 * HIDDEN:3 * HIDDEN])
        o_g = jax.nn.sigmoid(gates[:, 3 * HIDDEN:4 * HIDDEN])
        c = f_g * c + i_g * g_g
        h = o_g * jnp.tanh(c)
    y = jnp.maximum(jnp.dot(h, params["w1_t"], precision=hi) + params["b1"], 0.0)
    return jnp.dot(y, params["w2_t"], precision=hi) + params["b2"]


# ----------------------------------------------------------------------------
# Params: real (reference) f32 weights + padded bf16 kernel layouts.
# ----------------------------------------------------------------------------
def _pad_gate_cols(w):
    """(in, 4*HIDDEN) -> (in, 4*H_PAD): each gate block zero-padded to 256."""
    parts = []
    for g in range(4):
        blk = w[:, g * HIDDEN:(g + 1) * HIDDEN]
        parts.append(jnp.pad(blk, ((0, 0), (0, H_PAD - HIDDEN))))
    return jnp.concatenate(parts, axis=1)


def init_params(key, num_cls):
    ks = jax.random.split(key, 8)

    def u(k, shape, bound):
        return jax.random.uniform(k, shape, jnp.float32, -bound, bound)

    kb = 1.0 / np.sqrt(HIDDEN)
    wih = u(ks[0], (4 * HIDDEN, INPUT_SIZE), kb)    # PyTorch weight_ih_l0
    whh = u(ks[1], (4 * HIDDEN, HIDDEN), kb)        # PyTorch weight_hh_l0
    b_ih = u(ks[2], (4 * HIDDEN,), kb)
    b_hh = u(ks[3], (4 * HIDDEN,), kb)

    kb1 = 1.0 / np.sqrt(HIDDEN)
    w1 = u(ks[4], (FC1, HIDDEN), kb1)
    b1 = u(ks[5], (FC1,), kb1)
    kb2 = 1.0 / np.sqrt(FC1)
    w2 = u(ks[6], (num_cls, FC1), kb2)
    b2 = u(ks[7], (num_cls,), kb2)

    nc_pad = _round_up(max(num_cls, 1), 128)

    real = {
        "wih_t": wih.T,                                   # (3888, 800) f32
        "whh_t": whh.T,                                   # (200, 800)  f32
        "b_lstm": (b_ih + b_hh).reshape(1, 4 * HIDDEN),   # (1, 800)    f32
        "w1_t": w1.T,                                     # (200, 100)  f32
        "b1": b1.reshape(1, FC1),
        "w2_t": w2.T,                                     # (100, num_cls)
        "b2": b2.reshape(1, num_cls),
    }

    padded = {
        # Projection weight: 800 real columns + 96 zero columns (bf16).
        "wih_p": jnp.pad(real["wih_t"],
                         ((0, 0), (0, GATES_TRIM - 4 * HIDDEN))
                         ).astype(jnp.bfloat16),                         # (3888, 896) bf16
        "b_p": jnp.pad(real["b_lstm"],
                       ((0, 0), (0, GATES_TRIM - 4 * HIDDEN))),          # (1, 896) f32
        # Recurrence / head weights (gate- and lane-aligned, bf16).
        "whh_p": jnp.pad(_pad_gate_cols(real["whh_t"]),
                         ((0, H_PAD - HIDDEN), (0, 0))
                         ).astype(jnp.bfloat16),                         # (256, 1024) bf16
        "w1_p": jnp.pad(real["w1_t"],
                        ((0, H_PAD - HIDDEN), (0, FC1_PAD - FC1))
                        ).astype(jnp.bfloat16),                          # (256, 128) bf16
        "b1_p": jnp.pad(real["b1"], ((0, 0), (0, FC1_PAD - FC1))),       # (1, 128) f32
        "w2_p": jnp.pad(real["w2_t"],
                        ((0, FC1_PAD - FC1), (0, nc_pad - num_cls))
                        ).astype(jnp.bfloat16),                          # (128, nc_pad) bf16
        "b2_p": jnp.pad(real["b2"], ((0, 0), (0, nc_pad - num_cls))),    # (1, nc_pad) f32
    }
    return {**real, **padded}


if __name__ == "__main__":
    num_cls = 10
    B, T, C, H, W = 2, 8, 3, 36, 36   # C*H*W = 3888

    key = jax.random.PRNGKey(0)
    k_x, k_p = jax.random.split(key)
    x = jax.random.normal(k_x, (B, T, C, H, W), jnp.float32)
    params = init_params(k_p, num_cls)

    out = rnn_forward(x, params, num_cls=num_cls)
    out = jax.block_until_ready(out)
    assert out.shape == (B, num_cls)

    # Tight check against a reference that mirrors the kernel's bf16 dtype path.
    ref_mixed = rnn_forward_ref_mixed(x, params)
    np.testing.assert_allclose(np.asarray(out), np.asarray(ref_mixed),
                               rtol=2e-3, atol=2e-3)

    # Sanity check against the full-f32 PyTorch-semantics reference
    # (difference is bf16 weight/activation quantization only).
    ref_f32 = rnn_forward_ref_f32(x, params)
    np.testing.assert_allclose(np.asarray(out), np.asarray(ref_f32),
                               rtol=5e-2, atol=5e-2)

    print("KERNEL_OK")
</pallas_src>

<mosaic_0001>
module attributes {stable_mosaic.version = 11 : i64} {
  func.func @proj_kernel(%arg0: i32, %arg1: i32, %arg2: memref<16x3888xbf16, #tpu.memory_space<vmem>>, %arg3: memref<3888x128xbf16, #tpu.memory_space<vmem>>, %arg4: memref<1x128xf32, #tpu.memory_space<vmem>>, %arg5: memref<16x128xf32, #tpu.memory_space<vmem>>) attributes {dimension_semantics = [#tpu.dimension_semantics<parallel>, #tpu.dimension_semantics<arbitrary>], iteration_bounds = array<i64: 7, 1>, scalar_prefetch = 0 : i64, scratch_operands = 0 : i64, tpu.core_type = #tpu.core_type<tc>, window_params = [{transform_indices = @transform_0, window_bounds = array<i64: 16, 3888>}, {transform_indices = @transform_1, window_bounds = array<i64: 3888, 128>}, {transform_indices = @transform_2, window_bounds = array<i64: 1, 128>}, {transform_indices = @transform_3, window_bounds = array<i64: 16, 128>}]} {
    %c0 = arith.constant 0 : index
    %c0_0 = arith.constant 0 : index
    %0 = vector.load %arg2[%c0, %c0_0] : memref<16x3888xbf16, #tpu.memory_space<vmem>>, vector<16x3888xbf16>
    %c0_1 = arith.constant 0 : index
    %c0_2 = arith.constant 0 : index
    %1 = vector.load %arg3[%c0_1, %c0_2] : memref<3888x128xbf16, #tpu.memory_space<vmem>>, vector<3888x128xbf16>
    %cst = arith.constant dense<0.000000e+00> : vector<16x128xf32>
    %2 = tpu.matmul %0, %1, %cst {dimension_numbers = #tpu.dot_dimension_numbers<[1], [0], [0], [1], [0, 0, 1, 1], [], []>} : vector<16x3888xbf16>, vector<3888x128xbf16>, vector<16x128xf32> -> vector<16x128xf32>
    %c0_3 = arith.constant 0 : index
    %c0_4 = arith.constant 0 : index
    %3 = vector.load %arg4[%c0_3, %c0_4] : memref<1x128xf32, #tpu.memory_space<vmem>>, vector<1x128xf32>
    %4 = vector.broadcast %3 : vector<1x128xf32> to vector<16x128xf32>
    %5 = arith.addf %2, %4 : vector<16x128xf32>
    %c0_5 = arith.constant 0 : index
    %c0_6 = arith.constant 0 : index
    %6 = vector.load %arg5[%c0_5, %c0_6] : memref<16x128xf32, #tpu.memory_space<vmem>>, vector<16x128xf32>
    tpu.vector_store %arg5[%c0_5, %c0_6], %5 {strides = array<i32>} : memref<16x128xf32, #tpu.memory_space<vmem>>, vector<16x128xf32>,
    return
  }
  func.func @transform_0(%arg0: i32, %arg1: i32) -> (i32, i32) {
    %c0_i32 = arith.constant 0 : i32
    %c0_i32_0 = arith.constant 0 : i32
    return %arg1, %c0_i32 : i32, i32
  }
  func.func @transform_1(%arg0: i32, %arg1: i32) -> (i32, i32) {
    %c0_i32 = arith.constant 0 : i32
    %c0_i32_0 = arith.constant 0 : i32
    return %c0_i32, %arg0 : i32, i32
  }
  func.func @transform_2(%arg0: i32, %arg1: i32) -> (i32, i32) {
    %c0_i32 = arith.constant 0 : i32
    %c0_i32_0 = arith.constant 0 : i32
    return %c0_i32, %arg0 : i32, i32
  }
  func.func @transform_3(%arg0: i32, %arg1: i32) -> (i32, i32) {
    %c0_i32 = arith.constant 0 : i32
    return %arg1, %arg0 : i32, i32
  }
}

module attributes {stable_mosaic.version = 11 : i64} {
  func.func @lstm_head_kernel(%arg0: i32, %arg1: memref<8x8x1024xf32, #tpu.memory_space<vmem>>, %arg2: memref<256x1024xbf16, #tpu.memory_space<vmem>>, %arg3: memref<256x128xbf16, #tpu.memory_space<vmem>>, %arg4: memref<1x128xf32, #tpu.memory_space<vmem>>, %arg5: memref<128x128xbf16, #tpu.memory_space<vmem>>, %arg6: memref<1x128xf32, #tpu.memory_space<vmem>>, %arg7: memref<8x128xf32, #tpu.memory_space<vmem>>) attributes {dimension_semantics = [#tpu.dimension_semantics<arbitrary>], iteration_bounds = array<i64: 1>, scalar_prefetch = 0 : i64, scratch_operands = 0 : i64, tpu.core_type = #tpu.core_type<tc>, window_params = [{pipeline_mode = #tpu.pipeline_mode<synchronous>, transform_indices = @transform_0, window_bounds = array<i64: 8, 8, 1024>}, {pipeline_mode = #tpu.pipeline_mode<synchronous>, transform_indices = @transform_1, window_bounds = array<i64: 256, 1024>}, {pipeline_mode = #tpu.pipeline_mode<synchronous>, transform_indices = @transform_2, window_bounds = array<i64: 256, 128>}, {pipeline_mode = #tpu.pipeline_mode<synchronous>, transform_indices = @transform_3, window_bounds = array<i64: 1, 128>}, {pipeline_mode = #tpu.pipeline_mode<synchronous>, transform_indices = @transform_4, window_bounds = array<i64: 128, 128>}, {pipeline_mode = #tpu.pipeline_mode<synchronous>, transform_indices = @transform_5, window_bounds = array<i64: 1, 128>}, {pipeline_mode = #tpu.pipeline_mode<synchronous>, transform_indices = @transform_6, window_bounds = array<i64: 8, 128>}]} {
    %cst = arith.constant 0.000000e+00 : f32
    %0 = vector.broadcast %cst : f32 to vector<8x256xf32>
    %cst_0 = arith.constant 0.000000e+00 : f32
    %1 = vector.broadcast %cst_0 : f32 to vector<8x256xf32>
    %c0_i32 = arith.constant 0 : i32
    %2 = arith.index_cast %c0_i32 : i32 to index
    %c0 = arith.constant 0 : index
    %c0_1 = arith.constant 0 : index
    %3 = vector.load %arg1[%2, %c0, %c0_1] : memref<8x8x1024xf32, #tpu.memory_space<vmem>>, vector<1x8x1024xf32>
    %4 = vector.shape_cast %3 : vector<1x8x1024xf32> to vector<8x1024xf32>
    %5 = arith.truncf %0 : vector<8x256xf32> to vector<8x256xbf16>
    %c0_2 = arith.constant 0 : index
    %c0_3 = arith.constant 0 : index
    %6 = vector.load %arg2[%c0_2, %c0_3] : memref<256x1024xbf16, #tpu.memory_space<vmem>>, vector<256x1024xbf16>
    %cst_4 = arith.constant dense<0.000000e+00> : vector<8x1024xf32>
    %7 = tpu.matmul %5, %6, %cst_4 {dimension_numbers = #tpu.dot_dimension_numbers<[1], [0], [0], [1], [0, 0, 1, 1], [], []>} : vector<8x256xbf16>, vector<256x1024xbf16>, vector<8x1024xf32> -> vector<8x1024xf32>
    %8 = arith.addf %4, %7 : vector<8x1024xf32>
    %9 = vector.extract_strided_slice %8 {offsets = [0, 0], sizes = [8, 256], strides = [1, 1]} : vector<8x1024xf32> to vector<8x256xf32>
    %10 = arith.negf %9 : vector<8x256xf32>
    %11 = math.exp %10 : vector<8x256xf32>
    %cst_5 = arith.constant 1.000000e+00 : f32
    %12 = vector.broadcast %cst_5 : f32 to vector<8x256xf32>
    %13 = arith.addf %12, %11 : vector<8x256xf32>
    %14 = arith.divf %12, %13 : vector<8x256xf32>
    %15 = vector.extract_strided_slice %8 {offsets = [0, 256], sizes = [8, 256], strides = [1, 1]} : vector<8x1024xf32> to vector<8x256xf32>
    %16 = arith.negf %15 : vector<8x256xf32>
    %17 = math.exp %16 : vector<8x256xf32>
    %cst_6 = arith.constant 1.000000e+00 : f32
    %18 = vector.broadcast %cst_6 : f32 to vector<8x256xf32>
    %19 = arith.addf %18, %17 : vector<8x256xf32>
    %20 = arith.divf %18, %19 : vector<8x256xf32>
    %21 = vector.extract_strided_slice %8 {offsets = [0, 512], sizes = [8, 256], strides = [1, 1]} : vector<8x1024xf32> to vector<8x256xf32>
    %22 = math.tanh %21 : vector<8x256xf32>
    %23 = vector.extract_strided_slice %8 {offsets = [0, 768], sizes = [8, 256], strides = [1, 1]} : vector<8x1024xf32> to vector<8x256xf32>
    %24 = arith.negf %23 : vector<8x256xf32>
    %25 = math.exp %24 : vector<8x256xf32>
    %cst_7 = arith.constant 1.000000e+00 : f32
    %26 = vector.broadcast %cst_7 : f32 to vector<8x256xf32>
    %27 = arith.addf %26, %25 : vector<8x256xf32>
    %28 = arith.divf %26, %27 : vector<8x256xf32>
    %29 = arith.mulf %20, %1 : vector<8x256xf32>
    %30 = arith.mulf %14, %22 : vector<8x256xf32>
    %31 = arith.addf %29, %30 : vector<8x256xf32>
    %32 = math.tanh %31 : vector<8x256xf32>
    %33 = arith.mulf %28, %32 : vector<8x256xf32>
    %c1_i32 = arith.constant 1 : i32
    %34 = arith.index_cast %c1_i32 : i32 to index
    %c0_8 = arith.constant 0 : index
    %c0_9 = arith.constant 0 : index
    %35 = vector.load %arg1[%34, %c0_8, %c0_9] : memref<8x8x1024xf32, #tpu.memory_space<vmem>>, vector<1x8x1024xf32>
    %36 = vector.shape_cast %35 : vector<1x8x1024xf32> to vector<8x1024xf32>
    %37 = arith.truncf %33 : vector<8x256xf32> to vector<8x256xbf16>
    %c0_10 = arith.constant 0 : index
    %c0_11 = arith.constant 0 : index
    %38 = vector.load %arg2[%c0_10, %c0_11] : memref<256x1024xbf16, #tpu.memory_space<vmem>>, vector<256x1024xbf16>
    %cst_12 = arith.constant dense<0.000000e+00> : vector<8x1024xf32>
    %39 = tpu.matmul %37, %38, %cst_12 {dimension_numbers = #tpu.dot_dimension_numbers<[1], [0], [0], [1], [0, 0, 1, 1], [], []>} : vector<8x256xbf16>, vector<256x1024xbf16>, vector<8x1024xf32> -> vector<8x1024xf32>
    %40 = arith.addf %36, %39 : vector<8x1024xf32>
    %41 = vector.extract_strided_slice %40 {offsets = [0, 0], sizes = [8, 256], strides = [1, 1]} : vector<8x1024xf32> to vector<8x256xf32>
    %42 = arith.negf %41 : vector<8x256xf32>
    %43 = math.exp %42 : vector<8x256xf32>
    %cst_13 = arith.constant 1.000000e+00 : f32
    %44 = vector.broadcast %cst_13 : f32 to vector<8x256xf32>
    %45 = arith.addf %44, %43 : vector<8x256xf32>
    %46 = arith.divf %44, %45 : vector<8x256xf32>
    %47 = vector.extract_strided_slice %40 {offsets = [0, 256], sizes = [8, 256], strides = [1, 1]} : vector<8x1024xf32> to vector<8x256xf32>
    %48 = arith.negf %47 : vector<8x256xf32>
    %49 = math.exp %48 : vector<8x256xf32>
    %cst_14 = arith.constant 1.000000e+00 : f32
    %50 = vector.broadcast %cst_14 : f32 to vector<8x256xf32>
    %51 = arith.addf %50, %49 : vector<8x256xf32>
    %52 = arith.divf %50, %51 : vector<8x256xf32>
    %53 = vector.extract_strided_slice %40 {offsets = [0, 512], sizes = [8, 256], strides = [1, 1]} : vector<8x1024xf32> to vector<8x256xf32>
    %54 = math.tanh %53 : vector<8x256xf32>
    %55 = vector.extract_strided_slice %40 {offsets = [0, 768], sizes = [8, 256], strides = [1, 1]} : vector<8x1024xf32> to vector<8x256xf32>
    %56 = arith.negf %55 : vector<8x256xf32>
    %57 = math.exp %56 : vector<8x256xf32>
    %cst_15 = arith.constant 1.000000e+00 : f32
    %58 = vector.broadcast %cst_15 : f32 to vector<8x256xf32>
    %59 = arith.addf %58, %57 : vector<8x256xf32>
    %60 = arith.divf %58, %59 : vector<8x256xf32>
    %61 = arith.mulf %52, %31 : vector<8x256xf32>
    %62 = arith.mulf %46, %54 : vector<8x256xf32>
    %63 = arith.addf %61, %62 : vector<8x256xf32>
    %64 = math.tanh %63 : vector<8x256xf32>
    %65 = arith.mulf %60, %64 : vector<8x256xf32>
    %c2_i32 = arith.constant 2 : i32
    %66 = arith.index_cast %c2_i32 : i32 to index
    %c0_16 = arith.constant 0 : index
    %c0_17 = arith.constant 0 : index
    %67 = vector.load %arg1[%66, %c0_16, %c0_17] : memref<8x8x1024xf32, #tpu.memory_space<vmem>>, vector<1x8x1024xf32>
    %68 = vector.shape_cast %67 : vector<1x8x1024xf32> to vector<8x1024xf32>
    %69 = arith.truncf %65 : vector<8x256xf32> to vector<8x256xbf16>
    %c0_18 = arith.constant 0 : index
    %c0_19 = arith.constant 0 : index
    %70 = vector.load %arg2[%c0_18, %c0_19] : memref<256x1024xbf16, #tpu.memory_space<vmem>>, vector<256x1024xbf16>
    %cst_20 = arith.constant dense<0.000000e+00> : vector<8x1024xf32>
    %71 = tpu.matmul %69, %70, %cst_20 {dimension_numbers = #tpu.dot_dimension_numbers<[1], [0], [0], [1], [0, 0, 1, 1], [], []>} : vector<8x256xbf16>, vector<256x1024xbf16>, vector<8x1024xf32> -> vector<8x1024xf32>
    %72 = arith.addf %68, %71 : vector<8x1024xf32>
    %73 = vector.extract_strided_slice %72 {offsets = [0, 0], sizes = [8, 256], strides = [1, 1]} : vector<8x1024xf32> to vector<8x256xf32>
    %74 = arith.negf %73 : vector<8x256xf32>
    %75 = math.exp %74 : vector<8x256xf32>
    %cst_21 = arith.constant 1.000000e+00 : f32
    %76 = vector.broadcast %cst_21 : f32 to vector<8x256xf32>
    %77 = arith.addf %76, %75 : vector<8x256xf32>
    %78 = arith.divf %76, %77 : vector<8x256xf32>
    %79 = vector.extract_strided_slice %72 {offsets = [0, 256], sizes = [8, 256], strides = [1, 1]} : vector<8x1024xf32> to vector<8x256xf32>
    %80 = arith.negf %79 : vector<8x256xf32>
    %81 = math.exp %80 : vector<8x256xf32>
    %cst_22 = arith.constant 1.000000e+00 : f32
    %82 = vector.broadcast %cst_22 : f32 to vector<8x256xf32>
    %83 = arith.addf %82, %81 : vector<8x256xf32>
    %84 = arith.divf %82, %83 : vector<8x256xf32>
    %85 = vector.extract_strided_slice %72 {offsets = [0, 512], sizes = [8, 256], strides = [1, 1]} : vector<8x1024xf32> to vector<8x256xf32>
    %86 = math.tanh %85 : vector<8x256xf32>
    %87 = vector.extract_strided_slice %72 {offsets = [0, 768], sizes = [8, 256], strides = [1, 1]} : vector<8x1024xf32> to vector<8x256xf32>
    %88 = arith.negf %87 : vector<8x256xf32>
    %89 = math.exp %88 : vector<8x256xf32>
    %cst_23 = arith.constant 1.000000e+00 : f32
    %90 = vector.broadcast %cst_23 : f32 to vector<8x256xf32>
    %91 = arith.addf %90, %89 : vector<8x256xf32>
    %92 = arith.divf %90, %91 : vector<8x256xf32>
    %93 = arith.mulf %84, %63 : vector<8x256xf32>
    %94 = arith.mulf %78, %86 : vector<8x256xf32>
    %95 = arith.addf %93, %94 : vector<8x256xf32>
    %96 = math.tanh %95 : vector<8x256xf32>
    %97 = arith.mulf %92, %96 : vector<8x256xf32>
    %c3_i32 = arith.constant 3 : i32
    %98 = arith.index_cast %c3_i32 : i32 to index
    %c0_24 = arith.constant 0 : index
    %c0_25 = arith.constant 0 : index
    %99 = vector.load %arg1[%98, %c0_24, %c0_25] : memref<8x8x1024xf32, #tpu.memory_space<vmem>>, vector<1x8x1024xf32>
    %100 = vector.shape_cast %99 : vector<1x8x1024xf32> to vector<8x1024xf32>
    %101 = arith.truncf %97 : vector<8x256xf32> to vector<8x256xbf16>
    %c0_26 = arith.constant 0 : index
    %c0_27 = arith.constant 0 : index
    %102 = vector.load %arg2[%c0_26, %c0_27] : memref<256x1024xbf16, #tpu.memory_space<vmem>>, vector<256x1024xbf16>
    %cst_28 = arith.constant dense<0.000000e+00> : vector<8x1024xf32>
    %103 = tpu.matmul %101, %102, %cst_28 {dimension_numbers = #tpu.dot_dimension_numbers<[1], [0], [0], [1], [0, 0, 1, 1], [], []>} : vector<8x256xbf16>, vector<256x1024xbf16>, vector<8x1024xf32> -> vector<8x1024xf32>
    %104 = arith.addf %100, %103 : vector<8x1024xf32>
    %105 = vector.extract_strided_slice %104 {offsets = [0, 0], sizes = [8, 256], strides = [1, 1]} : vector<8x1024xf32> to vector<8x256xf32>
    %106 = arith.negf %105 : vector<8x256xf32>
    %107 = math.exp %106 : vector<8x256xf32>
    %cst_29 = arith.constant 1.000000e+00 : f32
    %108 = vector.broadcast %cst_29 : f32 to vector<8x256xf32>
    %109 = arith.addf %108, %107 : vector<8x256xf32>
    %110 = arith.divf %108, %109 : vector<8x256xf32>
    %111 = vector.extract_strided_slice %104 {offsets = [0, 256], sizes = [8, 256], strides = [1, 1]} : vector<8x1024xf32> to vector<8x256xf32>
    %112 = arith.negf %111 : vector<8x256xf32>
    %113 = math.exp %112 : vector<8x256xf32>
    %cst_30 = arith.constant 1.000000e+00 : f32
    %114 = vector.broadcast %cst_30 : f32 to vector<8x256xf32>
    %115 = arith.addf %114, %113 : vector<8x256xf32>
    %116 = arith.divf %114, %115 : vector<8x256xf32>
    %117 = vector.extract_strided_slice %104 {offsets = [0, 512], sizes = [8, 256], strides = [1, 1]} : vector<8x1024xf32> to vector<8x256xf32>
    %118 = math.tanh %117 : vector<8x256xf32>
    %119 = vector.extract_strided_slice %104 {offsets = [0, 768], sizes = [8, 256], strides = [1, 1]} : vector<8x1024xf32> to vector<8x256xf32>
    %120 = arith.negf %119 : vector<8x256xf32>
    %121 = math.exp %120 : vector<8x256xf32>
    %cst_31 = arith.constant 1.000000e+00 : f32
    %122 = vector.broadcast %cst_31 : f32 to vector<8x256xf32>
    %123 = arith.addf %122, %121 : vector<8x256xf32>
    %124 = arith.divf %122, %123 : vector<8x256xf32>
    %125 = arith.mulf %116, %95 : vector<8x256xf32>
    %126 = arith.mulf %110, %118 : vector<8x256xf32>
    %127 = arith.addf %125, %126 : vector<8x256xf32>
    %128 = math.tanh %127 : vector<8x256xf32>
    %129 = arith.mulf %124, %128 : vector<8x256xf32>
    %c4_i32 = arith.constant 4 : i32
    %130 = arith.index_cast %c4_i32 : i32 to index
    %c0_32 = arith.constant 0 : index
    %c0_33 = arith.constant 0 : index
    %131 = vector.load %arg1[%130, %c0_32, %c0_33] : memref<8x8x1024xf32, #tpu.memory_space<vmem>>, vector<1x8x1024xf32>
    %132 = vector.shape_cast %131 : vector<1x8x1024xf32> to vector<8x1024xf32>
    %133 = arith.truncf %129 : vector<8x256xf32> to vector<8x256xbf16>
    %c0_34 = arith.constant 0 : index
    %c0_35 = arith.constant 0 : index
    %134 = vector.load %arg2[%c0_34, %c0_35] : memref<256x1024xbf16, #tpu.memory_space<vmem>>, vector<256x1024xbf16>
    %cst_36 = arith.constant dense<0.000000e+00> : vector<8x1024xf32>
    %135 = tpu.matmul %133, %134, %cst_36 {dimension_numbers = #tpu.dot_dimension_numbers<[1], [0], [0], [1], [0, 0, 1, 1], [], []>} : vector<8x256xbf16>, vector<256x1024xbf16>, vector<8x1024xf32> -> vector<8x1024xf32>
    %136 = arith.addf %132, %135 : vector<8x1024xf32>
    %137 = vector.extract_strided_slice %136 {offsets = [0, 0], sizes = [8, 256], strides = [1, 1]} : vector<8x1024xf32> to vector<8x256xf32>
    %138 = arith.negf %137 : vector<8x256xf32>
    %139 = math.exp %138 : vector<8x256xf32>
    %cst_37 = arith.constant 1.000000e+00 : f32
    %140 = vector.broadcast %cst_37 : f32 to vector<8x256xf32>
    %141 = arith.addf %140, %139 : vector<8x256xf32>
    %142 = arith.divf %140, %141 : vector<8x256xf32>
    %143 = vector.extract_strided_slice %136 {offsets = [0, 256], sizes = [8, 256], strides = [1, 1]} : vector<8x1024xf32> to vector<8x256xf32>
    %144 = arith.negf %143 : vector<8x256xf32>
    %145 = math.exp %144 : vector<8x256xf32>
    %cst_38 = arith.constant 1.000000e+00 : f32
    %146 = vector.broadcast %cst_38 : f32 to vector<8x256xf32>
    %147 = arith.addf %146, %145 : vector<8x256xf32>
    %148 = arith.divf %146, %147 : vector<8x256xf32>
    %149 = vector.extract_strided_slice %136 {offsets = [0, 512], sizes = [8, 256], strides = [1, 1]} : vector<8x1024xf32> to vector<8x256xf32>
    %150 = math.tanh %149 : vector<8x256xf32>
    %151 = vector.extract_strided_slice %136 {offsets = [0, 768], sizes = [8, 256], strides = [1, 1]} : vector<8x1024xf32> to vector<8x256xf32>
    %152 = arith.negf %151 : vector<8x256xf32>
    %153 = math.exp %152 : vector<8x256xf32>
    %cst_39 = arith.constant 1.000000e+00 : f32
    %154 = vector.broadcast %cst_39 : f32 to vector<8x256xf32>
    %155 = arith.addf %154, %153 : vector<8x256xf32>
    %156 = arith.divf %154, %155 : vector<8x256xf32>
    %157 = arith.mulf %148, %127 : vector<8x256xf32>
    %158 = arith.mulf %142, %150 : vector<8x256xf32>
    %159 = arith.addf %157, %158 : vector<8x256xf32>
    %160 = math.tanh %159 : vector<8x256xf32>
    %161 = arith.mulf %156, %160 : vector<8x256xf32>
    %c5_i32 = arith.constant 5 : i32
    %162 = arith.index_cast %c5_i32 : i32 to index
    %c0_40 = arith.constant 0 : index
    %c0_41 = arith.constant 0 : index
    %163 = vector.load %arg1[%162, %c0_40, %c0_41] : memref<8x8x1024xf32, #tpu.memory_space<vmem>>, vector<1x8x1024xf32>
    %164 = vector.shape_cast %163 : vector<1x8x1024xf32> to vector<8x1024xf32>
    %165 = arith.truncf %161 : vector<8x256xf32> to vector<8x256xbf16>
    %c0_42 = arith.constant 0 : index
    %c0_43 = arith.constant 0 : index
    %166 = vector.load %arg2[%c0_42, %c0_43] : memref<256x1024xbf16, #tpu.memory_space<vmem>>, vector<256x1024xbf16>
    %cst_44 = arith.constant dense<0.000000e+00> : vector<8x1024xf32>
    %167 = tpu.matmul %165, %166, %cst_44 {dimension_numbers = #tpu.dot_dimension_numbers<[1], [0], [0], [1], [0, 0, 1, 1], [], []>} : vector<8x256xbf16>, vector<256x1024xbf16>, vector<8x1024xf32> -> vector<8x1024xf32>
    %168 = arith.addf %164, %167 : vector<8x1024xf32>
    %169 = vector.extract_strided_slice %168 {offsets = [0, 0], sizes = [8, 256], strides = [1, 1]} : vector<8x1024xf32> to vector<8x256xf32>
    %170 = arith.negf %169 : vector<8x256xf32>
    %171 = math.exp %170 : vector<8x256xf32>
    %cst_45 = arith.constant 1.000000e+00 : f32
    %172 = vector.broadcast %cst_45 : f32 to vector<8x256xf32>
    %173 = arith.addf %172, %171 : vector<8x256xf32>
    %174 = arith.divf %172, %173 : vector<8x256xf32>
    %175 = vector.extract_strided_slice %168 {offsets = [0, 256], sizes = [8, 256], strides = [1, 1]} : vector<8x1024xf32> to vector<8x256xf32>
    %176 = arith.negf %175 : vector<8x256xf32>
    %177 = math.exp %176 : vector<8x256xf32>
    %cst_46 = arith.constant 1.000000e+00 : f32
    %178 = vector.broadcast %cst_46 : f32 to vector<8x256xf32>
    %179 = arith.addf %178, %177 : vector<8x256xf32>
    %180 = arith.divf %178, %179 : vector<8x256xf32>
    %181 = vector.extract_strided_slice %168 {offsets = [0, 512], sizes = [8, 256], strides = [1, 1]} : vector<8x1024xf32> to vector<8x256xf32>
    %182 = math.tanh %181 : vector<8x256xf32>
    %183 = vector.extract_strided_slice %168 {offsets = [0, 768], sizes = [8, 256], strides = [1, 1]} : vector<8x1024xf32> to vector<8x256xf32>
    %184 = arith.negf %183 : vector<8x256xf32>
    %185 = math.exp %184 : vector<8x256xf32>
    %cst_47 = arith.constant 1.000000e+00 : f32
    %186 = vector.broadcast %cst_47 : f32 to vector<8x256xf32>
    %187 = arith.addf %186, %185 : vector<8x256xf32>
    %188 = arith.divf %186, %187 : vector<8x256xf32>
    %189 = arith.mulf %180, %159 : vector<8x256xf32>
    %190 = arith.mulf %174, %182 : vector<8x256xf32>
    %191 = arith.addf %189, %190 : vector<8x256xf32>
    %192 = math.tanh %191 : vector<8x256xf32>
    %193 = arith.mulf %188, %192 : vector<8x256xf32>
    %c6_i32 = arith.constant 6 : i32
    %194 = arith.index_cast %c6_i32 : i32 to index
    %c0_48 = arith.constant 0 : index
    %c0_49 = arith.constant 0 : index
    %195 = vector.load %arg1[%194, %c0_48, %c0_49] : memref<8x8x1024xf32, #tpu.memory_space<vmem>>, vector<1x8x1024xf32>
    %196 = vector.shape_cast %195 : vector<1x8x1024xf32> to vector<8x1024xf32>
    %197 = arith.truncf %193 : vector<8x256xf32> to vector<8x256xbf16>
    %c0_50 = arith.constant 0 : index
    %c0_51 = arith.constant 0 : index
    %198 = vector.load %arg2[%c0_50, %c0_51] : memref<256x1024xbf16, #tpu.memory_space<vmem>>, vector<256x1024xbf16>
    %cst_52 = arith.constant dense<0.000000e+00> : vector<8x1024xf32>
    %199 = tpu.matmul %197, %198, %cst_52 {dimension_numbers = #tpu.dot_dimension_numbers<[1], [0], [0], [1], [0, 0, 1, 1], [], []>} : vector<8x256xbf16>, vector<256x1024xbf16>, vector<8x1024xf32> -> vector<8x1024xf32>
    %200 = arith.addf %196, %199 : vector<8x1024xf32>
    %201 = vector.extract_strided_slice %200 {offsets = [0, 0], sizes = [8, 256], strides = [1, 1]} : vector<8x1024xf32> to vector<8x256xf32>
    %202 = arith.negf %201 : vector<8x256xf32>
    %203 = math.exp %202 : vector<8x256xf32>
    %cst_53 = arith.constant 1.000000e+00 : f32
    %204 = vector.broadcast %cst_53 : f32 to vector<8x256xf32>
    %205 = arith.addf %204, %203 : vector<8x256xf32>
    %206 = arith.divf %204, %205 : vector<8x256xf32>
    %207 = vector.extract_strided_slice %200 {offsets = [0, 256], sizes = [8, 256], strides = [1, 1]} : vector<8x1024xf32> to vector<8x256xf32>
    %208 = arith.negf %207 : vector<8x256xf32>
    %209 = math.exp %208 : vector<8x256xf32>
    %cst_54 = arith.constant 1.000000e+00 : f32
    %210 = vector.broadcast %cst_54 : f32 to vector<8x256xf32>
    %211 = arith.addf %210, %209 : vector<8x256xf32>
    %212 = arith.divf %210, %211 : vector<8x256xf32>
    %213 = vector.extract_strided_slice %200 {offsets = [0, 512], sizes = [8, 256], strides = [1, 1]} : vector<8x1024xf32> to vector<8x256xf32>
    %214 = math.tanh %213 : vector<8x256xf32>
    %215 = vector.extract_strided_slice %200 {offsets = [0, 768], sizes = [8, 256], strides = [1, 1]} : vector<8x1024xf32> to vector<8x256xf32>
    %216 = arith.negf %215 : vector<8x256xf32>
    %217 = math.exp %216 : vector<8x256xf32>
    %cst_55 = arith.constant 1.000000e+00 : f32
    %218 = vector.broadcast %cst_55 : f32 to vector<8x256xf32>
    %219 = arith.addf %218, %217 : vector<8x256xf32>
    %220 = arith.divf %218, %219 : vector<8x256xf32>
    %221 = arith.mulf %212, %191 : vector<8x256xf32>
    %222 = arith.mulf %206, %214 : vector<8x256xf32>
    %223 = arith.addf %221, %222 : vector<8x256xf32>
    %224 = math.tanh %223 : vector<8x256xf32>
    %225 = arith.mulf %220, %224 : vector<8x256xf32>
    %c7_i32 = arith.constant 7 : i32
    %226 = arith.index_cast %c7_i32 : i32 to index
    %c0_56 = arith.constant 0 : index
    %c0_57 = arith.constant 0 : index
    %227 = vector.load %arg1[%226, %c0_56, %c0_57] : memref<8x8x1024xf32, #tpu.memory_space<vmem>>, vector<1x8x1024xf32>
    %228 = vector.shape_cast %227 : vector<1x8x1024xf32> to vector<8x1024xf32>
    %229 = arith.truncf %225 : vector<8x256xf32> to vector<8x256xbf16>
    %c0_58 = arith.constant 0 : index
    %c0_59 = arith.constant 0 : index
    %230 = vector.load %arg2[%c0_58, %c0_59] : memref<256x1024xbf16, #tpu.memory_space<vmem>>, vector<256x1024xbf16>
    %cst_60 = arith.constant dense<0.000000e+00> : vector<8x1024xf32>
    %231 = tpu.matmul %229, %230, %cst_60 {dimension_numbers = #tpu.dot_dimension_numbers<[1], [0], [0], [1], [0, 0, 1, 1], [], []>} : vector<8x256xbf16>, vector<256x1024xbf16>, vector<8x1024xf32> -> vector<8x1024xf32>
    %232 = arith.addf %228, %231 : vector<8x1024xf32>
    %233 = vector.extract_strided_slice %232 {offsets = [0, 0], sizes = [8, 256], strides = [1, 1]} : vector<8x1024xf32> to vector<8x256xf32>
    %234 = arith.negf %233 : vector<8x256xf32>
    %235 = math.exp %234 : vector<8x256xf32>
    %cst_61 = arith.constant 1.000000e+00 : f32
    %236 = vector.broadcast %cst_61 : f32 to vector<8x256xf32>
    %237 = arith.addf %236, %235 : vector<8x256xf32>
    %238 = arith.divf %236, %237 : vector<8x256xf32>
    %239 = vector.extract_strided_slice %232 {offsets = [0, 256], sizes = [8, 256], strides = [1, 1]} : vector<8x1024xf32> to vector<8x256xf32>
    %240 = arith.negf %239 : vector<8x256xf32>
    %241 = math.exp %240 : vector<8x256xf32>
    %cst_62 = arith.constant 1.000000e+00 : f32
    %242 = vector.broadcast %cst_62 : f32 to vector<8x256xf32>
    %243 = arith.addf %242, %241 : vector<8x256xf32>
    %244 = arith.divf %242, %243 : vector<8x256xf32>
    %245 = vector.extract_strided_slice %232 {offsets = [0, 512], sizes = [8, 256], strides = [1, 1]} : vector<8x1024xf32> to vector<8x256xf32>
    %246 = math.tanh %245 : vector<8x256xf32>
    %247 = vector.extract_strided_slice %232 {offsets = [0, 768], sizes = [8, 256], strides = [1, 1]} : vector<8x1024xf32> to vector<8x256xf32>
    %248 = arith.negf %247 : vector<8x256xf32>
    %249 = math.exp %248 : vector<8x256xf32>
    %cst_63 = arith.constant 1.000000e+00 : f32
    %250 = vector.broadcast %cst_63 : f32 to vector<8x256xf32>
    %251 = arith.addf %250, %249 : vector<8x256xf32>
    %252 = arith.divf %250, %251 : vector<8x256xf32>
    %253 = arith.mulf %244, %223 : vector<8x256xf32>
    %254 = arith.mulf %238, %246 : vector<8x256xf32>
    %255 = arith.addf %253, %254 : vector<8x256xf32>
    %256 = math.tanh %255 : vector<8x256xf32>
    %257 = arith.mulf %252, %256 : vector<8x256xf32>
    %c8_i32 = arith.constant 8 : i32
    %258 = arith.truncf %257 : vector<8x256xf32> to vector<8x256xbf16>
    %c0_64 = arith.constant 0 : index
    %c0_65 = arith.constant 0 : index
    %259 = vector.load %arg3[%c0_64, %c0_65] : memref<256x128xbf16, #tpu.memory_space<vmem>>, vector<256x128xbf16>
    %cst_66 = arith.constant dense<0.000000e+00> : vector<8x128xf32>
    %260 = tpu.matmul %258, %259, %cst_66 {dimension_numbers = #tpu.dot_dimension_numbers<[1], [0], [0], [1], [0, 0, 1, 1], [], []>} : vector<8x256xbf16>, vector<256x128xbf16>, vector<8x128xf32> -> vector<8x128xf32>
    %c0_67 = arith.constant 0 : index
    %c0_68 = arith.constant 0 : index
    %261 = vector.load %arg4[%c0_67, %c0_68] : memref<1x128xf32, #tpu.memory_space<vmem>>, vector<1x128xf32>
    %262 = vector.broadcast %261 : vector<1x128xf32> to vector<8x128xf32>
    %263 = arith.addf %260, %262 : vector<8x128xf32>
    %cst_69 = arith.constant 0.000000e+00 : f32
    %264 = vector.broadcast %cst_69 : f32 to vector<8x128xf32>
    %265 = arith.maximumf %263, %264 : vector<8x128xf32>
    %266 = arith.truncf %265 : vector<8x128xf32> to vector<8x128xbf16>
    %c0_70 = arith.constant 0 : index
    %c0_71 = arith.constant 0 : index
    %267 = vector.load %arg5[%c0_70, %c0_71] : memref<128x128xbf16, #tpu.memory_space<vmem>>, vector<128x128xbf16>
    %cst_72 = arith.constant dense<0.000000e+00> : vector<8x128xf32>
    %268 = tpu.matmul %266, %267, %cst_72 {dimension_numbers = #tpu.dot_dimension_numbers<[1], [0], [0], [1], [0, 0, 1, 1], [], []>} : vector<8x128xbf16>, vector<128x128xbf16>, vector<8x128xf32> -> vector<8x128xf32>
    %c0_73 = arith.constant 0 : index
    %c0_74 = arith.constant 0 : index
    %269 = vector.load %arg6[%c0_73, %c0_74] : memref<1x128xf32, #tpu.memory_space<vmem>>, vector<1x128xf32>
    %270 = vector.broadcast %269 : vector<1x128xf32> to vector<8x128xf32>
    %271 = arith.addf %268, %270 : vector<8x128xf32>
    %c0_75 = arith.constant 0 : index
    %c0_76 = arith.constant 0 : index
    %272 = vector.load %arg7[%c0_75, %c0_76] : memref<8x128xf32, #tpu.memory_space<vmem>>, vector<8x128xf32>
    tpu.vector_store %arg7[%c0_75, %c0_76], %271 {strides = array<i32>} : memref<8x128xf32, #tpu.memory_space<vmem>>, vector<8x128xf32>,
    return
  }
  func.func @transform_0(%arg0: i32) -> (i32, i32, i32) {
    %c0_i32 = arith.constant 0 : i32
    %c0_i32_0 = arith.constant 0 : i32
    %c0_i32_1 = arith.constant 0 : i32
    %c0_i32_2 = arith.constant 0 : i32
    return %c0_i32, %c0_i32_0, %c0_i32_1 : i32, i32, i32
  }
  func.func @transform_1(%arg0: i32) -> (i32, i32) {
    %c0_i32 = arith.constant 0 : i32
    %c0_i32_0 = arith.constant 0 : i32
    %c0_i32_1 = arith.constant 0 : i32
    return %c0_i32, %c0_i32_0 : i32, i32
  }
  func.func @transform_2(%arg0: i32) -> (i32, i32) {
    %c0_i32 = arith.constant 0 : i32
    %c0_i32_0 = arith.constant 0 : i32
    %c0_i32_1 = arith.constant 0 : i32
    return %c0_i32, %c0_i32_0 : i32, i32
  }
  func.func @transform_3(%arg0: i32) -> (i32, i32) {
    %c0_i32 = arith.constant 0 : i32
    %c0_i32_0 = arith.constant 0 : i32
    %c0_i32_1 = arith.constant 0 : i32
    return %c0_i32, %c0_i32_0 : i32, i32
  }
  func.func @transform_4(%arg0: i32) -> (i32, i32) {
    %c0_i32 = arith.constant 0 : i32
    %c0_i32_0 = arith.constant 0 : i32
    %c0_i32_1 = arith.constant 0 : i32
    return %c0_i32, %c0_i32_0 : i32, i32
  }
  func.func @transform_5(%arg0: i32) -> (i32, i32) {
    %c0_i32 = arith.constant 0 : i32
    %c0_i32_0 = arith.constant 0 : i32
    %c0_i32_1 = arith.constant 0 : i32
    return %c0_i32, %c0_i32_0 : i32, i32
  }
  func.func @transform_6(%arg0: i32) -> (i32, i32) {
    %c0_i32 = arith.constant 0 : i32
    %c0_i32_0 = arith.constant 0 : i32
    %c0_i32_1 = arith.constant 0 : i32
    return %c0_i32, %c0_i32_0 : i32, i32
  }
}

</mosaic_0001>

<bundles_post_ra>
// kernel: rnn_forward.2
= control target key start
LH: loop header
LB: loop body
LE: loop exit
PB: predicated region body
PF: predicated region fallthrough
CT: control target
= control target key end

     0   :  { %8 = vsyncpa [#allocation3], 0  ;;  %s4821_s0 = inlined_call_operand.vmem [shape: bf16[16,3888], index: 0, kind: input, shape index: {}]   ;;  %s4822_s1 = inlined_call_operand.hbm [shape: bf16[3888,896], index: 1, kind: input, shape index: {}]   ;;  %s4823_s2 = inlined_call_operand.hbm [shape: f32[1,896], index: 2, kind: input, shape index: {}]   ;;  %s4824_s3 = inlined_call_operand.vmem [shape: f32[16,896], index: 3, kind: output, shape index: {}]  }
   0x1   :  { %10 = vsyncpa [#allocation3 + $0x1], 0 }
   0x2   :  { %11 = vsyncpa [#allocation5], 0 }
   0x3   :  { %13 = vsyncpa [#allocation5 + $0x1], 0  ;;  %s4343_s12 = smov 0   ;;  %s4345_s13 = smov 0  }
   0x4   :  { %s4347_s14 = smov 0   ;;  %s4349_s15 = smov 0  }
   0x5   :  { %s4351_s16 = smov 0   ;;  %s4353_s17 = smov 0  }
   0x6 LB: > { %s3215_s18 = sadd.s32 4294967295, %s4314_s17   ;;  %s31_s19 = sadd.s32 1, %s4310_s16  ;;  %s4314_s17 = sphi %s4353_s17, %s19_s17   ;;  %s4310_s16 = sphi %s4351_s16, %s4834_s16   ;;  %s4306_s15 = sphi %s4349_s15, %s4833_s15   ;;  %s4302_s14 = sphi %s4347_s14, %s4832_s14   ;;  %s4298_s13 = sphi %s4345_s13, %s4831_s13   ;;  %s4294_s12 = sphi %s4343_s12, %s4830_s12  }
   0x7   : > { %p33_p0 = scmp.ge.s32.totalorder %s31_s19, 7  ;;  %s64_s20 = sadd.s32 1, %s4302_s14 }
   0x8   : > { %p71_p1 = scmp.ne.s32.totalorder %s4302_s14, %s4298_s13  ;;  %p72_p2 = scmp.eq.s32.totalorder %s4314_s17, 0 }
   0x9   : > { %s4836_s19 = smov (%p33_p0, %s31_s19), 0  ;;  %p77_p4 = scmp.ne.s32.totalorder %s4298_s13, %s4294_s12 }
   0xa   : > { %p4379_p3 = por %p72_p2, %p71_p1  ;;  %s61_s22 = ssub.s32 %s4310_s16, %s4836_s19 }
   0xb   : > { %p78_p5 = scmp.eq.s32.totalorder %s3215_s18, 0  ;;  %p62_p6 = scmp.eq.s32.totalorder %s61_s22, 0 }
   0xc   : > { %p129_p7 = scmp.eq.s32.totalorder %s3215_s18, 6  ;;  %p3861_p10 = scmp.lt.s32.totalorder %s4314_s17, 7 }
   0xd   : > { %p4386_p8 = por %p78_p5, %p77_p4  ;;  %s4399_s26 = sand.u32 1, %s4302_s14  }
   0xe   : > { %s4391_s24 = scalar_select %p62_p6, %s4302_s14, %s64_s20  }
   0xf   : > { %p4393_p9 = por %p129_p7, %p71_p1  ;;  %s3220_s27 = sshll.u32 %s4310_s16, 6 }
  0x10   : > { %s3848_s28 = smul.u32 1944, %s4399_s26  ;;  %s174_s4 = scalar_lea.hbm %s4822_s1, %s3220_s27 }
  0x11   : > { %p4408_p11 = pnand %p3861_p10, %p4379_p3  ;;  %p3222_p12 = scmp.ge.s32.totalorder %s4314_s17, 1 }
  0x12   : > { %s169_s6 = scalar_lea.vmem [#allocation2], %s3848_s28  ;;  %s166_s8 = scalar_lea.sflag [#allocation3], %s4399_s26 }
  0x13   : > { %s175_s7 = sshll.u32 %s169_s6, 4  ;;  %p4206_p13 = pneg %p4408_p11  ;;  %s176_s7 = int_to_ptr.vmem [resolvable:$true] %s175_s7 }
  0x14   : > { %s4217_s9 = scalar_lea.vmem %s176_s7, 31104  ;;  %s4316_s10 = smov [#allocation2]  }
  0x15   : > { %p4218_p0 = scmp.ne.s32.totalorder %s176_s7, %s4217_s9  ;;  %s4222_s11 = sshll.u32 %s4316_s10, 4  ;;  %s4223_s11 = int_to_ptr.vmem [resolvable:$false] %s4222_s11 }
  0x16   : > { %s4224_s12 = scalar_lea.vmem %s4223_s11, 62208  ;;  %p4225_p3 = scmp.lt.s32.totalorder %s176_s7, %s4223_s11 }
  0x17   : > { %p4220_p1 = pnand %p4218_p0, %p4206_p13  ;;  %p4226_p4 = scmp.lt.s32.totalorder %s4224_s12, %s4217_s9 }
  0x19   : > { %p4221_p2 = pneg %p4220_p1  ;;  %p4227_p5 = por %p4226_p4, %p4225_p3 }
  0x1b   : > { %p4228_p6 = pnand %p4227_p5, %p4221_p2 }
  0x1d   : > { %4231 = shalt.err (!%p4228_p6)
}
  0x1e   : > { %s4317_s18 = smov 448   ;;  %s4318_s20 = smov 64  }
  0x1f   : > { %s4319_s21 = smov 4   ;;  %p200_p7 = scmp.lt.s32.totalorder %s4314_s17, 8 }
  0x20   : > { %3857 = dma.hbm_to_vmem [thread:$0]  (!%p4408_p11), %s174_s4, 31104, %s176_s7, %s166_s8, %s4317_s18, %s4318_s20, %s4319_s21  }
  0x21   : > { %s3221_s22 = sshll.u32 %s4310_s16, 4  ;;  %p4425_p10 = pnand %p3222_p12, %p200_p7 }
  0x22   : > { %s193_s30 = scalar_lea.hbm %s4823_s2, %s3221_s22  ;;  %s188_s6 = scalar_lea.vmem [#allocation4], %s4399_s26 }
  0x23   : > { %s195_s9 = sshll.u32 %s188_s6, 4  ;;  %s186_s10 = scalar_lea.sflag [#allocation5], %s4399_s26  ;;  %s196_s9 = int_to_ptr.vmem [resolvable:$true] %s195_s9 }
  0x24   : > { %s4245_s11 = scalar_lea.vmem %s196_s9, 16  ;;  %s4320_s4 = smov [#allocation4]  }
  0x25   : > { %p4246_p0 = scmp.ne.s32.totalorder %s196_s9, %s4245_s11  ;;  %s4250_s7 = sshll.u32 %s4320_s4, 4  ;;  %s4251_s7 = int_to_ptr.vmem [resolvable:$false] %s4250_s7 }
  0x26   : > { %s4252_s8 = scalar_lea.vmem %s4251_s7, 32  ;;  %p4253_p12 = scmp.lt.s32.totalorder %s196_s9, %s4251_s7 }
  0x27   : > { %p4248_p1 = pnand %p4246_p0, %p4206_p13  ;;  %p4254_p3 = scmp.lt.s32.totalorder %s4252_s8, %s4245_s11 }
  0x29   : > { %p4249_p2 = pneg %p4248_p1  ;;  %p4255_p4 = por %p4254_p3, %p4253_p12 }
  0x2b   : > { %p4256_p5 = pnand %p4255_p4, %p4249_p2 }
  0x2d   : > { %4259 = shalt.err (!%p4256_p5)
}
  0x2e   : > { %3860 = dma.hbm_to_vmem [thread:$0]  (!%p4408_p11), %s193_s30, 16, %s196_s9, %s186_s10  }
  0x2f   : > { %204 = sbr.rel (%p4425_p10) target bundleno = 526 (0x20e), region = 32  ;;  %s4442_s26 = sand.u32 (!%p4425_p10), 1, %s4298_s13  }
  0x30   : > { %s3849_s12 = smul.u32 (!%p4425_p10), 1944, %s4442_s26  ;;  %s207_s18 = scalar_lea.sflag (!%p4425_p10), [#allocation3], %s4442_s26 }
  0x32   : > { %s4446_s20 = scalar_lea.vmem (!%p4425_p10), [#allocation2], %s3849_s12 }
  0x34   : > { %4285 = dma.done.wait (%p4386_p8), %s207_s18, 31104  }
  0x35   : > { %4287 = vsyncadd (%p4386_p8), %s207_s18, 4294936192  ;;  %s216_s5 = scalar_lea.sflag [#allocation5], %s4442_s26  ;;  %s218_s21 = scalar_lea.vmem [#allocation4], %s4442_s26 }
  0x36   : > { %4289 = dma.done.wait (%p4386_p8), %s216_s5, 16  }
  0x37   : > { %4291 = vsyncadd (%p4386_p8), %s216_s5, 4294967280  ;;  %v3915_v0 = vld [vmem:[%s4446_s20 + $0x78] sm:$0xff]   ;;  %v3919_v4 = vld [vmem:[%s4446_s20 + $0x70] sm:$0xff]   ;;  %vm4322_vm0 = vmmov 0   ;;  %vm2397_vm1 = vcmask 392192   ;;  %s3501_s18 = sshll.u32 (%p4393_p9), %s4306_s15, 3 }
  0x38   : > { %v3916_v1 = vld [vmem:[%s4446_s20 + $0x38] sm:$0xff]   ;;  %3504 = vmatprep.subr.bf16.mxu0 %v3915_v0  ;;  %v3920_v5 = vld [vmem:[%s4446_s20 + $0x30] sm:$0xff]   ;;  %v3923_v8 = vld [vmem:[%s4446_s20 + $0x68] sm:$0xff]   ;;  %s3070_s23 = scalar_lea.vmem (%p4393_p9), %s4824_s3, %s3501_s18 }
  0x39   : > { %v3917_v2 = vld [vmem:[%s4446_s20 + $0xf8] sm:$0xff]   ;;  %3505 = vmatpush3.bf16.msra.mxu0 %v3916_v1  ;;  %v3921_v6 = vld [vmem:[%s4446_s20 + $0xf0] sm:$0xff]   ;;  %v3924_v9 = vld [vmem:[%s4446_s20 + $0x28] sm:$0xff]  }
  0x3a   : > { %v3918_v3 = vld [vmem:[%s4446_s20 + $0xb8] sm:$0xff]   ;;  %3526 = vmatprep.subr.bf16.mxu1 %v3917_v2  ;;  %3506 = vmatprep.subr.bf16.mxu0 %v3919_v4  ;;  %v3922_v7 = vld [vmem:[%s4446_s20 + $0xb0] sm:$0xff]   ;;  %v3925_v10 = vld [vmem:[%s4446_s20 + $0xe8] sm:$0xff]  }
  0x3b   : > { %3527 = vmatpush3.bf16.msra.mxu1 %v3918_v3  ;;  %v3926_v11 = vld [vmem:[%s4446_s20 + $0xa8] sm:$0xff]   ;;  %v3927_v12 = vld [vmem:[%s4446_s20 + $0x60] sm:$0xff]   ;;  %v3931_v16 = vld [vmem:[%s4446_s20 + $0x58] sm:$0xff]  }
  0x3c   : > { %3528 = vmatprep.subr.bf16.mxu1 %v3921_v6  ;;  %v3928_v13 = vld [vmem:[%s4446_s20 + $0x20] sm:$0xff]   ;;  %v3932_v17 = vld [vmem:[%s4446_s20 + $0x18] sm:$0xff]   ;;  %v3935_v20 = vld [vmem:[%s4446_s20 + $0x50] sm:$0xff]  }
  0x3d   : > { %3507 = vmatpush3.bf16.msra.mxu0 %v3920_v5  ;;  %v3929_v14 = vld [vmem:[%s4446_s20 + $0xe0] sm:$0xff]   ;;  %v3933_v18 = vld [vmem:[%s4446_s20 + $0xd8] sm:$0xff]   ;;  %v3936_v21 = vld [vmem:[%s4446_s20 + $0x10] sm:$0xff]  }
  0x3e   : > { %3508 = vmatprep.subr.bf16.mxu0 %v3923_v8  ;;  %v3930_v15 = vld [vmem:[%s4446_s20 + $0xa0] sm:$0xff]   ;;  %v3934_v19 = vld [vmem:[%s4446_s20 + $0x98] sm:$0xff]   ;;  %v3937_v22 = vld [vmem:[%s4446_s20 + $0xd0] sm:$0xff]  }
  0x3f   : > { %3529 = vmatpush3.bf16.msra.mxu1 %v3922_v7  ;;  %v3938_v23 = vld [vmem:[%s4446_s20 + $0x90] sm:$0xff]   ;;  %v3939_v24 = vld [vmem:[%s4446_s20 + $0x48] sm:$0xff]   ;;  %v3943_v28 = vld [vmem:[%s4446_s20 + $0x40] sm:$0xff]  }
  0x40   : > { %3530 = vmatprep.subr.bf16.mxu1 %v3925_v10  ;;  %v3940_v25 = vld [vmem:[%s4446_s20 + $0x8] sm:$0xff]   ;;  %v3944_v29 = vld [vmem:[%s4446_s20] sm:$0xff]   ;;  %v3950_v34 = vld [vmem:[%s4446_s20 + $0x178] sm:$0xff]  }
  0x41   : > { %3509 = vmatpush3.bf16.msra.mxu0 %v3924_v9  ;;  %v3941_v26 = vld [vmem:[%s4446_s20 + $0xc8] sm:$0xff]   ;;  %v3945_v30 = vld [vmem:[%s4446_s20 + $0xc0] sm:$0xff]   ;;  %v3954_v37 = vld [vmem:[%s4446_s20 + $0x138] sm:$0xff]  }
  0x42   : > { %3510 = vmatprep.subr.bf16.mxu0 %v3927_v12  ;;  %v3942_v27 = vld [vmem:[%s4446_s20 + $0x88] sm:$0xff]   ;;  %v3949_v33 = vld [vmem:[%s4446_s20 + $0x80] sm:$0xff]   ;;  %v3955_v38 = vld [vmem:[%s4446_s20 + $0x1f8] sm:$0xff]  }
  0x43   : > { %3531 = vmatpush3.bf16.msra.mxu1 %v3926_v11  ;;  %v3946_v31 = vld [vmem:[%s4821_s0] ss:$124 sps:$4 sm:$0xff]   ;;  %v3951_v35 = vld [vmem:[%s4821_s0 + $0x8] ss:$124 sps:$4 sm:$0xff]   ;;  %v3984_v3 = vld [vmem:[%s4821_s0 + $0x10] ss:$124 sps:$4 sm:$0xff]  }
  0x44   : > { %3532 = vmatprep.subr.bf16.mxu1 %v3929_v14  ;;  %v3948_v32 = vld [vmem:[%s4821_s0 + $0x4] ss:$124 sps:$4 sm:$0xff]   ;;  %v3953_v36 = vld [vmem:[%s4821_s0 + $0xc] ss:$124 sps:$4 sm:$0xff]   ;;  %v3956_v39 = vld [vmem:[%s4446_s20 + $0x1b8] sm:$0xff]  }
  0x45   : > { %3511 = vmatpush3.bf16.msra.mxu0 %v3928_v13  ;;  %2433 = vmatprep.mubr.bf16.mxu0 %v3948_v32  ;;  %v3957_v40 = vld [vmem:[%s4446_s20 + $0x170] sm:$0xff]   ;;  %v3961_v44 = vld [vmem:[%s4446_s20 + $0x168] sm:$0xff]   ;;  %v3965_v48 = vld [vmem:[%s4446_s20 + $0x160] sm:$0xff]  }
  0x46   : > { %3512 = vmatprep.subr.bf16.mxu0 %v3931_v16  ;;  %2474 = vmatprep.mubr.bf16.mxu1 %v3953_v36  ;;  %v3958_v41 = vld [vmem:[%s4446_s20 + $0x130] sm:$0xff]   ;;  %v3962_v45 = vld [vmem:[%s4446_s20 + $0x128] sm:$0xff]   ;;  %v3966_v49 = vld [vmem:[%s4446_s20 + $0x120] sm:$0xff]  }
  0x47   : > { %3533 = vmatpush3.bf16.msra.mxu1 %v3930_v15  ;;  %v3959_v42 = vld [vmem:[%s4446_s20 + $0x1f0] sm:$0xff]   ;;  %v3963_v46 = vld [vmem:[%s4446_s20 + $0x1e8] sm:$0xff]   ;;  %v3967_v50 = vld [vmem:[%s4446_s20 + $0x1e0] sm:$0xff]  }
  0x48   : > { %3534 = vmatprep.subr.bf16.mxu1 %v3933_v18  ;;  %v3960_v43 = vld [vmem:[%s4446_s20 + $0x1b0] sm:$0xff]   ;;  %v3964_v47 = vld [vmem:[%s4446_s20 + $0x1a8] sm:$0xff]   ;;  %v3968_v51 = vld [vmem:[%s4446_s20 + $0x1a0] sm:$0xff]  }
  0x49   : > { %3513 = vmatpush3.bf16.msra.mxu0 %v3932_v17  ;;  %v3969_v52 = vld [vmem:[%s4446_s20 + $0x158] sm:$0xff]   ;;  %v3973_v56 = vld [vmem:[%s4446_s20 + $0x150] sm:$0xff]   ;;  %v3977_v60 = vld [vmem:[%s4446_s20 + $0x148] sm:$0xff]  }
  0x4a   : > { %3514 = vmatprep.subr.bf16.mxu0 %v3935_v20  ;;  %v3970_v53 = vld [vmem:[%s4446_s20 + $0x118] sm:$0xff]   ;;  %v3974_v57 = vld [vmem:[%s4446_s20 + $0x110] sm:$0xff]   ;;  %v3978_v61 = vld [vmem:[%s4446_s20 + $0x108] sm:$0xff]  }
  0x4b   : > { %3535 = vmatpush3.bf16.msra.mxu1 %v3934_v19  ;;  %v3971_v54 = vld [vmem:[%s4446_s20 + $0x1d8] sm:$0xff]   ;;  %v3975_v58 = vld [vmem:[%s4446_s20 + $0x1d0] sm:$0xff]   ;;  %v3979_v62 = vld [vmem:[%s4446_s20 + $0x1c8] sm:$0xff]  }
  0x4c   : > { %3536 = vmatprep.subr.bf16.mxu1 %v3937_v22  ;;  %v3972_v55 = vld [vmem:[%s4446_s20 + $0x198] sm:$0xff]   ;;  %v3976_v59 = vld [vmem:[%s4446_s20 + $0x190] sm:$0xff]   ;;  %v3980_v63 = vld [vmem:[%s4446_s20 + $0x188] sm:$0xff]  }
  0x4d   : > { %3515 = vmatpush3.bf16.msra.mxu0 %v3936_v21  ;;  %v3981_v0 = vld [vmem:[%s4446_s20 + $0x140] sm:$0xff]   ;;  %v3986_v4 = vld [vmem:[%s4821_s0 + $0x14] ss:$124 sps:$4 sm:$0xff]   ;;  %v3999_v16 = vld [vmem:[%s4446_s20 + $0x268] sm:$0xff]  }
  0x4e   : > { %3516 = vmatprep.subr.bf16.mxu0 %v3939_v24  ;;  %v3982_v1 = vld [vmem:[%s4446_s20 + $0x100] sm:$0xff]   ;;  %v3988_v6 = vld [vmem:[%s4446_s20 + $0x278] sm:$0xff]   ;;  %v3995_v12 = vld [vmem:[%s4446_s20 + $0x270] sm:$0xff]  }
  0x4f   : > { %3537 = vmatpush3.bf16.msra.mxu1 %v3938_v23  ;;  %v3983_v2 = vld [vmem:[%s4446_s20 + $0x1c0] sm:$0xff]   ;;  %v3992_v9 = vld [vmem:[%s4446_s20 + $0x238] sm:$0xff]   ;;  %v3996_v13 = vld [vmem:[%s4446_s20 + $0x230] sm:$0xff]  }
  0x50   : > { %3538 = vmatprep.subr.bf16.mxu1 %v3941_v26  ;;  %v3987_v5 = vld [vmem:[%s4446_s20 + $0x180] sm:$0xff]   ;;  %v3993_v10 = vld [vmem:[%s4446_s20 + $0x2f8] sm:$0xff]   ;;  %v3997_v14 = vld [vmem:[%s4446_s20 + $0x2f0] sm:$0xff]  }
  0x51   : > { %3517 = vmatpush3.bf16.msra.mxu0 %v3940_v25  ;;  %v3989_v7 = vld [vmem:[%s4821_s0 + $0x18] ss:$124 sps:$4 sm:$0xff]   ;;  %v4000_v17 = vld [vmem:[%s4446_s20 + $0x228] sm:$0xff]  }
  0x52   : > { %3518 = vmatprep.subr.bf16.mxu0 %v3943_v28  ;;  %v3991_v8 = vld [vmem:[%s4821_s0 + $0x1c] ss:$124 sps:$4 sm:$0xff]   ;;  %v3998_v15 = vld [vmem:[%s4446_s20 + $0x2b0] sm:$0xff]   ;;  %v4001_v18 = vld [vmem:[%s4446_s20 + $0x2e8] sm:$0xff]  }
  0x53   : > { %3539 = vmatpush3.bf16.msra.mxu1 %v3942_v27  ;;  %v3994_v11 = vld [vmem:[%s4446_s20 + $0x2b8] sm:$0xff]   ;;  %v4002_v19 = vld [vmem:[%s4446_s20 + $0x2a8] sm:$0xff]   ;;  %v4003_v20 = vld [vmem:[%s4446_s20 + $0x260] sm:$0xff]  }
  0x54   : > { %3540 = vmatprep.subr.bf16.mxu1 %v3945_v30  ;;  %v4004_v21 = vld [vmem:[%s4446_s20 + $0x220] sm:$0xff]   ;;  %v4007_v24 = vld [vmem:[%s4446_s20 + $0x258] sm:$0xff]   ;;  %v4011_v28 = vld [vmem:[%s4446_s20 + $0x250] sm:$0xff]  }
  0x55   : > { %3519 = vmatpush3.bf16.msra.mxu0 %v3944_v29  ;;  %v4005_v22 = vld [vmem:[%s4446_s20 + $0x2e0] sm:$0xff]   ;;  %v4008_v25 = vld [vmem:[%s4446_s20 + $0x218] sm:$0xff]   ;;  %v4012_v29 = vld [vmem:[%s4446_s20 + $0x210] sm:$0xff]  }
  0x56   : > { %3548 = vmatprep.subr.bf16.mxu0 %v3950_v34  ;;  %v4006_v23 = vld [vmem:[%s4446_s20 + $0x2a0] sm:$0xff]   ;;  %v4009_v26 = vld [vmem:[%s4446_s20 + $0x2d8] sm:$0xff]   ;;  %v4013_v30 = vld [vmem:[%s4446_s20 + $0x2d0] sm:$0xff]  }
  0x57   : > { %3541 = vmatpush3.bf16.msra.mxu1 %v3949_v33  ;;  %v4010_v27 = vld [vmem:[%s4446_s20 + $0x298] sm:$0xff]   ;;  %v4015_v32 = vld [vmem:[%s4446_s20 + $0x248] sm:$0xff]   ;;  %v4019_v36 = vld [vmem:[%s4446_s20 + $0x240] sm:$0xff]  }
  0x58   : > { %2434 = vmatmul.mubr.bf16.vlgmr.msra.gmra.mxu0 %v3946_v31  ;;  %3570 = vmatprep.subr.bf16.mxu1 %v3955_v38  ;;  %v4014_v31 = vld [vmem:[%s4446_s20 + $0x290] sm:$0xff]   ;;  %v4016_v33 = vld [vmem:[%s4446_s20 + $0x208] sm:$0xff]   ;;  %v4021_v38 = vld [vmem:[%s4446_s20 + $0x2c0] sm:$0xff]  }
  0x59   : > { %3549 = vmatpush3.bf16.msra.mxu0 %v3954_v37  ;;  %2515 = vmatprep.mubr.bf16.mxu0 %v3986_v4  ;;  %v4017_v34 = vld [vmem:[%s4446_s20 + $0x2c8] sm:$0xff]   ;;  %v4020_v37 = vld [vmem:[%s4446_s20 + $0x200] sm:$0xff]  }
  0x5a   : > { %2475 = vmatmul.mubr.bf16.vlgmr.msra.gmra.mxu1 %v3951_v35  ;;  %3550 = vmatprep.subr.bf16.mxu0 %v3957_v40  ;;  %v4018_v35 = vld [vmem:[%s4446_s20 + $0x288] sm:$0xff]  }
  0x5b   : > { %3571 = vmatpush3.bf16.msra.mxu1 %v3956_v39  ;;  %2556 = vmatprep.mubr.bf16.mxu1 %v3991_v8  ;;  %v4022_v39 = vld [vmem:[%s4821_s0 + $0x20] ss:$124 sps:$4 sm:$0xff]  }
  0x5c   : > { %3572 = vmatprep.subr.bf16.mxu1 %v3959_v42  ;;  %v4024_v40 = vld [vmem:[%s4821_s0 + $0x24] ss:$124 sps:$4 sm:$0xff]   ;;  %v4026_v42 = vld [vmem:[%s4446_s20 + $0x378] sm:$0xff]  }
  0x5d   : > { %3551 = vmatpush3.bf16.msra.mxu0 %v3958_v41  ;;  %v4025_v41 = vld [vmem:[%s4446_s20 + $0x280] sm:$0xff]   ;;  %v4053_v4 = vld [vmem:[%s4446_s20 + $0x348] sm:$0xff]  }
  0x5e   : > { %3552 = vmatprep.subr.bf16.mxu0 %v3961_v44  ;;  %v4029_v44 = vld [vmem:[%s4821_s0 + $0x2c] ss:$124 sps:$4 sm:$0xff]   ;;  %v4057_v8 = vld [vmem:[%s4446_s20 + $0x340] sm:$0xff]  }
  0x5f   : > { %3573 = vmatpush3.bf16.msra.mxu1 %v3960_v43  ;;  %v4027_v43 = vld [vmem:[%s4821_s0 + $0x28] ss:$124 sps:$4 sm:$0xff]  }
  0x60   : > { %3574 = vmatprep.subr.bf16.mxu1 %v3963_v46  ;;  %v4031_v46 = vld [vmem:[%s4446_s20 + $0x3f8] sm:$0xff]  }
  0x61   : > { %3553 = vmatpush3.bf16.msra.mxu0 %v3962_v45  ;;  %v4030_v45 = vld [vmem:[%s4446_s20 + $0x338] sm:$0xff]  }
  0x62   : > { %3554 = vmatprep.subr.bf16.mxu0 %v3965_v48  ;;  %v4033_v48 = vld [vmem:[%s4446_s20 + $0x370] sm:$0xff]  }
  0x63   : > { %3575 = vmatpush3.bf16.msra.mxu1 %v3964_v47  ;;  %v4032_v47 = vld [vmem:[%s4446_s20 + $0x3b8] sm:$0xff]  }
  0x64   : > { %3576 = vmatprep.subr.bf16.mxu1 %v3967_v50  ;;  %v4035_v50 = vld [vmem:[%s4446_s20 + $0x3f0] sm:$0xff]  }
  0x65   : > { %3555 = vmatpush3.bf16.msra.mxu0 %v3966_v49  ;;  %v4034_v49 = vld [vmem:[%s4446_s20 + $0x330] sm:$0xff]  }
  0x66   : > { %3556 = vmatprep.subr.bf16.mxu0 %v3969_v52  ;;  %v4037_v52 = vld [vmem:[%s4446_s20 + $0x368] sm:$0xff]  }
  0x67   : > { %3577 = vmatpush3.bf16.msra.mxu1 %v3968_v51  ;;  %v4036_v51 = vld [vmem:[%s4446_s20 + $0x3b0] sm:$0xff]  }
  0x68   : > { %3578 = vmatprep.subr.bf16.mxu1 %v3971_v54  ;;  %v4039_v54 = vld [vmem:[%s4446_s20 + $0x3e8] sm:$0xff]  }
  0x69   : > { %3557 = vmatpush3.bf16.msra.mxu0 %v3970_v53  ;;  %v4038_v53 = vld [vmem:[%s4446_s20 + $0x328] sm:$0xff]  }
  0x6a   : > { %3558 = vmatprep.subr.bf16.mxu0 %v3973_v56  ;;  %v4041_v56 = vld [vmem:[%s4446_s20 + $0x360] sm:$0xff]  }
  0x6b   : > { %3579 = vmatpush3.bf16.msra.mxu1 %v3972_v55  ;;  %v4040_v55 = vld [vmem:[%s4446_s20 + $0x3a8] sm:$0xff]  }
  0x6c   : > { %3580 = vmatprep.subr.bf16.mxu1 %v3975_v58  ;;  %v4043_v58 = vld [vmem:[%s4446_s20 + $0x3e0] sm:$0xff]  }
  0x6d   : > { %3559 = vmatpush3.bf16.msra.mxu0 %v3974_v57  ;;  %v4042_v57 = vld [vmem:[%s4446_s20 + $0x320] sm:$0xff]  }
  0x6e   : > { %3560 = vmatprep.subr.bf16.mxu0 %v3977_v60  ;;  %v4045_v60 = vld [vmem:[%s4446_s20 + $0x358] sm:$0xff]  }
  0x6f   : > { %3581 = vmatpush3.bf16.msra.mxu1 %v3976_v59  ;;  %v4044_v59 = vld [vmem:[%s4446_s20 + $0x3a0] sm:$0xff]  }
  0x70   : > { %3582 = vmatprep.subr.bf16.mxu1 %v3979_v62  ;;  %v4047_v62 = vld [vmem:[%s4446_s20 + $0x3d8] sm:$0xff]  }
  0x71   : > { %3561 = vmatpush3.bf16.msra.mxu0 %v3978_v61  ;;  %v4046_v61 = vld [vmem:[%s4446_s20 + $0x318] sm:$0xff]  }
  0x72   : > { %3562 = vmatprep.subr.bf16.mxu0 %v3981_v0  ;;  %v4049_v0 = vld [vmem:[%s4446_s20 + $0x350] sm:$0xff]  }
  0x73   : > { %3583 = vmatpush3.bf16.msra.mxu1 %v3980_v63  ;;  %v4048_v63 = vld [vmem:[%s4446_s20 + $0x398] sm:$0xff]  }
  0x74   : > { %3584 = vmatprep.subr.bf16.mxu1 %v3983_v2  ;;  %v4051_v2 = vld [vmem:[%s4446_s20 + $0x3d0] sm:$0xff]  }
  0x75   : > { %3563 = vmatpush3.bf16.msra.mxu0 %v3982_v1  ;;  %v4050_v1 = vld [vmem:[%s4446_s20 + $0x310] sm:$0xff]  }
  0x76   : > { %3592 = vmatprep.subr.bf16.mxu0 %v3988_v6  ;;  %v4055_v6 = vld [vmem:[%s4446_s20 + $0x3c8] sm:$0xff]  }
  0x77   : > { %3585 = vmatpush3.bf16.msra.mxu1 %v3987_v5  ;;  %v4054_v5 = vld [vmem:[%s4446_s20 + $0x308] sm:$0xff]  }
  0x78   : > { %2516 = vmatmul.mubr.bf16.vlgmr.msra.gmra.mxu0 %v3984_v3  ;;  %3614 = vmatprep.subr.bf16.mxu1 %v3993_v10  ;;  %v4052_v3 = vld [vmem:[%s4446_s20 + $0x390] sm:$0xff]   ;;  %v4059_v10 = vld [vmem:[%s4446_s20 + $0x3c0] sm:$0xff]  }
  0x79   : > { %3593 = vmatpush3.bf16.msra.mxu0 %v3992_v9  ;;  %2597 = vmatprep.mubr.bf16.mxu0 %v4024_v40  ;;  %v4058_v9 = vld [vmem:[%s4446_s20 + $0x300] sm:$0xff]   ;;  %v4091_v40 = vld [vmem:[%s4446_s20 + $0x448] sm:$0xff]  }
  0x7a   : > { %2557 = vmatmul.mubr.bf16.vlgmr.msra.gmra.mxu1 %v3989_v7  ;;  %3594 = vmatprep.subr.bf16.mxu0 %v3995_v12  ;;  %v4056_v7 = vld [vmem:[%s4446_s20 + $0x388] sm:$0xff]   ;;  %v4062_v12 = vld [vmem:[%s4821_s0 + $0x34] ss:$124 sps:$4 sm:$0xff]  }
  0x7b   : > { %3615 = vmatpush3.bf16.msra.mxu1 %v3994_v11  ;;  %2638 = vmatprep.mubr.bf16.mxu1 %v4029_v44  ;;  %v4060_v11 = vld [vmem:[%s4821_s0 + $0x30] ss:$124 sps:$4 sm:$0xff]   ;;  %v4095_v44 = vld [vmem:[%s4446_s20 + $0x440] sm:$0xff]  }
  0x7c   : > { %3616 = vmatprep.subr.bf16.mxu1 %v3997_v14  ;;  %v4064_v14 = vld [vmem:[%s4446_s20 + $0x478] sm:$0xff]  }
  0x7d   : > { %3595 = vmatpush3.bf16.msra.mxu0 %v3996_v13  ;;  %v4063_v13 = vld [vmem:[%s4446_s20 + $0x380] sm:$0xff]  }
  0x7e   : > { %3596 = vmatprep.subr.bf16.mxu0 %v3999_v16  ;;  %v4067_v16 = vld [vmem:[%s4821_s0 + $0x3c] ss:$124 sps:$4 sm:$0xff]  }
  0x7f   : > { %3617 = vmatpush3.bf16.msra.mxu1 %v3998_v15  ;;  %v4065_v15 = vld [vmem:[%s4821_s0 + $0x38] ss:$124 sps:$4 sm:$0xff]  }
  0x80   : > { %3618 = vmatprep.subr.bf16.mxu1 %v4001_v18  ;;  %v4069_v18 = vld [vmem:[%s4446_s20 + $0x4f8] sm:$0xff]  }
  0x81   : > { %3597 = vmatpush3.bf16.msra.mxu0 %v4000_v17  ;;  %v4068_v17 = vld [vmem:[%s4446_s20 + $0x438] sm:$0xff]  }
  0x82   : > { %3598 = vmatprep.subr.bf16.mxu0 %v4003_v20  ;;  %v4071_v20 = vld [vmem:[%s4446_s20 + $0x470] sm:$0xff]  }
  0x83   : > { %3619 = vmatpush3.bf16.msra.mxu1 %v4002_v19  ;;  %v4070_v19 = vld [vmem:[%s4446_s20 + $0x4b8] sm:$0xff]  }
  0x84   : > { %3620 = vmatprep.subr.bf16.mxu1 %v4005_v22  ;;  %v4073_v22 = vld [vmem:[%s4446_s20 + $0x4f0] sm:$0xff]  }
  0x85   : > { %3599 = vmatpush3.bf16.msra.mxu0 %v4004_v21  ;;  %v4072_v21 = vld [vmem:[%s4446_s20 + $0x430] sm:$0xff]  }
  0x86   : > { %3600 = vmatprep.subr.bf16.mxu0 %v4007_v24  ;;  %v4075_v24 = vld [vmem:[%s4446_s20 + $0x468] sm:$0xff]  }
  0x87   : > { %3621 = vmatpush3.bf16.msra.mxu1 %v4006_v23  ;;  %v4074_v23 = vld [vmem:[%s4446_s20 + $0x4b0] sm:$0xff]  }
  0x88   : > { %3622 = vmatprep.subr.bf16.mxu1 %v4009_v26  ;;  %v4077_v26 = vld [vmem:[%s4446_s20 + $0x4e8] sm:$0xff]  }
  0x89   : > { %3601 = vmatpush3.bf16.msra.mxu0 %v4008_v25  ;;  %v4076_v25 = vld [vmem:[%s4446_s20 + $0x428] sm:$0xff]  }
  0x8a   : > { %3602 = vmatprep.subr.bf16.mxu0 %v4011_v28  ;;  %v4079_v28 = vld [vmem:[%s4446_s20 + $0x460] sm:$0xff]  }
  0x8b   : > { %3623 = vmatpush3.bf16.msra.mxu1 %v4010_v27  ;;  %v4078_v27 = vld [vmem:[%s4446_s20 + $0x4a8] sm:$0xff]  }
  0x8c   : > { %3624 = vmatprep.subr.bf16.mxu1 %v4013_v30  ;;  %v4081_v30 = vld [vmem:[%s4446_s20 + $0x4e0] sm:$0xff]  }
  0x8d   : > { %3603 = vmatpush3.bf16.msra.mxu0 %v4012_v29  ;;  %v4080_v29 = vld [vmem:[%s4446_s20 + $0x420] sm:$0xff]  }
  0x8e   : > { %3604 = vmatprep.subr.bf16.mxu0 %v4015_v32  ;;  %v4083_v32 = vld [vmem:[%s4446_s20 + $0x458] sm:$0xff]  }
  0x8f   : > { %3625 = vmatpush3.bf16.msra.mxu1 %v4014_v31  ;;  %v4082_v31 = vld [vmem:[%s4446_s20 + $0x4a0] sm:$0xff]  }
  0x90   : > { %3626 = vmatprep.subr.bf16.mxu1 %v4017_v34  ;;  %v4085_v34 = vld [vmem:[%s4446_s20 + $0x4d8] sm:$0xff]  }
  0x91   : > { %3605 = vmatpush3.bf16.msra.mxu0 %v4016_v33  ;;  %v4084_v33 = vld [vmem:[%s4446_s20 + $0x418] sm:$0xff]  }
  0x92   : > { %3606 = vmatprep.subr.bf16.mxu0 %v4019_v36  ;;  %v4087_v36 = vld [vmem:[%s4446_s20 + $0x450] sm:$0xff]  }
  0x93   : > { %3627 = vmatpush3.bf16.msra.mxu1 %v4018_v35  ;;  %v4086_v35 = vld [vmem:[%s4446_s20 + $0x498] sm:$0xff]  }
  0x94   : > { %3628 = vmatprep.subr.bf16.mxu1 %v4021_v38  ;;  %v4089_v38 = vld [vmem:[%s4446_s20 + $0x4d0] sm:$0xff]  }
  0x95   : > { %3607 = vmatpush3.bf16.msra.mxu0 %v4020_v37  ;;  %v4088_v37 = vld [vmem:[%s4446_s20 + $0x410] sm:$0xff]  }
  0x96   : > { %3636 = vmatprep.subr.bf16.mxu0 %v4026_v42  ;;  %v4093_v42 = vld [vmem:[%s4446_s20 + $0x4c8] sm:$0xff]  }
  0x97   : > { %3629 = vmatpush3.bf16.msra.mxu1 %v4025_v41  ;;  %v4092_v41 = vld [vmem:[%s4446_s20 + $0x408] sm:$0xff]  }
  0x98   : > { %2598 = vmatmul.mubr.bf16.vlgmr.msra.gmra.mxu0 %v4022_v39  ;;  %3658 = vmatprep.subr.bf16.mxu1 %v4031_v46  ;;  %v4090_v39 = vld [vmem:[%s4446_s20 + $0x490] sm:$0xff]   ;;  %v4097_v46 = vld [vmem:[%s4446_s20 + $0x4c0] sm:$0xff]  }
  0x99   : > { %3637 = vmatpush3.bf16.msra.mxu0 %v4030_v45  ;;  %2679 = vmatprep.mubr.bf16.mxu0 %v4062_v12  ;;  %v4096_v45 = vld [vmem:[%s4446_s20 + $0x400] sm:$0xff]   ;;  %v4129_v12 = vld [vmem:[%s4446_s20 + $0x548] sm:$0xff]  }
  0x9a   : > { %2639 = vmatmul.mubr.bf16.vlgmr.msra.gmra.mxu1 %v4027_v43  ;;  %3638 = vmatprep.subr.bf16.mxu0 %v4033_v48  ;;  %v4094_v43 = vld [vmem:[%s4446_s20 + $0x488] sm:$0xff]  }
  0x9b   : > { %3659 = vmatpush3.bf16.msra.mxu1 %v4032_v47  ;;  %2720 = vmatprep.mubr.bf16.mxu1 %v4067_v16  ;;  %v4098_v47 = vld [vmem:[%s4821_s0 + $0x40] ss:$124 sps:$4 sm:$0xff]  }
  0x9c   : > { %3660 = vmatprep.subr.bf16.mxu1 %v4035_v50  ;;  %v4100_v48 = vld [vmem:[%s4821_s0 + $0x44] ss:$124 sps:$4 sm:$0xff]   ;;  %v4102_v50 = vld [vmem:[%s4446_s20 + $0x578] sm:$0xff]  }
  0x9d   : > { %3639 = vmatpush3.bf16.msra.mxu0 %v4034_v49  ;;  %v4101_v49 = vld [vmem:[%s4446_s20 + $0x480] sm:$0xff]  }
  0x9e   : > { %3640 = vmatprep.subr.bf16.mxu0 %v4037_v52  ;;  %v4105_v52 = vld [vmem:[%s4821_s0 + $0x4c] ss:$124 sps:$4 sm:$0xff]   ;;  %v4133_v16 = vld [vmem:[%s4446_s20 + $0x540] sm:$0xff]  }
  0x9f   : > { %3661 = vmatpush3.bf16.msra.mxu1 %v4036_v51  ;;  %v4103_v51 = vld [vmem:[%s4821_s0 + $0x48] ss:$124 sps:$4 sm:$0xff]  }
  0xa0   : > { %3662 = vmatprep.subr.bf16.mxu1 %v4039_v54  ;;  %v4107_v54 = vld [vmem:[%s4446_s20 + $0x5f8] sm:$0xff]  }
  0xa1   : > { %3641 = vmatpush3.bf16.msra.mxu0 %v4038_v53  ;;  %v4106_v53 = vld [vmem:[%s4446_s20 + $0x538] sm:$0xff]  }
  0xa2   : > { %3642 = vmatprep.subr.bf16.mxu0 %v4041_v56  ;;  %v4109_v56 = vld [vmem:[%s4446_s20 + $0x570] sm:$0xff]  }
  0xa3   : > { %3663 = vmatpush3.bf16.msra.mxu1 %v4040_v55  ;;  %v4108_v55 = vld [vmem:[%s4446_s20 + $0x5b8] sm:$0xff]  }
  0xa4   : > { %3664 = vmatprep.subr.bf16.mxu1 %v4043_v58  ;;  %v4111_v58 = vld [vmem:[%s4446_s20 + $0x5f0] sm:$0xff]  }
  0xa5   : > { %3643 = vmatpush3.bf16.msra.mxu0 %v4042_v57  ;;  %v4110_v57 = vld [vmem:[%s4446_s20 + $0x530] sm:$0xff]  }
  0xa6   : > { %3644 = vmatprep.subr.bf16.mxu0 %v4045_v60  ;;  %v4113_v60 = vld [vmem:[%s4446_s20 + $0x568] sm:$0xff]  }
  0xa7   : > { %3665 = vmatpush3.bf16.msra.mxu1 %v4044_v59  ;;  %v4112_v59 = vld [vmem:[%s4446_s20 + $0x5b0] sm:$0xff]  }
  0xa8   : > { %3666 = vmatprep.subr.bf16.mxu1 %v4047_v62  ;;  %v4115_v62 = vld [vmem:[%s4446_s20 + $0x5e8] sm:$0xff]  }
  0xa9   : > { %3645 = vmatpush3.bf16.msra.mxu0 %v4046_v61  ;;  %v4114_v61 = vld [vmem:[%s4446_s20 + $0x528] sm:$0xff]  }
  0xaa   : > { %3646 = vmatprep.subr.bf16.mxu0 %v4049_v0  ;;  %v4117_v0 = vld [vmem:[%s4446_s20 + $0x560] sm:$0xff]  }
  0xab   : > { %3667 = vmatpush3.bf16.msra.mxu1 %v4048_v63  ;;  %v4116_v63 = vld [vmem:[%s4446_s20 + $0x5a8] sm:$0xff]  }
  0xac   : > { %3668 = vmatprep.subr.bf16.mxu1 %v4051_v2  ;;  %v4119_v2 = vld [vmem:[%s4446_s20 + $0x5e0] sm:$0xff]  }
  0xad   : > { %3647 = vmatpush3.bf16.msra.mxu0 %v4050_v1  ;;  %v4118_v1 = vld [vmem:[%s4446_s20 + $0x520] sm:$0xff]  }
  0xae   : > { %3648 = vmatprep.subr.bf16.mxu0 %v4053_v4  ;;  %v4121_v4 = vld [vmem:[%s4446_s20 + $0x558] sm:$0xff]  }
  0xaf   : > { %3669 = vmatpush3.bf16.msra.mxu1 %v4052_v3  ;;  %v4120_v3 = vld [vmem:[%s4446_s20 + $0x5a0] sm:$0xff]  }
  0xb0   : > { %3670 = vmatprep.subr.bf16.mxu1 %v4055_v6  ;;  %v4123_v6 = vld [vmem:[%s4446_s20 + $0x5d8] sm:$0xff]  }
  0xb1   : > { %3649 = vmatpush3.bf16.msra.mxu0 %v4054_v5  ;;  %v4122_v5 = vld [vmem:[%s4446_s20 + $0x518] sm:$0xff]  }
  0xb2   : > { %3650 = vmatprep.subr.bf16.mxu0 %v4057_v8  ;;  %v4125_v8 = vld [vmem:[%s4446_s20 + $0x550] sm:$0xff]  }
  0xb3   : > { %3671 = vmatpush3.bf16.msra.mxu1 %v4056_v7  ;;  %v4124_v7 = vld [vmem:[%s4446_s20 + $0x598] sm:$0xff]  }
  0xb4   : > { %3672 = vmatprep.subr.bf16.mxu1 %v4059_v10  ;;  %v4127_v10 = vld [vmem:[%s4446_s20 + $0x5d0] sm:$0xff]  }
  0xb5   : > { %3651 = vmatpush3.bf16.msra.mxu0 %v4058_v9  ;;  %v4126_v9 = vld [vmem:[%s4446_s20 + $0x510] sm:$0xff]  }
  0xb6   : > { %3680 = vmatprep.subr.bf16.mxu0 %v4064_v14  ;;  %v4131_v14 = vld [vmem:[%s4446_s20 + $0x5c8] sm:$0xff]  }
  0xb7   : > { %3673 = vmatpush3.bf16.msra.mxu1 %v4063_v13  ;;  %v4130_v13 = vld [vmem:[%s4446_s20 + $0x508] sm:$0xff]  }
  0xb8   : > { %2680 = vmatmul.mubr.bf16.vlgmr.msra.gmra.mxu0 %v4060_v11  ;;  %3702 = vmatprep.subr.bf16.mxu1 %v4069_v18  ;;  %v4128_v11 = vld [vmem:[%s4446_s20 + $0x590] sm:$0xff]   ;;  %v4135_v18 = vld [vmem:[%s4446_s20 + $0x5c0] sm:$0xff]  }
  0xb9   : > { %3681 = vmatpush3.bf16.msra.mxu0 %v4068_v17  ;;  %2761 = vmatprep.mubr.bf16.mxu0 %v4100_v48  ;;  %v4134_v17 = vld [vmem:[%s4446_s20 + $0x500] sm:$0xff]   ;;  %v4167_v48 = vld [vmem:[%s4446_s20 + $0x648] sm:$0xff]  }
  0xba   : > { %2721 = vmatmul.mubr.bf16.vlgmr.msra.gmra.mxu1 %v4065_v15  ;;  %3682 = vmatprep.subr.bf16.mxu0 %v4071_v20  ;;  %v4132_v15 = vld [vmem:[%s4446_s20 + $0x588] sm:$0xff]   ;;  %v4138_v20 = vld [vmem:[%s4821_s0 + $0x54] ss:$124 sps:$4 sm:$0xff]  }
  0xbb   : > { %3703 = vmatpush3.bf16.msra.mxu1 %v4070_v19  ;;  %2802 = vmatprep.mubr.bf16.mxu1 %v4105_v52  ;;  %v4136_v19 = vld [vmem:[%s4821_s0 + $0x50] ss:$124 sps:$4 sm:$0xff]   ;;  %v4171_v52 = vld [vmem:[%s4446_s20 + $0x640] sm:$0xff]  }
  0xbc   : > { %3704 = vmatprep.subr.bf16.mxu1 %v4073_v22  ;;  %v4140_v22 = vld [vmem:[%s4446_s20 + $0x678] sm:$0xff]  }
  0xbd   : > { %3683 = vmatpush3.bf16.msra.mxu0 %v4072_v21  ;;  %v4139_v21 = vld [vmem:[%s4446_s20 + $0x580] sm:$0xff]  }
  0xbe   : > { %3684 = vmatprep.subr.bf16.mxu0 %v4075_v24  ;;  %v4143_v24 = vld [vmem:[%s4821_s0 + $0x5c] ss:$124 sps:$4 sm:$0xff]  }
  0xbf   : > { %3705 = vmatpush3.bf16.msra.mxu1 %v4074_v23  ;;  %v4141_v23 = vld [vmem:[%s4821_s0 + $0x58] ss:$124 sps:$4 sm:$0xff]  }
  0xc0   : > { %3706 = vmatprep.subr.bf16.mxu1 %v4077_v26  ;;  %v4145_v26 = vld [vmem:[%s4446_s20 + $0x6f8] sm:$0xff]  }
  0xc1   : > { %3685 = vmatpush3.bf16.msra.mxu0 %v4076_v25  ;;  %v4144_v25 = vld [vmem:[%s4446_s20 + $0x638] sm:$0xff]  }
  0xc2   : > { %3686 = vmatprep.subr.bf16.mxu0 %v4079_v28  ;;  %v4147_v28 = vld [vmem:[%s4446_s20 + $0x670] sm:$0xff]  }
  0xc3   : > { %3707 = vmatpush3.bf16.msra.mxu1 %v4078_v27  ;;  %v4146_v27 = vld [vmem:[%s4446_s20 + $0x6b8] sm:$0xff]  }
  0xc4   : > { %3708 = vmatprep.subr.bf16.mxu1 %v4081_v30  ;;  %v4149_v30 = vld [vmem:[%s4446_s20 + $0x6f0] sm:$0xff]  }
  0xc5   : > { %3687 = vmatpush3.bf16.msra.mxu0 %v4080_v29  ;;  %v4148_v29 = vld [vmem:[%s4446_s20 + $0x630] sm:$0xff]  }
  0xc6   : > { %3688 = vmatprep.subr.bf16.mxu0 %v4083_v32  ;;  %v4151_v32 = vld [vmem:[%s4446_s20 + $0x668] sm:$0xff]  }
  0xc7   : > { %3709 = vmatpush3.bf16.msra.mxu1 %v4082_v31  ;;  %v4150_v31 = vld [vmem:[%s4446_s20 + $0x6b0] sm:$0xff]  }
  0xc8   : > { %3710 = vmatprep.subr.bf16.mxu1 %v4085_v34  ;;  %v4153_v34 = vld [vmem:[%s4446_s20 + $0x6e8] sm:$0xff]  }
  0xc9   : > { %3689 = vmatpush3.bf16.msra.mxu0 %v4084_v33  ;;  %v4152_v33 = vld [vmem:[%s4446_s20 + $0x628] sm:$0xff]  }
  0xca   : > { %3690 = vmatprep.subr.bf16.mxu0 %v4087_v36  ;;  %v4155_v36 = vld [vmem:[%s4446_s20 + $0x660] sm:$0xff]  }
  0xcb   : > { %3711 = vmatpush3.bf16.msra.mxu1 %v4086_v35  ;;  %v4154_v35 = vld [vmem:[%s4446_s20 + $0x6a8] sm:$0xff]  }
  0xcc   : > { %3712 = vmatprep.subr.bf16.mxu1 %v4089_v38  ;;  %v4157_v38 = vld [vmem:[%s4446_s20 + $0x6e0] sm:$0xff]  }
  0xcd   : > { %3691 = vmatpush3.bf16.msra.mxu0 %v4088_v37  ;;  %v4156_v37 = vld [vmem:[%s4446_s20 + $0x620] sm:$0xff]  }
  0xce   : > { %3692 = vmatprep.subr.bf16.mxu0 %v4091_v40  ;;  %v4159_v40 = vld [vmem:[%s4446_s20 + $0x658] sm:$0xff]  }
  0xcf   : > { %3713 = vmatpush3.bf16.msra.mxu1 %v4090_v39  ;;  %v4158_v39 = vld [vmem:[%s4446_s20 + $0x6a0] sm:$0xff]  }
  0xd0   : > { %3714 = vmatprep.subr.bf16.mxu1 %v4093_v42  ;;  %v4161_v42 = vld [vmem:[%s4446_s20 + $0x6d8] sm:$0xff]  }
  0xd1   : > { %3693 = vmatpush3.bf16.msra.mxu0 %v4092_v41  ;;  %v4160_v41 = vld [vmem:[%s4446_s20 + $0x618] sm:$0xff]  }
  0xd2   : > { %3694 = vmatprep.subr.bf16.mxu0 %v4095_v44  ;;  %v4163_v44 = vld [vmem:[%s4446_s20 + $0x650] sm:$0xff]  }
  0xd3   : > { %3715 = vmatpush3.bf16.msra.mxu1 %v4094_v43  ;;  %v4162_v43 = vld [vmem:[%s4446_s20 + $0x698] sm:$0xff]  }
  0xd4   : > { %3716 = vmatprep.subr.bf16.mxu1 %v4097_v46  ;;  %v4165_v46 = vld [vmem:[%s4446_s20 + $0x6d0] sm:$0xff]  }
  0xd5   : > { %3695 = vmatpush3.bf16.msra.mxu0 %v4096_v45  ;;  %v4164_v45 = vld [vmem:[%s4446_s20 + $0x610] sm:$0xff]  }
  0xd6   : > { %3724 = vmatprep.subr.bf16.mxu0 %v4102_v50  ;;  %v4169_v50 = vld [vmem:[%s4446_s20 + $0x6c8] sm:$0xff]  }
  0xd7   : > { %3717 = vmatpush3.bf16.msra.mxu1 %v4101_v49  ;;  %v4168_v49 = vld [vmem:[%s4446_s20 + $0x608] sm:$0xff]  }
  0xd8   : > { %2762 = vmatmul.mubr.bf16.vlgmr.msra.gmra.mxu0 %v4098_v47  ;;  %3746 = vmatprep.subr.bf16.mxu1 %v4107_v54  ;;  %v4166_v47 = vld [vmem:[%s4446_s20 + $0x690] sm:$0xff]   ;;  %v4173_v54 = vld [vmem:[%s4446_s20 + $0x6c0] sm:$0xff]  }
  0xd9   : > { %3725 = vmatpush3.bf16.msra.mxu0 %v4106_v53  ;;  %2843 = vmatprep.mubr.bf16.mxu0 %v4138_v20  ;;  %v4172_v53 = vld [vmem:[%s4446_s20 + $0x600] sm:$0xff]  }
  0xda   : > { %2803 = vmatmul.mubr.bf16.vlgmr.msra.gmra.mxu1 %v4103_v51  ;;  %3726 = vmatprep.subr.bf16.mxu0 %v4109_v56  ;;  %v4170_v51 = vld [vmem:[%s4446_s20 + $0x688] sm:$0xff]  }
  0xdb   : > { %3747 = vmatpush3.bf16.msra.mxu1 %v4108_v55  ;;  %2884 = vmatprep.mubr.bf16.mxu1 %v4143_v24  ;;  %v4174_v55 = vld [vmem:[%s4821_s0 + $0x60] ss:$124 sps:$4 sm:$0xff]  }
  0xdc   : > { %3748 = vmatprep.subr.bf16.mxu1 %v4111_v58  ;;  %v4176_v56 = vld [vmem:[%s4821_s0 + $0x64] ss:$124 sps:$4 sm:$0xff]   ;;  %v4178_v58 = vld [vmem:[%s4446_s20 + $0x778] sm:$0xff]  }
  0xdd   : > { %3727 = vmatpush3.bf16.msra.mxu0 %v4110_v57  ;;  %v4177_v57 = vld [vmem:[%s4446_s20 + $0x680] sm:$0xff]  }
  0xde   : > { %3728 = vmatprep.subr.bf16.mxu0 %v4113_v60  ;;  %v4181_v60 = vld [vmem:[%s4821_s0 + $0x6c] ss:$124 sps:$4 sm:$0xff]  }
  0xdf   : > { %3749 = vmatpush3.bf16.msra.mxu1 %v4112_v59  ;;  %v4179_v59 = vld [vmem:[%s4821_s0 + $0x68] ss:$124 sps:$4 sm:$0xff]  }
  0xe0   : > { %3750 = vmatprep.subr.bf16.mxu1 %v4115_v62  ;;  %v4321_v62 = vmov 0.0  }
  0xe1   : > { %3729 = vmatpush3.bf16.msra.mxu0 %v4114_v61  ;;  %v4182_v61 = vld [vmem:[%s4446_s20 + $0x738] sm:$0xff]  }
  0xe2   : > { %3730 = vmatprep.subr.bf16.mxu0 %v4117_v0  ;;  %v4184_v0 = vld [vmem:[%s4446_s20 + $0x730] sm:$0xff]  }
  0xe3   : > { %3751 = vmatpush3.bf16.msra.mxu1 %v4116_v63  ;;  %v4183_v63 = vld [vmem:[%s4446_s20 + $0x770] sm:$0xff]  }
  0xe4   : > { %3752 = vmatprep.subr.bf16.mxu1 %v4119_v2  ;;  %v4186_v2 = vld [vmem:[%s4446_s20 + $0x728] sm:$0xff]  }
  0xe5   : > { %3731 = vmatpush3.bf16.msra.mxu0 %v4118_v1  ;;  %v4185_v1 = vld [vmem:[%s4446_s20 + $0x768] sm:$0xff]  }
  0xe6   : > { %3732 = vmatprep.subr.bf16.mxu0 %v4121_v4  ;;  %v4188_v4 = vld [vmem:[%s4446_s20 + $0x720] sm:$0xff]  }
  0xe7   : > { %3753 = vmatpush3.bf16.msra.mxu1 %v4120_v3  ;;  %v4187_v3 = vld [vmem:[%s4446_s20 + $0x760] sm:$0xff]  }
  0xe8   : > { %3754 = vmatprep.subr.bf16.mxu1 %v4123_v6  ;;  %v4193_v6 = vld [vmem:[%s4446_s20 + $0x790] sm:$0xff]  }
  0xe9   : > { %3733 = vmatpush3.bf16.msra.mxu0 %v4122_v5  ;;  %v4189_v5 = vld [vmem:[%s4446_s20 + $0x758] sm:$0xff]  }
  0xea   : > { %3734 = vmatprep.subr.bf16.mxu0 %v4125_v8  ;;  %v4196_v8 = vld [vmem:[%s4446_s20 + $0x788] sm:$0xff]  }
  0xeb   : > { %3755 = vmatpush3.bf16.msra.mxu1 %v4124_v7  ;;  %v4190_v7 = vld [vmem:[%s4446_s20 + $0x718] sm:$0xff]  }
  0xec   : > { %3756 = vmatprep.subr.bf16.mxu1 %v4127_v10  ;;  %v4192_v10 = vld [vmem:[%s4446_s20 + $0x710] sm:$0xff]  }
  0xed   : > { %3735 = vmatpush3.bf16.msra.mxu0 %v4126_v9  ;;  %v4191_v9 = vld [vmem:[%s4446_s20 + $0x750] sm:$0xff]  }
  0xee   : > { %3736 = vmatprep.subr.bf16.mxu0 %v4129_v12  ;;  %v4194_v12 = vld [vmem:[%s4446_s20 + $0x748] sm:$0xff]  }
  0xef   : > { %3757 = vmatpush3.bf16.msra.mxu1 %v4128_v11  ;;  %v4199_v11 = vld [vmem:[%s4446_s20 + $0x780] sm:$0xff]  }
  0xf0   : > { %3758 = vmatprep.subr.bf16.mxu1 %v4131_v14  ;;  %v4203_v14 = vld [vmem:[%s4821_s0 + $0x78] ss:$124 sps:$4 sm:$0xff]  }
  0xf1   : > { %3737 = vmatpush3.bf16.msra.mxu0 %v4130_v13  ;;  %v4202_v13 = vld [vmem:[%s4821_s0 + $0x74] ss:$124 sps:$4 sm:$0xff]  }
  0xf2   : > { %3738 = vmatprep.subr.bf16.mxu0 %v4133_v16  ;;  %v4197_v16 = vld [vmem:[%s4446_s20 + $0x740] sm:$0xff]  }
  0xf3   : > { %3759 = vmatpush3.bf16.msra.mxu1 %v4132_v15  ;;  %v4195_v15 = vld [vmem:[%s4446_s20 + $0x708] sm:$0xff]  }
  0xf4   : > { %3760 = vmatprep.subr.bf16.mxu1 %v4135_v18  ;;  %v4200_v18 = vld [vmem:[%s4821_s0 + $0x70] ss:$124 sps:$4 sm:$0xff]  }
  0xf5   : > { %3739 = vmatpush3.bf16.msra.mxu0 %v4134_v17  ;;  %v4198_v17 = vld [vmem:[%s4446_s20 + $0x700] sm:$0xff]   ;;  %s3223_s20 = sshll.u32 %s4442_s26, 4 }
  0xf6   : > { %3768 = vmatprep.subr.bf16.mxu0 %v4140_v22 }
  0xf7   : > { %3761 = vmatpush3.bf16.msra.mxu1 %v4139_v21 }
  0xf8   : > { %2844 = vmatmul.mubr.bf16.vlgmr.msra.gmra.mxu0 %v4136_v19  ;;  %3790 = vmatprep.subr.bf16.mxu1 %v4145_v26 }
  0xf9   : > { %3769 = vmatpush3.bf16.msra.mxu0 %v4144_v25  ;;  %2925 = vmatprep.mubr.bf16.mxu0 %v4176_v56  ;;  %v3224_v56 = vld [vmem:[%s218_s21] ss:$0 sm:$0xff]  ;;  %s249_s21 = scalar_lea.vmem [#allocation6], %s3223_s20 }
  0xfa   : > { %2885 = vmatmul.mubr.bf16.vlgmr.msra.gmra.mxu1 %v4141_v23  ;;  %3770 = vmatprep.subr.bf16.mxu0 %v4147_v28 }
  0xfb   : > { %3791 = vmatpush3.bf16.msra.mxu1 %v4146_v27  ;;  %2966 = vmatprep.mubr.bf16.mxu1 %v4181_v60 }
  0xfc   : > { %3792 = vmatprep.subr.bf16.mxu1 %v4149_v30 }
  0xfd   : > { %3771 = vmatpush3.bf16.msra.mxu0 %v4148_v29 }
  0xfe   : > { %3772 = vmatprep.subr.bf16.mxu0 %v4151_v32 }
  0xff   : > { %3793 = vmatpush3.bf16.msra.mxu1 %v4150_v31 }
 0x100   : > { %3794 = vmatprep.subr.bf16.mxu1 %v4153_v34 }
 0x101   : > { %3773 = vmatpush3.bf16.msra.mxu0 %v4152_v33 }
 0x102   : > { %3774 = vmatprep.subr.bf16.mxu0 %v4155_v36 }
 0x103   : > { %3795 = vmatpush3.bf16.msra.mxu1 %v4154_v35 }
 0x104   : > { %3796 = vmatprep.subr.bf16.mxu1 %v4157_v38 }
 0x105   : > { %3775 = vmatpush3.bf16.msra.mxu0 %v4156_v37 }
 0x106   : > { %3776 = vmatprep.subr.bf16.mxu0 %v4159_v40 }
 0x107   : > { %3797 = vmatpush3.bf16.msra.mxu1 %v4158_v39 }
 0x108   : > { %3798 = vmatprep.subr.bf16.mxu1 %v4161_v42 }
 0x109   : > { %3777 = vmatpush3.bf16.msra.mxu0 %v4160_v41 }
 0x10a   : > { %3778 = vmatprep.subr.bf16.mxu0 %v4163_v44 }
 0x10b   : > { %3799 = vmatpush3.bf16.msra.mxu1 %v4162_v43 }
 0x10c   : > { %3800 = vmatprep.subr.bf16.mxu1 %v4165_v46 }
 0x10d   : > { %3779 = vmatpush3.bf16.msra.mxu0 %v4164_v45 }
 0x10e   : > { %3780 = vmatprep.subr.bf16.mxu0 %v4167_v48 }
 0x10f   : > { %3801 = vmatpush3.bf16.msra.mxu1 %v4166_v47 }
 0x110   : > { %3802 = vmatprep.subr.bf16.mxu1 %v4169_v50 }
 0x111   : > { %3781 = vmatpush3.bf16.msra.mxu0 %v4168_v49 }
 0x112   : > { %3782 = vmatprep.subr.bf16.mxu0 %v4171_v52 }
 0x113   : > { %3803 = vmatpush3.bf16.msra.mxu1 %v4170_v51 }
 0x114   : > { %3804 = vmatprep.subr.bf16.mxu1 %v4173_v54 }
 0x115   : > { %3783 = vmatpush3.bf16.msra.mxu0 %v4172_v53 }
 0x116   : > { %3812 = vmatprep.subr.bf16.mxu0 %v4178_v58 }
 0x117   : > { %3805 = vmatpush3.bf16.msra.mxu1 %v4177_v57 }
 0x118   : > { %2926 = vmatmul.mubr.bf16.vlgmr.msra.gmra.mxu0 %v4174_v55  ;;  %3838 = vmatprep.subr.bf16.mxu1 %v4321_v62  ;;  %v3520_v21 = vpop.f32.mrf.mxu0 }
 0x119   : > { %3813 = vmatpush3.bf16.msra.mxu0 %v4182_v61  ;;  %3007 = vmatprep.mubr.bf16.mxu0 %v4202_v13 }
 0x11a   : > { %2967 = vmatmul.mubr.bf16.vlgmr.msra.gmra.mxu1 %v4179_v59  ;;  %3814 = vmatprep.subr.bf16.mxu0 %v4183_v63  ;;  %v3542_v19 = vpop.f32.mrf.mxu1  ;;  %v3521_v23 = vpop.f32.mrf.mxu0 }
 0x11b   : > { %3844 = vmatprep.mubr.msk.bf16.mxu1 %vm4322_vm0, %v4321_v62  ;;  %3839 = vmatpush3.bf16.msra.mxu1 %v4193_v6  ;;  %v3522_v55 = vadd.f32 %v3521_v23, %v3520_v21 }
 0x11c   : > { %3840 = vmatprep.subr.bf16.mxu1 %v4321_v62  ;;  %v3543_v20 = vpop.f32.mrf.mxu1  ;;  %v3523_v26 = vpop.f32.mrf.mxu0 }
 0x11d   : > { %3815 = vmatpush3.bf16.msra.mxu0 %v4184_v0  ;;  %v2436_v59 = vadd.f32 %v3522_v55, %v3224_v56  ;;  %v3544_v60 = vadd.f32 %v3543_v20, %v3542_v19 }
 0x11e   : > { %3816 = vmatprep.subr.bf16.mxu0 %v4185_v1  ;;  %v3545_v22 = vpop.f32.mrf.mxu1  ;;  %v3524_v28 = vpop.f32.mrf.mxu0 }
 0x11f   : > { %3841 = vmatpush3.bf16.msra.mxu1 %v4196_v8  ;;  %v3525_v61 = vadd.f32 %v3524_v28, %v3523_v26  ;;  %v2477_v1 = vadd.f32 %v3544_v60, %v2436_v59 }
 0x120   : > { %3842 = vmatprep.subr.bf16.mxu1 %v4321_v62  ;;  %v3546_v24 = vpop.f32.mrf.mxu1 }
 0x121   : > { %3817 = vmatpush3.bf16.msra.mxu0 %v4186_v2  ;;  %v2439_v2 = vadd.f32 %v3525_v61, %v3224_v56 }
 0x122   : > { %3818 = vmatprep.subr.bf16.mxu0 %v4187_v3  ;;  %v3547_v3 = vadd.f32 %v3546_v24, %v3545_v22 }
 0x123   : > { %3843 = vmatpush3.bf16.msra.mxu1 %v4199_v11 }
 0x125   : > { %3819 = vmatpush3.bf16.msra.mxu0 %v4188_v4 }
 0x126   : > { %3820 = vmatprep.subr.bf16.mxu0 %v4189_v5  ;;  %3845 = vmatmul.mubr.msk.bf16.vlgmr.msra.gmra.mxu1 %vm2397_vm1, %v4203_v14 }
 0x129   : > { %3821 = vmatpush3.bf16.msra.mxu0 %v4190_v7 }
 0x12a   : > { %3822 = vmatprep.subr.bf16.mxu0 %v4191_v9 }
 0x12d   : > { %3823 = vmatpush3.bf16.msra.mxu0 %v4192_v10  ;;  %v2480_v10 = vadd.f32 %v3547_v3, %v2439_v2 }
 0x12e   : > { %3824 = vmatprep.subr.bf16.mxu0 %v4194_v12 }
 0x131   : > { %3825 = vmatpush3.bf16.msra.mxu0 %v4195_v15 }
 0x132   : > { %3826 = vmatprep.subr.bf16.mxu0 %v4197_v16 }
 0x135   : > { %3827 = vmatpush3.bf16.msra.mxu0 %v4198_v17 }
 0x138   : > { %3008 = vmatmul.mubr.bf16.vlgmr.msra.gmra.mxu0 %v4200_v18  ;;  %v3564_v29 = vpop.f32.mrf.mxu0 }
 0x13a   : > { %v3586_v25 = vpop.f32.mrf.mxu1  ;;  %v3565_v31 = vpop.f32.mrf.mxu0 }
 0x13b   : > { %v3566_v0 = vadd.f32 %v3565_v31, %v3564_v29 }
 0x13c   : > { %v3587_v27 = vpop.f32.mrf.mxu1  ;;  %v3567_v34 = vpop.f32.mrf.mxu0 }
 0x13d   : > { %v2518_v6 = vadd.f32 %v3566_v0, %v2477_v1  ;;  %v3588_v7 = vadd.f32 %v3587_v27, %v3586_v25 }
 0x13e   : > { %v3589_v30 = vpop.f32.mrf.mxu1  ;;  %v3568_v36 = vpop.f32.mrf.mxu0 }
 0x13f   : > { %v3569_v8 = vadd.f32 %v3568_v36, %v3567_v34  ;;  %v2559_v13 = vadd.f32 %v3588_v7, %v2518_v6 }
 0x140   : > { %v3590_v32 = vpop.f32.mrf.mxu1 }
 0x141   : > { %v2521_v14 = vadd.f32 %v3569_v8, %v2480_v10  ;;  %v3591_v15 = vadd.f32 %v3590_v32, %v3589_v30 }
 0x143   : > { %v2562_v21 = vadd.f32 %v3591_v15, %v2521_v14 }
 0x158   : > { %v3608_v37 = vpop.f32.mrf.mxu0 }
 0x15a   : > { %v3630_v33 = vpop.f32.mrf.mxu1  ;;  %v3609_v39 = vpop.f32.mrf.mxu0 }
 0x15b   : > { %v3610_v11 = vadd.f32 %v3609_v39, %v3608_v37 }
 0x15c   : > { %v3631_v35 = vpop.f32.mrf.mxu1  ;;  %v3611_v42 = vpop.f32.mrf.mxu0 }
 0x15d   : > { %v2600_v17 = vadd.f32 %v3610_v11, %v2559_v13  ;;  %v3632_v18 = vadd.f32 %v3631_v35, %v3630_v33 }
 0x15e   : > { %v3633_v38 = vpop.f32.mrf.mxu1  ;;  %v3612_v44 = vpop.f32.mrf.mxu0 }
 0x15f   : > { %v3613_v19 = vadd.f32 %v3612_v44, %v3611_v42  ;;  %v2641_v26 = vadd.f32 %v3632_v18, %v2600_v17 }
 0x160   : > { %v3634_v40 = vpop.f32.mrf.mxu1 }
 0x161   : > { %v2603_v28 = vadd.f32 %v3613_v19, %v2562_v21  ;;  %v3635_v25 = vadd.f32 %v3634_v40, %v3633_v38 }
 0x163   : > { %v2644_v37 = vadd.f32 %v3635_v25, %v2603_v28 }
 0x178   : > { %v3652_v45 = vpop.f32.mrf.mxu0 }
 0x17a   : > { %v3674_v41 = vpop.f32.mrf.mxu1  ;;  %v3653_v47 = vpop.f32.mrf.mxu0 }
 0x17b   : > { %v3654_v23 = vadd.f32 %v3653_v47, %v3652_v45 }
 0x17c   : > { %v3675_v43 = vpop.f32.mrf.mxu1  ;;  %v3655_v50 = vpop.f32.mrf.mxu0 }
 0x17d   : > { %v2682_v27 = vadd.f32 %v3654_v23, %v2641_v26  ;;  %v3676_v29 = vadd.f32 %v3675_v43, %v3674_v41 }
 0x17e   : > { %v3677_v46 = vpop.f32.mrf.mxu1  ;;  %v3656_v52 = vpop.f32.mrf.mxu0 }
 0x17f   : > { %v3657_v31 = vadd.f32 %v3656_v52, %v3655_v50  ;;  %v2723_v32 = vadd.f32 %v3676_v29, %v2682_v27 }
 0x180   : > { %v3678_v48 = vpop.f32.mrf.mxu1 }
 0x181   : > { %v2685_v55 = vadd.f32 %v3657_v31, %v2644_v37  ;;  %v3679_v33 = vadd.f32 %v3678_v48, %v3677_v46 }
 0x183   : > { %v2726_v56 = vadd.f32 %v3679_v33, %v2685_v55 }
 0x198   : > { %v3696_v53 = vpop.f32.mrf.mxu0 }
 0x19a   : > { %v3718_v49 = vpop.f32.mrf.mxu1  ;;  %v3697_v57 = vpop.f32.mrf.mxu0 }
 0x19b   : > { %v3698_v39 = vadd.f32 %v3697_v57, %v3696_v53 }
 0x19c   : > { %v3719_v51 = vpop.f32.mrf.mxu1  ;;  %v3699_v63 = vpop.f32.mrf.mxu0 }
 0x19d   : > { %v2764_v42 = vadd.f32 %v3698_v39, %v2723_v32  ;;  %v3720_v44 = vadd.f32 %v3719_v51, %v3718_v49 }
 0x19e   : > { %v3721_v54 = vpop.f32.mrf.mxu1  ;;  %v3700_v5 = vpop.f32.mrf.mxu0 }
 0x19f   : > { %v3701_v45 = vadd.f32 %v3700_v5, %v3699_v63  ;;  %v2805_v38 = vadd.f32 %v3720_v44, %v2764_v42 }
 0x1a0   : > { %v3722_v58 = vpop.f32.mrf.mxu1 }
 0x1a1   : > { %v2767_v40 = vadd.f32 %v3701_v45, %v2726_v56  ;;  %v3723_v41 = vadd.f32 %v3722_v58, %v3721_v54 }
 0x1a3   : > { %v2808_v0 = vadd.f32 %v3723_v41, %v2767_v40 }
 0x1b8   : > { %v3740_v9 = vpop.f32.mrf.mxu0 }
 0x1ba   : > { %v3762_v62 = vpop.f32.mrf.mxu1  ;;  %v3741_v16 = vpop.f32.mrf.mxu0 }
 0x1bb   : > { %v3742_v59 = vadd.f32 %v3741_v16, %v3740_v9 }
 0x1bc   : > { %v3763_v4 = vpop.f32.mrf.mxu1  ;;  %v3743_v24 = vpop.f32.mrf.mxu0 }
 0x1bd   : > { %v2846_v52 = vadd.f32 %v3742_v59, %v2805_v38  ;;  %v3764_v61 = vadd.f32 %v3763_v4, %v3762_v62 }
 0x1be   : > { %v3765_v12 = vpop.f32.mrf.mxu1  ;;  %v3744_v36 = vpop.f32.mrf.mxu0 }
 0x1bf   : > { %v3745_v53 = vadd.f32 %v3744_v36, %v3743_v24  ;;  %v2887_v49 = vadd.f32 %v3764_v61, %v2846_v52 }
 0x1c0   : > { %v3766_v20 = vpop.f32.mrf.mxu1 }
 0x1c1   : > { %v2849_v51 = vadd.f32 %v3745_v53, %v2808_v0  ;;  %v3767_v63 = vadd.f32 %v3766_v20, %v3765_v12 }
 0x1c3   : > { %v2890_v54 = vadd.f32 %v3767_v63, %v2849_v51 }
 0x1d8   : > { %v3784_v30 = vpop.f32.mrf.mxu0 }
 0x1da   : > { %v3806_v22 = vpop.f32.mrf.mxu1  ;;  %v3785_v47 = vpop.f32.mrf.mxu0 }
 0x1db   : > { %v3786_v1 = vadd.f32 %v3785_v47, %v3784_v30 }
 0x1dc   : > { %v3807_v34 = vpop.f32.mrf.mxu1  ;;  %v3787_v50 = vpop.f32.mrf.mxu0 }
 0x1dd   : > { %v2928_v3 = vadd.f32 %v3786_v1, %v2887_v49  ;;  %v3808_v5 = vadd.f32 %v3807_v34, %v3806_v22 }
 0x1de   : > { %v3809_v35 = vpop.f32.mrf.mxu1  ;;  %v3788_v48 = vpop.f32.mrf.mxu0 }
 0x1df   : > { %v3789_v6 = vadd.f32 %v3788_v48, %v3787_v50  ;;  %v2969_v8 = vadd.f32 %v3808_v5, %v2928_v3 }
 0x1e0   : > { %v3810_v60 = vpop.f32.mrf.mxu1 }
 0x1e1   : > { %v2931_v9 = vadd.f32 %v3789_v6, %v2890_v54  ;;  %v3811_v62 = vadd.f32 %v3810_v60, %v3809_v35 }
 0x1e3   : > { %v2972_v14 = vadd.f32 %v3811_v62, %v2931_v9 }
 0x1e6   : > { %v3050_v43 = vpop.f32.mrf.mxu1 }
 0x1e8   : > { %v3846_v57 = vpop.f32.mrf.mxu1 }
 0x1ea   : > { %v3053_v46 = vpop.f32.mrf.mxu1 }
 0x1ec   : > { %v3847_v2 = vpop.f32.mrf.mxu1 }
 0x1f8   : > { %v3828_v7 = vpop.f32.mrf.mxu0 }
 0x1fa   : > { %v3829_v58 = vpop.f32.mrf.mxu0 }
 0x1fb   : > { %v3830_v4 = vadd.f32 %v3829_v58, %v3828_v7 }
 0x1fc   : > { %v3831_v10 = vpop.f32.mrf.mxu0 }
 0x1fd   : > { %v3010_v11 = vadd.f32 %v3830_v4, %v2969_v8 }
 0x1fe   : > { %v3832_v13 = vpop.f32.mrf.mxu0 }
 0x1ff   : > { %v3051_v15 = vadd.f32 %v3050_v43, %v3010_v11  ;;  %v3833_v16 = vadd.f32 %v3832_v13, %v3831_v10 }
 0x201   : > { %3057 = vst [vmem:[%s249_s21] sm:$0xff] %v3051_v15  ;;  %v3013_v12 = vadd.f32 %v3833_v16, %v2972_v14  ;;  %3065 = sbr.rel (!%p4393_p9) target bundleno = 526 (0x20e), region = 44 }
 0x203   : > { %v3054_v17 = vadd.f32 %v3053_v46, %v3013_v12 }
 0x205   : > { %3058 = vst [vmem:[%s249_s21 + $0x8] sm:$0xff] %v3054_v17 }
 0x208   : > { %v3101_v18 = vld [vmem:[%s249_s21] sm:$0xff] }
 0x209   : > { %3102 = vst [vmem:[%s3070_s23] sm:$0xff] %v3101_v18 }
 0x20c   : > { %v3103_v19 = vld [vmem:[%s249_s21 + $0x8] sm:$0xff] }
 0x20d   : > { %3104 = vst [vmem:[%s3070_s23 + $0x38] sm:$0xff] %v3103_v19 }
 0x20e PF: > { %s19_s17 = sadd.s32 1, %s4314_s17   ;;  %s4830_s12 = smov %s4298_s13 }
 0x20f   : > { %p16_p8 = scmp.ge.s32.totalorder %s19_s17, 9   ;;  %s4831_s13 = smov %s4302_s14 }
 0x210   : > { %s4832_s14 = smov %s4391_s24  ;;  %s4833_s15 = smov %s4310_s16 }
 0x211   : > { %s4834_s16 = smov %s4836_s19  ;;  %18 = sbr.rel (!%p16_p8) target bundleno = 6 (0x6), region = 126 }
 0x216   :  { %3120 = vsyncpa [#allocation3], 1 }
 0x217   :  { %3122 = vsyncpa [#allocation3 + $0x1], 1 }
 0x218   :  { %3123 = vsyncpa [#allocation5], 1 }
 0x219   :  { %3125 = vsyncpa [#allocation5 + $0x1], 1 }

// kernel: rnn_forward.3
= control target key start
LH: loop header
LB: loop body
LE: loop exit
PB: predicated region body
PF: predicated region fallthrough
CT: control target
= control target key end

     0   :  { %v5621_v3 = vmov 0   ;;  %vm3526_vm0 = vmmov 0   ;;  %s5614_s1 = inlined_call_operand.vmem [shape: bf16[256,1024], index: 1, kind: input, shape index: {}]   ;;  %s5615_s0 = inlined_call_operand.vmem [shape: f32[8,8,1024], index: 0, kind: input, shape index: {}]   ;;  %s5616_s2 = inlined_call_operand.vmem [shape: bf16[256,128], index: 2, kind: input, shape index: {}]   ;;  %s5617_s4 = inlined_call_operand.vmem [shape: bf16[128,128], index: 4, kind: input, shape index: {}]   ;;  %s5618_s3 = inlined_call_operand.vmem [shape: f32[1,128], index: 3, kind: input, shape index: {}]   ;;  %s5619_s5 = inlined_call_operand.vmem [shape: f32[1,128], index: 5, kind: input, shape index: {}]   ;;  %s5620_s6 = inlined_call_operand.vmem [shape: f32[8,128], index: 6, kind: output, shape index: {}]  }
   0x1   :  { %v88_v0 = vld [vmem:[%s5614_s1 + $0x1c0] sm:$0xff]  ;;  %v89_v2 = vld [vmem:[%s5614_s1 + $0x1c8] sm:$0xff]  ;;  %832 = vmatprep.mubr.bf16.mxu0 %v5621_v3  ;;  %873 = vmatprep.mubr.bf16.mxu1 %v5621_v3 }
   0x2   :  { %v92_v1 = vld [vmem:[%s5614_s1 + $0x1e0] sm:$0xff]  ;;  %v93_v5 = vld [vmem:[%s5614_s1 + $0x1e8] sm:$0xff] }
   0x3   :  { %v3573_v4 = vcombine.high %v88_v0, %v92_v1  ;;  %v3578_v6 = vcombine.low %v88_v0, %v92_v1  ;;  %v80_v7 = vld [vmem:[%s5614_s1 + $0x180] sm:$0xff]  ;;  %v3586_v9 = vcombine.high %v89_v2, %v93_v5  ;;  %v3588_v10 = vcombine.low %v89_v2, %v93_v5  ;;  %v81_v12 = vld [vmem:[%s5614_s1 + $0x188] sm:$0xff] }
   0x4   :  { %v84_v8 = vld [vmem:[%s5614_s1 + $0x1a0] sm:$0xff]  ;;  %v85_v13 = vld [vmem:[%s5614_s1 + $0x1a8] sm:$0xff] }
   0x5   :  { %5891 = vst [vmem:[#allocation2_spill] sm:$0xff] %v3573_v4  ;;  %5892 = vst [vmem:[#allocation3_spill] sm:$0xff] %v3578_v6  ;;  %v3590_v11 = vcombine.high %v80_v7, %v84_v8  ;;  %v72_v14 = vld [vmem:[%s5614_s1 + $0x140] sm:$0xff]  ;;  %800 = vmatprep.subr.bf16.mxu0 %v3573_v4  ;;  %v3602_v15 = vcombine.high %v81_v12, %v85_v13  ;;  %v73_v17 = vld [vmem:[%s5614_s1 + $0x148] sm:$0xff]  ;;  %841 = vmatprep.subr.bf16.mxu1 %v3586_v9 }
   0x6   :  { %5893 = vst [vmem:[#allocation4_spill] sm:$0xff] %v3586_v9  ;;  %5894 = vst [vmem:[#allocation5_spill] sm:$0xff] %v3588_v10  ;;  %v76_v16 = vld [vmem:[%s5614_s1 + $0x160] sm:$0xff]  ;;  %v77_v18 = vld [vmem:[%s5614_s1 + $0x168] sm:$0xff]  ;;  %801 = vmatpush1.bf16.msra.mxu0 %v3578_v6  ;;  %v3615_v19 = vcombine.low %v80_v7, %v84_v8  ;;  %842 = vmatpush1.bf16.msra.mxu1 %v3588_v10  ;;  %v3619_v20 = vcombine.low %v81_v12, %v85_v13 }
   0x7   :  { %5895 = vst [vmem:[#allocation6_spill] sm:$0xff] %v3590_v11  ;;  %5896 = vst [vmem:[#allocation7_spill] sm:$0xff] %v3602_v15  ;;  %802 = vmatprep.subr.bf16.mxu0 %v3590_v11  ;;  %v3621_v21 = vcombine.high %v72_v14, %v76_v16  ;;  %843 = vmatprep.subr.bf16.mxu1 %v3602_v15  ;;  %v3624_v22 = vcombine.high %v73_v17, %v77_v18  ;;  %v64_v23 = vld [vmem:[%s5614_s1 + $0x100] sm:$0xff]  ;;  %v65_v25 = vld [vmem:[%s5614_s1 + $0x108] sm:$0xff] }
   0x8   :  { %5897 = vst [vmem:[#allocation8_spill] sm:$0xff] %v3615_v19  ;;  %5898 = vst [vmem:[#allocation9_spill] sm:$0xff] %v3619_v20  ;;  %v68_v24 = vld [vmem:[%s5614_s1 + $0x120] sm:$0xff]  ;;  %v69_v26 = vld [vmem:[%s5614_s1 + $0x128] sm:$0xff]  ;;  %v3639_v27 = vcombine.low %v72_v14, %v76_v16  ;;  %v3643_v28 = vcombine.low %v73_v17, %v77_v18 }
   0x9   :  { %5899 = vst [vmem:[#allocation10_spill] sm:$0xff] %v3621_v21  ;;  %5900 = vst [vmem:[#allocation11_spill] sm:$0xff] %v3624_v22  ;;  %v3645_v29 = vcombine.high %v64_v23, %v68_v24  ;;  %v3648_v30 = vcombine.high %v65_v25, %v69_v26  ;;  %v56_v31 = vld [vmem:[%s5614_s1 + $0xc0] sm:$0xff]  ;;  %v57_v33 = vld [vmem:[%s5614_s1 + $0xc8] sm:$0xff]  ;;  %v3663_v35 = vcombine.low %v64_v23, %v68_v24 }
   0xa   :  { %803 = vmatpush1.bf16.msra.mxu0 %v3615_v19  ;;  %5901 = vst [vmem:[#allocation12_spill] sm:$0xff] %v3639_v27  ;;  %844 = vmatpush1.bf16.msra.mxu1 %v3619_v20  ;;  %5902 = vst [vmem:[#allocation13_spill] sm:$0xff] %v3643_v28  ;;  %v60_v32 = vld [vmem:[%s5614_s1 + $0xe0] sm:$0xff]  ;;  %v61_v34 = vld [vmem:[%s5614_s1 + $0xe8] sm:$0xff]  ;;  %v3667_v36 = vcombine.low %v65_v25, %v69_v26 }
   0xb   :  { %804 = vmatprep.subr.bf16.mxu0 %v3621_v21  ;;  %5903 = vst [vmem:[#allocation14_spill] sm:$0xff] %v3645_v29  ;;  %845 = vmatprep.subr.bf16.mxu1 %v3624_v22  ;;  %5904 = vst [vmem:[#allocation15_spill] sm:$0xff] %v3648_v30  ;;  %v3669_v37 = vcombine.high %v56_v31, %v60_v32  ;;  %v3672_v38 = vcombine.high %v57_v33, %v61_v34  ;;  %v48_v39 = vld [vmem:[%s5614_s1 + $0x80] sm:$0xff]  ;;  %v49_v41 = vld [vmem:[%s5614_s1 + $0x88] sm:$0xff] }
   0xc   :  { %5905 = vst [vmem:[#allocation16_spill] sm:$0xff] %v3663_v35  ;;  %5906 = vst [vmem:[#allocation17_spill] sm:$0xff] %v3667_v36  ;;  %v52_v40 = vld [vmem:[%s5614_s1 + $0xa0] sm:$0xff]  ;;  %v53_v42 = vld [vmem:[%s5614_s1 + $0xa8] sm:$0xff]  ;;  %v3687_v43 = vcombine.low %v56_v31, %v60_v32  ;;  %v3691_v44 = vcombine.low %v57_v33, %v61_v34 }
   0xd   :  { %5907 = vst [vmem:[#allocation18_spill] sm:$0xff] %v3669_v37  ;;  %5908 = vst [vmem:[#allocation19_spill] sm:$0xff] %v3672_v38  ;;  %v3693_v45 = vcombine.high %v48_v39, %v52_v40  ;;  %v3696_v46 = vcombine.high %v49_v41, %v53_v42  ;;  %v40_v47 = vld [vmem:[%s5614_s1 + $0x40] sm:$0xff]  ;;  %v41_v49 = vld [vmem:[%s5614_s1 + $0x48] sm:$0xff]  ;;  %v3711_v51 = vcombine.low %v48_v39, %v52_v40 }
   0xe   :  { %805 = vmatpush1.bf16.msra.mxu0 %v3639_v27  ;;  %846 = vmatpush1.bf16.msra.mxu1 %v3643_v28  ;;  %5909 = vst [vmem:[#allocation20_spill] sm:$0xff] %v3687_v43  ;;  %5910 = vst [vmem:[#allocation21_spill] sm:$0xff] %v3691_v44  ;;  %v44_v48 = vld [vmem:[%s5614_s1 + $0x60] sm:$0xff]  ;;  %v45_v50 = vld [vmem:[%s5614_s1 + $0x68] sm:$0xff]  ;;  %v3715_v52 = vcombine.low %v49_v41, %v53_v42 }
   0xf   :  { %806 = vmatprep.subr.bf16.mxu0 %v3645_v29  ;;  %847 = vmatprep.subr.bf16.mxu1 %v3648_v30  ;;  %5911 = vst [vmem:[#allocation22_spill] sm:$0xff] %v3693_v45  ;;  %5912 = vst [vmem:[#allocation23_spill] sm:$0xff] %v3696_v46  ;;  %v3717_v53 = vcombine.high %v40_v47, %v44_v48  ;;  %v3720_v54 = vcombine.high %v41_v49, %v45_v50  ;;  %v32_v55 = vld [vmem:[%s5614_s1] sm:$0xff]  ;;  %v33_v57 = vld [vmem:[%s5614_s1 + $0x8] sm:$0xff] }
  0x10   :  { %5913 = vst [vmem:[#allocation24_spill] sm:$0xff] %v3711_v51  ;;  %5914 = vst [vmem:[#allocation25_spill] sm:$0xff] %v3715_v52  ;;  %v36_v56 = vld [vmem:[%s5614_s1 + $0x20] sm:$0xff]  ;;  %v37_v58 = vld [vmem:[%s5614_s1 + $0x28] sm:$0xff]  ;;  %v3735_v59 = vcombine.low %v40_v47, %v44_v48  ;;  %v3739_v60 = vcombine.low %v41_v49, %v45_v50 }
  0x11   :  { %5915 = vst [vmem:[#allocation26_spill] sm:$0xff] %v3717_v53  ;;  %5916 = vst [vmem:[#allocation27_spill] sm:$0xff] %v3720_v54  ;;  %v3741_v61 = vcombine.high %v32_v55, %v36_v56  ;;  %v3744_v62 = vcombine.high %v33_v57, %v37_v58  ;;  %v152_v63 = vld [vmem:[%s5614_s1 + $0x3c0] sm:$0xff]  ;;  %v153_v1 = vld [vmem:[%s5614_s1 + $0x3c8] sm:$0xff]  ;;  %v3759_v5 = vcombine.low %v32_v55, %v36_v56 }
  0x12   :  { %807 = vmatpush1.bf16.msra.mxu0 %v3663_v35  ;;  %848 = vmatpush1.bf16.msra.mxu1 %v3667_v36  ;;  %5917 = vst [vmem:[#allocation28_spill] sm:$0xff] %v3735_v59  ;;  %5918 = vst [vmem:[#allocation29_spill] sm:$0xff] %v3739_v60  ;;  %v156_v0 = vld [vmem:[%s5614_s1 + $0x3e0] sm:$0xff]  ;;  %v157_v2 = vld [vmem:[%s5614_s1 + $0x3e8] sm:$0xff]  ;;  %v3763_v7 = vcombine.low %v33_v57, %v37_v58 }
  0x13   :  { %808 = vmatprep.subr.bf16.mxu0 %v3669_v37  ;;  %849 = vmatprep.subr.bf16.mxu1 %v3672_v38  ;;  %5919 = vst [vmem:[#allocation30_spill] sm:$0xff] %v3741_v61  ;;  %5920 = vst [vmem:[#allocation31_spill] sm:$0xff] %v3744_v62  ;;  %v3765_v8 = vcombine.high %v152_v63, %v156_v0  ;;  %v3768_v12 = vcombine.high %v153_v1, %v157_v2  ;;  %v144_v13 = vld [vmem:[%s5614_s1 + $0x380] sm:$0xff]  ;;  %v145_v16 = vld [vmem:[%s5614_s1 + $0x388] sm:$0xff] }
  0x14   :  { %5921 = vst [vmem:[#allocation32_spill] sm:$0xff] %v3759_v5  ;;  %5922 = vst [vmem:[#allocation33_spill] sm:$0xff] %v3763_v7  ;;  %v148_v14 = vld [vmem:[%s5614_s1 + $0x3a0] sm:$0xff]  ;;  %v149_v17 = vld [vmem:[%s5614_s1 + $0x3a8] sm:$0xff]  ;;  %v3783_v18 = vcombine.low %v152_v63, %v156_v0  ;;  %v3787_v23 = vcombine.low %v153_v1, %v157_v2 }
  0x15   :  { %5923 = vst [vmem:[#allocation34_spill] sm:$0xff] %v3765_v8  ;;  %5924 = vst [vmem:[#allocation35_spill] sm:$0xff] %v3768_v12  ;;  %v3789_v24 = vcombine.high %v144_v13, %v148_v14  ;;  %v3792_v25 = vcombine.high %v145_v16, %v149_v17  ;;  %v136_v26 = vld [vmem:[%s5614_s1 + $0x340] sm:$0xff]  ;;  %v137_v32 = vld [vmem:[%s5614_s1 + $0x348] sm:$0xff]  ;;  %v3807_v34 = vcombine.low %v144_v13, %v148_v14 }
  0x16   :  { %809 = vmatpush1.bf16.msra.mxu0 %v3687_v43  ;;  %850 = vmatpush1.bf16.msra.mxu1 %v3691_v44  ;;  %5925 = vst [vmem:[#allocation36_spill] sm:$0xff] %v3783_v18  ;;  %5926 = vst [vmem:[#allocation37_spill] sm:$0xff] %v3787_v23  ;;  %v140_v31 = vld [vmem:[%s5614_s1 + $0x360] sm:$0xff]  ;;  %v141_v33 = vld [vmem:[%s5614_s1 + $0x368] sm:$0xff]  ;;  %v3811_v39 = vcombine.low %v145_v16, %v149_v17 }
  0x17   :  { %810 = vmatprep.subr.bf16.mxu0 %v3693_v45  ;;  %851 = vmatprep.subr.bf16.mxu1 %v3696_v46  ;;  %5927 = vst [vmem:[#allocation38_spill] sm:$0xff] %v3789_v24  ;;  %5928 = vst [vmem:[#allocation39_spill] sm:$0xff] %v3792_v25  ;;  %v3813_v40 = vcombine.high %v136_v26, %v140_v31  ;;  %v3816_v41 = vcombine.high %v137_v32, %v141_v33  ;;  %v128_v42 = vld [vmem:[%s5614_s1 + $0x300] sm:$0xff]  ;;  %v129_v48 = vld [vmem:[%s5614_s1 + $0x308] sm:$0xff] }
  0x18   :  { %5929 = vst [vmem:[#allocation40_spill] sm:$0xff] %v3807_v34  ;;  %5930 = vst [vmem:[#allocation41_spill] sm:$0xff] %v3811_v39  ;;  %v132_v47 = vld [vmem:[%s5614_s1 + $0x320] sm:$0xff]  ;;  %v133_v49 = vld [vmem:[%s5614_s1 + $0x328] sm:$0xff]  ;;  %v3831_v50 = vcombine.low %v136_v26, %v140_v31  ;;  %v3835_v55 = vcombine.low %v137_v32, %v141_v33 }
  0x19   :  { %5931 = vst [vmem:[#allocation42_spill] sm:$0xff] %v3813_v40  ;;  %5932 = vst [vmem:[#allocation43_spill] sm:$0xff] %v3816_v41  ;;  %v3837_v56 = vcombine.high %v128_v42, %v132_v47  ;;  %v3840_v57 = vcombine.high %v129_v48, %v133_v49  ;;  %v120_v58 = vld [vmem:[%s5614_s1 + $0x2c0] sm:$0xff]  ;;  %v121_v0 = vld [vmem:[%s5614_s1 + $0x2c8] sm:$0xff]  ;;  %v3855_v2 = vcombine.low %v128_v42, %v132_v47 }
  0x1a   :  { %811 = vmatpush1.bf16.msra.mxu0 %v3711_v51  ;;  %852 = vmatpush1.bf16.msra.mxu1 %v3715_v52  ;;  %5933 = vst [vmem:[#allocation44_spill] sm:$0xff] %v3831_v50  ;;  %5934 = vst [vmem:[#allocation45_spill] sm:$0xff] %v3835_v55  ;;  %v124_v63 = vld [vmem:[%s5614_s1 + $0x2e0] sm:$0xff]  ;;  %v125_v1 = vld [vmem:[%s5614_s1 + $0x2e8] sm:$0xff]  ;;  %v3859_v13 = vcombine.low %v129_v48, %v133_v49 }
  0x1b   :  { %812 = vmatprep.subr.bf16.mxu0 %v3717_v53  ;;  %853 = vmatprep.subr.bf16.mxu1 %v3720_v54  ;;  %5935 = vst [vmem:[#allocation46_spill] sm:$0xff] %v3837_v56  ;;  %5936 = vst [vmem:[#allocation47_spill] sm:$0xff] %v3840_v57  ;;  %v3861_v14 = vcombine.high %v120_v58, %v124_v63  ;;  %v3864_v16 = vcombine.high %v121_v0, %v125_v1  ;;  %v112_v17 = vld [vmem:[%s5614_s1 + $0x280] sm:$0xff]  ;;  %v113_v31 = vld [vmem:[%s5614_s1 + $0x288] sm:$0xff] }
  0x1c   :  { %5937 = vst [vmem:[#allocation48_spill] sm:$0xff] %v3855_v2  ;;  %5938 = vst [vmem:[#allocation49_spill] sm:$0xff] %v3859_v13  ;;  %v116_v26 = vld [vmem:[%s5614_s1 + $0x2a0] sm:$0xff]  ;;  %v117_v32 = vld [vmem:[%s5614_s1 + $0x2a8] sm:$0xff]  ;;  %v3879_v33 = vcombine.low %v120_v58, %v124_v63  ;;  %v3883_v42 = vcombine.low %v121_v0, %v125_v1 }
  0x1d   :  { %5939 = vst [vmem:[#allocation50_spill] sm:$0xff] %v3861_v14  ;;  %5940 = vst [vmem:[#allocation51_spill] sm:$0xff] %v3864_v16  ;;  %v3885_v47 = vcombine.high %v112_v17, %v116_v26  ;;  %v3888_v48 = vcombine.high %v113_v31, %v117_v32  ;;  %v104_v49 = vld [vmem:[%s5614_s1 + $0x240] sm:$0xff]  ;;  %v105_v63 = vld [vmem:[%s5614_s1 + $0x248] sm:$0xff]  ;;  %v3903_v1 = vcombine.low %v112_v17, %v116_v26 }
  0x1e   :  { %813 = vmatpush1.bf16.msra.mxu0 %v3735_v59  ;;  %854 = vmatpush1.bf16.msra.mxu1 %v3739_v60  ;;  %5941 = vst [vmem:[#allocation52_spill] sm:$0xff] %v3879_v33  ;;  %5942 = vst [vmem:[#allocation53_spill] sm:$0xff] %v3883_v42  ;;  %v108_v58 = vld [vmem:[%s5614_s1 + $0x260] sm:$0xff]  ;;  %v109_v0 = vld [vmem:[%s5614_s1 + $0x268] sm:$0xff]  ;;  %v3907_v3 = vcombine.low %v113_v31, %v117_v32 }
  0x1f   :  { %814 = vmatprep.subr.bf16.mxu0 %v3741_v61  ;;  %855 = vmatprep.subr.bf16.mxu1 %v3744_v62  ;;  %5943 = vst [vmem:[#allocation54_spill] sm:$0xff] %v3885_v47  ;;  %5944 = vst [vmem:[#allocation55_spill] sm:$0xff] %v3888_v48  ;;  %v100_v17 = vld [vmem:[%s5614_s1 + $0x220] sm:$0xff]  ;;  %v97_v26 = vld [vmem:[%s5614_s1 + $0x208] sm:$0xff]  ;;  %v3927_v32 = vcombine.low %v104_v49, %v108_v58 }
  0x20   :  { %5945 = vst [vmem:[#allocation56_spill] sm:$0xff] %v3903_v1  ;;  %5946 = vst [vmem:[#allocation57_spill] sm:$0xff] %v3907_v3  ;;  %v101_v31 = vld [vmem:[%s5614_s1 + $0x228] sm:$0xff] }
  0x21   :  { %5949 = vst [vmem:[#allocation60_spill] sm:$0xff] %v3927_v32 }
  0x22   :  { %815 = vmatpush1.bf16.msra.mxu0 %v3759_v5  ;;  %856 = vmatpush1.bf16.msra.mxu1 %v3763_v7 }
  0x23   :  { %816 = vmatprep.subr.bf16.mxu0 %v3765_v8  ;;  %857 = vmatprep.subr.bf16.mxu1 %v3768_v12 }
  0x26   :  { %817 = vmatpush2.bf16.msra.mxu0 %v3783_v18  ;;  %858 = vmatpush2.bf16.msra.mxu1 %v3787_v23 }
  0x27   :  { %818 = vmatprep.subr.bf16.mxu0 %v3789_v24  ;;  %859 = vmatprep.subr.bf16.mxu1 %v3792_v25 }
  0x2a   :  { %819 = vmatpush2.bf16.msra.mxu0 %v3807_v34  ;;  %860 = vmatpush2.bf16.msra.mxu1 %v3811_v39 }
  0x2b   :  { %820 = vmatprep.subr.bf16.mxu0 %v3813_v40  ;;  %861 = vmatprep.subr.bf16.mxu1 %v3816_v41 }
  0x2e   :  { %821 = vmatpush2.bf16.msra.mxu0 %v3831_v50  ;;  %862 = vmatpush2.bf16.msra.mxu1 %v3835_v55 }
  0x2f   :  { %822 = vmatprep.subr.bf16.mxu0 %v3837_v56  ;;  %863 = vmatprep.subr.bf16.mxu1 %v3840_v57 }
  0x32   :  { %823 = vmatpush2.bf16.msra.mxu0 %v3855_v2  ;;  %864 = vmatpush2.bf16.msra.mxu1 %v3859_v13  ;;  %v96_v13 = vld [vmem:[%s5614_s1 + $0x200] sm:$0xff]  ;;  %v66_v2 = vld [vmem:[%s5614_s1 + $0x110] sm:$0xff] }
  0x33   :  { %824 = vmatprep.subr.bf16.mxu0 %v3861_v14  ;;  %865 = vmatprep.subr.bf16.mxu1 %v3864_v16  ;;  %v3909_v16 = vcombine.high %v104_v49, %v108_v58  ;;  %v3912_v14 = vcombine.high %v105_v63, %v109_v0  ;;  %v94_v49 = vld [vmem:[%s5614_s1 + $0x1f0] sm:$0xff]  ;;  %v91_v58 = vld [vmem:[%s5614_s1 + $0x1d8] sm:$0xff] }
  0x35   :  { %5947 = vst [vmem:[#allocation58_spill] sm:$0xff] %v3909_v16  ;;  %5948 = vst [vmem:[#allocation59_spill] sm:$0xff] %v3912_v14 }
  0x36   :  { %825 = vmatpush2.bf16.msra.mxu0 %v3879_v33  ;;  %866 = vmatpush2.bf16.msra.mxu1 %v3883_v42  ;;  %v3936_v42 = vcombine.high %v97_v26, %v101_v31  ;;  %v90_v33 = vld [vmem:[%s5614_s1 + $0x1d0] sm:$0xff] }
  0x37   :  { %826 = vmatprep.subr.bf16.mxu0 %v3885_v47  ;;  %867 = vmatprep.subr.bf16.mxu1 %v3888_v48  ;;  %v3931_v48 = vcombine.low %v105_v63, %v109_v0  ;;  %v3933_v47 = vcombine.high %v96_v13, %v100_v17  ;;  %v95_v63 = vld [vmem:[%s5614_s1 + $0x1f8] sm:$0xff]  ;;  %v3951_v0 = vcombine.low %v96_v13, %v100_v17  ;;  %v86_v13 = vld [vmem:[%s5614_s1 + $0x1b0] sm:$0xff] }
  0x38   :  { %5952 = vst [vmem:[#allocation63_spill] sm:$0xff] %v3936_v42  ;;  %v83_v17 = vld [vmem:[%s5614_s1 + $0x198] sm:$0xff] }
  0x39   :  { %5950 = vst [vmem:[#allocation61_spill] sm:$0xff] %v3931_v48  ;;  %5951 = vst [vmem:[#allocation62_spill] sm:$0xff] %v3933_v47 }
  0x3a   :  { %827 = vmatpush2.bf16.msra.mxu0 %v3903_v1  ;;  %868 = vmatpush2.bf16.msra.mxu1 %v3907_v3  ;;  %5953 = vst [vmem:[#allocation64_spill] sm:$0xff] %v3951_v0  ;;  %v3960_v3 = vcombine.high %v91_v58, %v95_v63  ;;  %v82_v1 = vld [vmem:[%s5614_s1 + $0x190] sm:$0xff] }
  0x3b   :  { %828 = vmatprep.subr.bf16.mxu0 %v3909_v16  ;;  %869 = vmatprep.subr.bf16.mxu1 %v3912_v14  ;;  %v3955_v14 = vcombine.low %v97_v26, %v101_v31  ;;  %v3957_v16 = vcombine.high %v90_v33, %v94_v49  ;;  %v87_v26 = vld [vmem:[%s5614_s1 + $0x1b8] sm:$0xff]  ;;  %v3975_v31 = vcombine.low %v90_v33, %v94_v49  ;;  %v78_v33 = vld [vmem:[%s5614_s1 + $0x170] sm:$0xff]  ;;  %v5961_v49 = vmov 0  }
  0x3c   :  { %5956 = vst [vmem:[#allocation67_spill] sm:$0xff] %v3960_v3 }
  0x3d   :  { %5954 = vst [vmem:[#allocation65_spill] sm:$0xff] %v3955_v14  ;;  %5955 = vst [vmem:[#allocation66_spill] sm:$0xff] %v3957_v16 }
  0x3e   :  { %829 = vmatpush2.bf16.msra.mxu0 %v3927_v32  ;;  %870 = vmatpush2.bf16.msra.mxu1 %v3931_v48  ;;  %5957 = vst [vmem:[#allocation68_spill] sm:$0xff] %v3975_v31  ;;  %v3984_v48 = vcombine.high %v83_v17, %v87_v26  ;;  %v74_v32 = vld [vmem:[%s5614_s1 + $0x150] sm:$0xff] }
  0x3f   :  { %830 = vmatprep.subr.bf16.mxu0 %v3933_v47  ;;  %871 = vmatprep.subr.bf16.mxu1 %v3936_v42  ;;  %v3979_v42 = vcombine.low %v91_v58, %v95_v63  ;;  %v3981_v47 = vcombine.high %v82_v1, %v86_v13  ;;  %v75_v58 = vld [vmem:[%s5614_s1 + $0x158] sm:$0xff] }
  0x40   :  { %5960 = vst [vmem:[#allocation71_spill] sm:$0xff] %v3984_v48  ;;  %v79_v63 = vld [vmem:[%s5614_s1 + $0x178] sm:$0xff] }
  0x41   :  { %5958 = vst [vmem:[#allocation69_spill] sm:$0xff] %v3979_v42  ;;  %5959 = vst [vmem:[#allocation70_spill] sm:$0xff] %v3981_v47 }
  0x42   :  { %831 = vmatpush2.bf16.msra.mxu0 %v3951_v0  ;;  %872 = vmatpush2.bf16.msra.mxu1 %v3955_v14  ;;  %v4007_v14 = vcombine.high %v74_v32, %v78_v33  ;;  %v4010_v0 = vcombine.high %v75_v58, %v79_v63 }
  0x43   :  { %882 = vmatprep.subr.bf16.mxu0 %v3957_v16  ;;  %923 = vmatprep.subr.bf16.mxu1 %v3960_v3  ;;  %v4001_v3 = vcombine.low %v82_v1, %v86_v13  ;;  %v4005_v16 = vcombine.low %v83_v17, %v87_v26  ;;  %v70_v1 = vld [vmem:[%s5614_s1 + $0x130] sm:$0xff]  ;;  %v67_v13 = vld [vmem:[%s5614_s1 + $0x118] sm:$0xff]  ;;  %v4027_v26 = vcombine.low %v74_v32, %v78_v33 }
  0x44   :  { %5964 = vst [vmem:[#allocation74_spill] sm:$0xff] %v4007_v14  ;;  %5965 = vst [vmem:[#allocation75_spill] sm:$0xff] %v4010_v0  ;;  %v71_v17 = vld [vmem:[%s5614_s1 + $0x138] sm:$0xff]  ;;  %v62_v32 = vld [vmem:[%s5614_s1 + $0xf0] sm:$0xff] }
  0x45   :  { %833 = vmatmul.mubr.bf16.vlgmr.msra.gmra.mxu0 %v5961_v49  ;;  %874 = vmatmul.mubr.bf16.vlgmr.msra.gmra.mxu1 %v5961_v49  ;;  %5962 = vst [vmem:[#allocation72_spill] sm:$0xff] %v4001_v3  ;;  %5963 = vst [vmem:[#allocation73_spill] sm:$0xff] %v4005_v16  ;;  %v59_v33 = vld [vmem:[%s5614_s1 + $0xd8] sm:$0xff] }
  0x46   :  { %883 = vmatpush1.bf16.msra.mxu0 %v3975_v31  ;;  %924 = vmatpush1.bf16.msra.mxu1 %v3979_v42  ;;  %5966 = vst [vmem:[#allocation76_spill] sm:$0xff] %v4027_v26  ;;  %v4036_v42 = vcombine.high %v67_v13, %v71_v17  ;;  %v58_v31 = vld [vmem:[%s5614_s1 + $0xd0] sm:$0xff] }
  0x47   :  { %884 = vmatprep.subr.bf16.mxu0 %v3981_v47  ;;  %925 = vmatprep.subr.bf16.mxu1 %v3984_v48  ;;  %v4031_v48 = vcombine.low %v75_v58, %v79_v63  ;;  %v4033_v47 = vcombine.high %v66_v2, %v70_v1  ;;  %v63_v58 = vld [vmem:[%s5614_s1 + $0xf8] sm:$0xff]  ;;  %v4051_v63 = vcombine.low %v66_v2, %v70_v1  ;;  %v54_v2 = vld [vmem:[%s5614_s1 + $0xb0] sm:$0xff] }
  0x48   :  { %914 = vmatprep.mubr.bf16.mxu0 %v5961_v49  ;;  %955 = vmatprep.mubr.bf16.mxu1 %v5961_v49  ;;  %5969 = vst [vmem:[#allocation79_spill] sm:$0xff] %v4036_v42  ;;  %v51_v1 = vld [vmem:[%s5614_s1 + $0x98] sm:$0xff] }
  0x49   :  { %5967 = vst [vmem:[#allocation77_spill] sm:$0xff] %v4031_v48  ;;  %5968 = vst [vmem:[#allocation78_spill] sm:$0xff] %v4033_v47 }
  0x4a   :  { %885 = vmatpush1.bf16.msra.mxu0 %v4001_v3  ;;  %926 = vmatpush1.bf16.msra.mxu1 %v4005_v16  ;;  %5970 = vst [vmem:[#allocation80_spill] sm:$0xff] %v4051_v63  ;;  %v4060_v16 = vcombine.high %v59_v33, %v63_v58  ;;  %v50_v3 = vld [vmem:[%s5614_s1 + $0x90] sm:$0xff] }
  0x4b   :  { %886 = vmatprep.subr.bf16.mxu0 %v4007_v14  ;;  %927 = vmatprep.subr.bf16.mxu1 %v4010_v0  ;;  %v4055_v0 = vcombine.low %v67_v13, %v71_v17  ;;  %v4057_v14 = vcombine.high %v58_v31, %v62_v32  ;;  %v55_v13 = vld [vmem:[%s5614_s1 + $0xb8] sm:$0xff]  ;;  %v4075_v17 = vcombine.low %v58_v31, %v62_v32  ;;  %v46_v31 = vld [vmem:[%s5614_s1 + $0x70] sm:$0xff] }
  0x4c   :  { %5973 = vst [vmem:[#allocation83_spill] sm:$0xff] %v4060_v16  ;;  %v43_v32 = vld [vmem:[%s5614_s1 + $0x58] sm:$0xff] }
  0x4d   :  { %5971 = vst [vmem:[#allocation81_spill] sm:$0xff] %v4055_v0  ;;  %5972 = vst [vmem:[#allocation82_spill] sm:$0xff] %v4057_v14 }
  0x4e   :  { %887 = vmatpush1.bf16.msra.mxu0 %v4027_v26  ;;  %928 = vmatpush1.bf16.msra.mxu1 %v4031_v48  ;;  %5974 = vst [vmem:[#allocation84_spill] sm:$0xff] %v4075_v17  ;;  %v4084_v48 = vcombine.high %v51_v1, %v55_v13  ;;  %v42_v26 = vld [vmem:[%s5614_s1 + $0x50] sm:$0xff] }
  0x4f   :  { %888 = vmatprep.subr.bf16.mxu0 %v4033_v47  ;;  %929 = vmatprep.subr.bf16.mxu1 %v4036_v42  ;;  %v4079_v42 = vcombine.low %v59_v33, %v63_v58  ;;  %v4081_v47 = vcombine.high %v50_v3, %v54_v2  ;;  %v47_v33 = vld [vmem:[%s5614_s1 + $0x78] sm:$0xff]  ;;  %v4099_v58 = vcombine.low %v50_v3, %v54_v2  ;;  %v38_v3 = vld [vmem:[%s5614_s1 + $0x30] sm:$0xff] }
  0x50   :  { %5977 = vst [vmem:[#allocation87_spill] sm:$0xff] %v4084_v48  ;;  %v35_v2 = vld [vmem:[%s5614_s1 + $0x18] sm:$0xff] }
  0x51   :  { %5975 = vst [vmem:[#allocation85_spill] sm:$0xff] %v4079_v42  ;;  %5976 = vst [vmem:[#allocation86_spill] sm:$0xff] %v4081_v47 }
  0x52   :  { %889 = vmatpush1.bf16.msra.mxu0 %v4051_v63  ;;  %930 = vmatpush1.bf16.msra.mxu1 %v4055_v0  ;;  %5978 = vst [vmem:[#allocation88_spill] sm:$0xff] %v4099_v58  ;;  %v4108_v0 = vcombine.high %v43_v32, %v47_v33  ;;  %v34_v63 = vld [vmem:[%s5614_s1 + $0x10] sm:$0xff] }
  0x53   :  { %890 = vmatprep.subr.bf16.mxu0 %v4057_v14  ;;  %931 = vmatprep.subr.bf16.mxu1 %v4060_v16  ;;  %v4103_v16 = vcombine.low %v51_v1, %v55_v13  ;;  %v4105_v14 = vcombine.high %v42_v26, %v46_v31  ;;  %v39_v1 = vld [vmem:[%s5614_s1 + $0x38] sm:$0xff]  ;;  %v4123_v13 = vcombine.low %v42_v26, %v46_v31  ;;  %v158_v26 = vld [vmem:[%s5614_s1 + $0x3f0] sm:$0xff] }
  0x54   :  { %5981 = vst [vmem:[#allocation91_spill] sm:$0xff] %v4108_v0  ;;  %v155_v31 = vld [vmem:[%s5614_s1 + $0x3d8] sm:$0xff] }
  0x55   :  { %5979 = vst [vmem:[#allocation89_spill] sm:$0xff] %v4103_v16  ;;  %5980 = vst [vmem:[#allocation90_spill] sm:$0xff] %v4105_v14 }
  0x56   :  { %891 = vmatpush1.bf16.msra.mxu0 %v4075_v17  ;;  %932 = vmatpush1.bf16.msra.mxu1 %v4079_v42  ;;  %5982 = vst [vmem:[#allocation92_spill] sm:$0xff] %v4123_v13  ;;  %v4132_v42 = vcombine.high %v35_v2, %v39_v1  ;;  %v154_v17 = vld [vmem:[%s5614_s1 + $0x3d0] sm:$0xff] }
  0x57   :  { %892 = vmatprep.subr.bf16.mxu0 %v4081_v47  ;;  %933 = vmatprep.subr.bf16.mxu1 %v4084_v48  ;;  %v4127_v48 = vcombine.low %v43_v32, %v47_v33  ;;  %v4129_v47 = vcombine.high %v34_v63, %v38_v3  ;;  %v159_v32 = vld [vmem:[%s5614_s1 + $0x3f8] sm:$0xff]  ;;  %v4147_v33 = vcombine.low %v34_v63, %v38_v3  ;;  %v150_v63 = vld [vmem:[%s5614_s1 + $0x3b0] sm:$0xff] }
  0x58   :  { %5985 = vst [vmem:[#allocation95_spill] sm:$0xff] %v4132_v42  ;;  %v147_v3 = vld [vmem:[%s5614_s1 + $0x398] sm:$0xff] }
  0x59   :  { %5983 = vst [vmem:[#allocation93_spill] sm:$0xff] %v4127_v48  ;;  %5984 = vst [vmem:[#allocation94_spill] sm:$0xff] %v4129_v47 }
  0x5a   :  { %893 = vmatpush1.bf16.msra.mxu0 %v4099_v58  ;;  %934 = vmatpush1.bf16.msra.mxu1 %v4103_v16  ;;  %5986 = vst [vmem:[#allocation96_spill] sm:$0xff] %v4147_v33  ;;  %v4156_v16 = vcombine.high %v155_v31, %v159_v32  ;;  %v146_v58 = vld [vmem:[%s5614_s1 + $0x390] sm:$0xff] }
  0x5b   :  { %894 = vmatprep.subr.bf16.mxu0 %v4105_v14  ;;  %935 = vmatprep.subr.bf16.mxu1 %v4108_v0  ;;  %v4151_v0 = vcombine.low %v35_v2, %v39_v1  ;;  %v4153_v14 = vcombine.high %v154_v17, %v158_v26  ;;  %v151_v2 = vld [vmem:[%s5614_s1 + $0x3b8] sm:$0xff]  ;;  %v4171_v1 = vcombine.low %v154_v17, %v158_v26  ;;  %v142_v17 = vld [vmem:[%s5614_s1 + $0x370] sm:$0xff] }
  0x5c   :  { %5989 = vst [vmem:[#allocation99_spill] sm:$0xff] %v4156_v16  ;;  %v139_v26 = vld [vmem:[%s5614_s1 + $0x358] sm:$0xff] }
  0x5d   :  { %5987 = vst [vmem:[#allocation97_spill] sm:$0xff] %v4151_v0  ;;  %5988 = vst [vmem:[#allocation98_spill] sm:$0xff] %v4153_v14 }
  0x5e   :  { %895 = vmatpush1.bf16.msra.mxu0 %v4123_v13  ;;  %936 = vmatpush1.bf16.msra.mxu1 %v4127_v48  ;;  %5990 = vst [vmem:[#allocation100_spill] sm:$0xff] %v4171_v1  ;;  %v4180_v48 = vcombine.high %v147_v3, %v151_v2  ;;  %v138_v13 = vld [vmem:[%s5614_s1 + $0x350] sm:$0xff] }
  0x5f   :  { %896 = vmatprep.subr.bf16.mxu0 %v4129_v47  ;;  %937 = vmatprep.subr.bf16.mxu1 %v4132_v42  ;;  %v4175_v42 = vcombine.low %v155_v31, %v159_v32  ;;  %v4177_v47 = vcombine.high %v146_v58, %v150_v63  ;;  %v143_v31 = vld [vmem:[%s5614_s1 + $0x378] sm:$0xff]  ;;  %v4195_v32 = vcombine.low %v146_v58, %v150_v63  ;;  %v134_v58 = vld [vmem:[%s5614_s1 + $0x330] sm:$0xff] }
  0x60   :  { %5993 = vst [vmem:[#allocation103_spill] sm:$0xff] %v4180_v48  ;;  %v131_v63 = vld [vmem:[%s5614_s1 + $0x318] sm:$0xff] }
  0x61   :  { %5991 = vst [vmem:[#allocation101_spill] sm:$0xff] %v4175_v42  ;;  %5992 = vst [vmem:[#allocation102_spill] sm:$0xff] %v4177_v47 }
  0x62   :  { %897 = vmatpush1.bf16.msra.mxu0 %v4147_v33  ;;  %938 = vmatpush1.bf16.msra.mxu1 %v4151_v0  ;;  %5994 = vst [vmem:[#allocation104_spill] sm:$0xff] %v4195_v32  ;;  %v4204_v0 = vcombine.high %v139_v26, %v143_v31  ;;  %v130_v33 = vld [vmem:[%s5614_s1 + $0x310] sm:$0xff] }
  0x63   :  { %898 = vmatprep.subr.bf16.mxu0 %v4153_v14  ;;  %939 = vmatprep.subr.bf16.mxu1 %v4156_v16  ;;  %v4199_v16 = vcombine.low %v147_v3, %v151_v2  ;;  %v4201_v14 = vcombine.high %v138_v13, %v142_v17  ;;  %v135_v3 = vld [vmem:[%s5614_s1 + $0x338] sm:$0xff]  ;;  %v4219_v2 = vcombine.low %v138_v13, %v142_v17  ;;  %v126_v13 = vld [vmem:[%s5614_s1 + $0x2f0] sm:$0xff] }
  0x64   :  { %5997 = vst [vmem:[#allocation107_spill] sm:$0xff] %v4204_v0  ;;  %v123_v17 = vld [vmem:[%s5614_s1 + $0x2d8] sm:$0xff] }
  0x65   :  { %5995 = vst [vmem:[#allocation105_spill] sm:$0xff] %v4199_v16  ;;  %5996 = vst [vmem:[#allocation106_spill] sm:$0xff] %v4201_v14 }
  0x66   :  { %899 = vmatpush2.bf16.msra.mxu0 %v4171_v1  ;;  %940 = vmatpush2.bf16.msra.mxu1 %v4175_v42  ;;  %5998 = vst [vmem:[#allocation108_spill] sm:$0xff] %v4219_v2  ;;  %v4228_v42 = vcombine.high %v131_v63, %v135_v3  ;;  %v122_v1 = vld [vmem:[%s5614_s1 + $0x2d0] sm:$0xff] }
  0x67   :  { %900 = vmatprep.subr.bf16.mxu0 %v4177_v47  ;;  %941 = vmatprep.subr.bf16.mxu1 %v4180_v48  ;;  %v4223_v48 = vcombine.low %v139_v26, %v143_v31  ;;  %v4225_v47 = vcombine.high %v130_v33, %v134_v58  ;;  %v127_v26 = vld [vmem:[%s5614_s1 + $0x2f8] sm:$0xff]  ;;  %v4243_v31 = vcombine.low %v130_v33, %v134_v58  ;;  %v118_v33 = vld [vmem:[%s5614_s1 + $0x2b0] sm:$0xff] }
  0x68   :  { %6001 = vst [vmem:[#allocation111_spill] sm:$0xff] %v4228_v42  ;;  %v115_v58 = vld [vmem:[%s5614_s1 + $0x298] sm:$0xff] }
  0x69   :  { %5999 = vst [vmem:[#allocation109_spill] sm:$0xff] %v4223_v48  ;;  %6000 = vst [vmem:[#allocation110_spill] sm:$0xff] %v4225_v47 }
  0x6a   :  { %901 = vmatpush2.bf16.msra.mxu0 %v4195_v32  ;;  %942 = vmatpush2.bf16.msra.mxu1 %v4199_v16  ;;  %6002 = vst [vmem:[#allocation112_spill] sm:$0xff] %v4243_v31  ;;  %v4252_v16 = vcombine.high %v123_v17, %v127_v26  ;;  %v114_v32 = vld [vmem:[%s5614_s1 + $0x290] sm:$0xff] }
  0x6b   :  { %902 = vmatprep.subr.bf16.mxu0 %v4201_v14  ;;  %943 = vmatprep.subr.bf16.mxu1 %v4204_v0  ;;  %v4247_v0 = vcombine.low %v131_v63, %v135_v3  ;;  %v4249_v14 = vcombine.high %v122_v1, %v126_v13  ;;  %v119_v63 = vld [vmem:[%s5614_s1 + $0x2b8] sm:$0xff]  ;;  %v4267_v3 = vcombine.low %v122_v1, %v126_v13  ;;  %v110_v1 = vld [vmem:[%s5614_s1 + $0x270] sm:$0xff] }
  0x6c   :  { %6005 = vst [vmem:[#allocation115_spill] sm:$0xff] %v4252_v16  ;;  %v107_v13 = vld [vmem:[%s5614_s1 + $0x258] sm:$0xff] }
  0x6d   :  { %6003 = vst [vmem:[#allocation113_spill] sm:$0xff] %v4247_v0  ;;  %6004 = vst [vmem:[#allocation114_spill] sm:$0xff] %v4249_v14 }
  0x6e   :  { %903 = vmatpush2.bf16.msra.mxu0 %v4219_v2  ;;  %944 = vmatpush2.bf16.msra.mxu1 %v4223_v48  ;;  %6006 = vst [vmem:[#allocation116_spill] sm:$0xff] %v4267_v3  ;;  %v4276_v48 = vcombine.high %v115_v58, %v119_v63  ;;  %v106_v2 = vld [vmem:[%s5614_s1 + $0x250] sm:$0xff] }
  0x6f   :  { %904 = vmatprep.subr.bf16.mxu0 %v4225_v47  ;;  %945 = vmatprep.subr.bf16.mxu1 %v4228_v42  ;;  %v4271_v42 = vcombine.low %v123_v17, %v127_v26  ;;  %v4273_v47 = vcombine.high %v114_v32, %v118_v33  ;;  %v111_v17 = vld [vmem:[%s5614_s1 + $0x278] sm:$0xff]  ;;  %v4291_v26 = vcombine.low %v114_v32, %v118_v33  ;;  %v102_v32 = vld [vmem:[%s5614_s1 + $0x230] sm:$0xff] }
  0x70   :  { %6009 = vst [vmem:[#allocation119_spill] sm:$0xff] %v4276_v48  ;;  %v99_v33 = vld [vmem:[%s5614_s1 + $0x218] sm:$0xff] }
  0x71   :  { %6007 = vst [vmem:[#allocation117_spill] sm:$0xff] %v4271_v42  ;;  %6008 = vst [vmem:[#allocation118_spill] sm:$0xff] %v4273_v47 }
  0x72   :  { %905 = vmatpush2.bf16.msra.mxu0 %v4243_v31  ;;  %946 = vmatpush2.bf16.msra.mxu1 %v4247_v0  ;;  %6010 = vst [vmem:[#allocation120_spill] sm:$0xff] %v4291_v26  ;;  %v4300_v0 = vcombine.high %v107_v13, %v111_v17  ;;  %v98_v31 = vld [vmem:[%s5614_s1 + $0x210] sm:$0xff] }
  0x73   :  { %906 = vmatprep.subr.bf16.mxu0 %v4249_v14  ;;  %947 = vmatprep.subr.bf16.mxu1 %v4252_v16  ;;  %v4295_v16 = vcombine.low %v115_v58, %v119_v63  ;;  %v4297_v14 = vcombine.high %v106_v2, %v110_v1  ;;  %v103_v58 = vld [vmem:[%s5614_s1 + $0x238] sm:$0xff]  ;;  %v4315_v63 = vcombine.low %v106_v2, %v110_v1  ;;  %v6022_v1 = vld [vmem:[#allocation50_spill] sm:$0xff] }
  0x74   :  { %6013 = vst [vmem:[#allocation123_spill] sm:$0xff] %v4300_v0  ;;  %v4331_v2 = vcombine.low %v99_v33, %v103_v58 }
  0x75   :  { %6011 = vst [vmem:[#allocation121_spill] sm:$0xff] %v4295_v16  ;;  %6012 = vst [vmem:[#allocation122_spill] sm:$0xff] %v4297_v14 }
  0x76   :  { %907 = vmatpush2.bf16.msra.mxu0 %v4267_v3  ;;  %948 = vmatpush2.bf16.msra.mxu1 %v4271_v42  ;;  %6014 = vst [vmem:[#allocation124_spill] sm:$0xff] %v4315_v63  ;;  %v4324_v42 = vcombine.high %v99_v33, %v103_v58  ;;  %v4327_v3 = vcombine.low %v98_v31, %v102_v32  ;;  %6019 = vst [vmem:[#allocation129_spill] sm:$0xff] %v4331_v2  ;;  %v6026_v33 = vld [vmem:[#allocation54_spill] sm:$0xff]  ;;  %v6027_v58 = vld [vmem:[#allocation55_spill] sm:$0xff] }
  0x77   :  { %908 = vmatprep.subr.bf16.mxu0 %v4273_v47  ;;  %949 = vmatprep.subr.bf16.mxu1 %v4276_v48  ;;  %v4319_v48 = vcombine.low %v107_v13, %v111_v17  ;;  %v4321_v47 = vcombine.high %v98_v31, %v102_v32  ;;  %v6021_v31 = vld [vmem:[#allocation49_spill] sm:$0xff]  ;;  %v6023_v13 = vld [vmem:[#allocation51_spill] sm:$0xff]  ;;  %v6024_v17 = vld [vmem:[#allocation52_spill] sm:$0xff] }
  0x78   :  { %6017 = vst [vmem:[#allocation127_spill] sm:$0xff] %v4324_v42  ;;  %6018 = vst [vmem:[#allocation128_spill] sm:$0xff] %v4327_v3  ;;  %v6025_v32 = vld [vmem:[#allocation53_spill] sm:$0xff] }
  0x79   :  { %6015 = vst [vmem:[#allocation125_spill] sm:$0xff] %v4319_v48  ;;  %6016 = vst [vmem:[#allocation126_spill] sm:$0xff] %v4321_v47 }
  0x7a   :  { %909 = vmatpush2.bf16.msra.mxu0 %v4291_v26  ;;  %950 = vmatpush2.bf16.msra.mxu1 %v4295_v16 }
  0x7b   :  { %910 = vmatprep.subr.bf16.mxu0 %v4297_v14  ;;  %951 = vmatprep.subr.bf16.mxu1 %v4300_v0 }
  0x7e   :  { %911 = vmatpush2.bf16.msra.mxu0 %v4315_v63  ;;  %952 = vmatpush2.bf16.msra.mxu1 %v4319_v48 }
  0x7f   :  { %912 = vmatprep.subr.bf16.mxu0 %v4321_v47  ;;  %953 = vmatprep.subr.bf16.mxu1 %v4324_v42 }
  0x82   :  { %913 = vmatpush2.bf16.msra.mxu0 %v4327_v3  ;;  %954 = vmatpush2.bf16.msra.mxu1 %v4331_v2 }
  0x83   :  { %1031 = vmatprep.subr.bf16.mxu0 %v3573_v4  ;;  %1072 = vmatprep.subr.bf16.mxu1 %v3586_v9 }
  0x85   :  { %915 = vmatmul.mubr.bf16.vlgmr.msra.gmra.mxu0 %v5961_v49  ;;  %956 = vmatmul.mubr.bf16.vlgmr.msra.gmra.mxu1 %v5961_v49  ;;  %v6020_v49 = vld [vmem:[#allocation48_spill] sm:$0xff] }
  0x86   :  { %1032 = vmatpush1.bf16.msra.mxu0 %v3578_v6  ;;  %1073 = vmatpush1.bf16.msra.mxu1 %v3588_v10 }
  0x87   :  { %1033 = vmatprep.subr.bf16.mxu0 %v3590_v11  ;;  %1074 = vmatprep.subr.bf16.mxu1 %v3602_v15 }
  0x8a   :  { %1034 = vmatpush1.bf16.msra.mxu0 %v3615_v19  ;;  %1075 = vmatpush1.bf16.msra.mxu1 %v3619_v20 }
  0x8b   :  { %1035 = vmatprep.subr.bf16.mxu0 %v3621_v21  ;;  %1076 = vmatprep.subr.bf16.mxu1 %v3624_v22 }
  0x8e   :  { %1036 = vmatpush1.bf16.msra.mxu0 %v3639_v27  ;;  %1077 = vmatpush1.bf16.msra.mxu1 %v3643_v28 }
  0x8f   :  { %1037 = vmatprep.subr.bf16.mxu0 %v3645_v29  ;;  %1078 = vmatprep.subr.bf16.mxu1 %v3648_v30 }
  0x92   :  { %1038 = vmatpush1.bf16.msra.mxu0 %v3663_v35  ;;  %1079 = vmatpush1.bf16.msra.mxu1 %v3667_v36 }
  0x93   :  { %1039 = vmatprep.subr.bf16.mxu0 %v3669_v37  ;;  %1080 = vmatprep.subr.bf16.mxu1 %v3672_v38 }
  0x96   :  { %1040 = vmatpush1.bf16.msra.mxu0 %v3687_v43  ;;  %1081 = vmatpush1.bf16.msra.mxu1 %v3691_v44 }
  0x97   :  { %1041 = vmatprep.subr.bf16.mxu0 %v3693_v45  ;;  %1082 = vmatprep.subr.bf16.mxu1 %v3696_v46 }
  0x9a   :  { %1042 = vmatpush1.bf16.msra.mxu0 %v3711_v51  ;;  %1083 = vmatpush1.bf16.msra.mxu1 %v3715_v52 }
  0x9b   :  { %1043 = vmatprep.subr.bf16.mxu0 %v3717_v53  ;;  %1084 = vmatprep.subr.bf16.mxu1 %v3720_v54 }
  0x9e   :  { %1044 = vmatpush1.bf16.msra.mxu0 %v3735_v59  ;;  %1085 = vmatpush1.bf16.msra.mxu1 %v3739_v60 }
  0x9f   :  { %1045 = vmatprep.subr.bf16.mxu0 %v3741_v61  ;;  %1086 = vmatprep.subr.bf16.mxu1 %v3744_v62 }
  0xa2   :  { %1046 = vmatpush1.bf16.msra.mxu0 %v3759_v5  ;;  %1087 = vmatpush1.bf16.msra.mxu1 %v3763_v7 }
  0xa3   :  { %1047 = vmatprep.subr.bf16.mxu0 %v3765_v8  ;;  %1088 = vmatprep.subr.bf16.mxu1 %v3768_v12 }
  0xa6   :  { %1048 = vmatpush2.bf16.msra.mxu0 %v3783_v18  ;;  %1089 = vmatpush2.bf16.msra.mxu1 %v3787_v23 }
  0xa7   :  { %1049 = vmatprep.subr.bf16.mxu0 %v3789_v24  ;;  %1090 = vmatprep.subr.bf16.mxu1 %v3792_v25 }
  0xaa   :  { %1050 = vmatpush2.bf16.msra.mxu0 %v3807_v34  ;;  %1091 = vmatpush2.bf16.msra.mxu1 %v3811_v39 }
  0xab   :  { %1051 = vmatprep.subr.bf16.mxu0 %v3813_v40  ;;  %1092 = vmatprep.subr.bf16.mxu1 %v3816_v41 }
  0xae   :  { %1052 = vmatpush2.bf16.msra.mxu0 %v3831_v50  ;;  %1093 = vmatpush2.bf16.msra.mxu1 %v3835_v55  ;;  %v6028_v55 = vld [vmem:[#allocation56_spill] sm:$0xff] }
  0xaf   :  { %1053 = vmatprep.subr.bf16.mxu0 %v3837_v56  ;;  %1094 = vmatprep.subr.bf16.mxu1 %v3840_v57  ;;  %v6029_v56 = vld [vmem:[#allocation57_spill] sm:$0xff]  ;;  %v6030_v57 = vld [vmem:[#allocation58_spill] sm:$0xff] }
  0xb2   :  { %1054 = vmatpush2.bf16.msra.mxu0 %v6020_v49  ;;  %1095 = vmatpush2.bf16.msra.mxu1 %v6021_v31  ;;  %v6031_v49 = vld [vmem:[#allocation59_spill] sm:$0xff]  ;;  %v6032_v31 = vld [vmem:[#allocation60_spill] sm:$0xff] }
  0xb3   :  { %1055 = vmatprep.subr.bf16.mxu0 %v6022_v1  ;;  %1096 = vmatprep.subr.bf16.mxu1 %v6023_v13  ;;  %v6033_v1 = vld [vmem:[#allocation61_spill] sm:$0xff]  ;;  %v6034_v13 = vld [vmem:[#allocation62_spill] sm:$0xff] }
  0xb6   :  { %1056 = vmatpush2.bf16.msra.mxu0 %v6024_v17  ;;  %1097 = vmatpush2.bf16.msra.mxu1 %v6025_v32  ;;  %v6035_v17 = vld [vmem:[#allocation63_spill] sm:$0xff]  ;;  %v6036_v32 = vld [vmem:[#allocation64_spill] sm:$0xff] }
  0xb7   :  { %1057 = vmatprep.subr.bf16.mxu0 %v6026_v33  ;;  %1098 = vmatprep.subr.bf16.mxu1 %v6027_v58  ;;  %v6037_v33 = vld [vmem:[#allocation65_spill] sm:$0xff]  ;;  %v6038_v58 = vld [vmem:[#allocation66_spill] sm:$0xff] }
  0xba   :  { %1058 = vmatpush2.bf16.msra.mxu0 %v6028_v55  ;;  %1099 = vmatpush2.bf16.msra.mxu1 %v6029_v56  ;;  %v6039_v55 = vld [vmem:[#allocation67_spill] sm:$0xff] }
  0xbb   :  { %1059 = vmatprep.subr.bf16.mxu0 %v6030_v57  ;;  %1100 = vmatprep.subr.bf16.mxu1 %v6031_v49 }
  0xbe   :  { %1060 = vmatpush2.bf16.msra.mxu0 %v6032_v31  ;;  %1101 = vmatpush2.bf16.msra.mxu1 %v6033_v1 }
  0xbf   :  { %1061 = vmatprep.subr.bf16.mxu0 %v6034_v13  ;;  %1102 = vmatprep.subr.bf16.mxu1 %v6035_v17  ;;  %v24_v17 = vld [vmem:[%s5615_s0] sm:$0xff] }
  0xc2   :  { %1062 = vmatpush2.bf16.msra.mxu0 %v6036_v32  ;;  %1103 = vmatpush2.bf16.msra.mxu1 %v6037_v33  ;;  %v26_v33 = vld [vmem:[%s5615_s0 + $0x10] sm:$0xff] }
  0xc3   :  { %1113 = vmatprep.subr.bf16.mxu0 %v6038_v58  ;;  %1154 = vmatprep.subr.bf16.mxu1 %v6039_v55  ;;  %v27_v55 = vld [vmem:[%s5615_s0 + $0x18] sm:$0xff] }
 0x105   :  { %v834_v56 = vpop.f32.mrf.mxu0  ;;  %v875_v57 = vpop.f32.mrf.mxu1 }
 0x106   :  { %v964_v58 = vadd.f32 %v834_v56, %v24_v17  ;;  %v966_v32 = vadd.f32 %v875_v57, %v26_v33 }
 0x107   :  { %v836_v50 = vpop.f32.mrf.mxu0  ;;  %v877_v49 = vpop.f32.mrf.mxu1 }
 0x108   :  { %v3062_v13 = vmul.f32 -1.442695, %v966_v32 }
 0x109   :  { %v838_v41 = vpop.f32.mrf.mxu0  ;;  %v879_v31 = vpop.f32.mrf.mxu1 }
 0x10a   :  { %v25_v41 = vld [vmem:[%s5615_s0 + $0x8] sm:$0xff]  ;;  %v3060_v31 = vmul.f32 -1.442695, %v964_v58 }
 0x10b   :  { %v839_v40 = vpop.f32.mrf.mxu0  ;;  %v880_v1 = vpop.f32.mrf.mxu1 }
 0x10c   :  { %v967_v40 = vadd.f32 %v877_v49, %v27_v55  ;;  %v965_v1 = vadd.f32 %v836_v50, %v25_v41  ;;  %3268 = vpow2.f32 %v3060_v31  ;;  %v28_v55 = vld [vmem:[%s5615_s0 + $0x20] sm:$0xff]  ;;  %v30_v50 = vld [vmem:[%s5615_s0 + $0x30] sm:$0xff] }
 0x10d   :  { %3270 = vpow2.f32 %v3062_v13 }
 0x10e   :  { %v3063_v39 = vmul.f32 -1.442695, %v967_v40  ;;  %v3061_v34 = vmul.f32 -1.442695, %v965_v1 }
 0x110   :  { %3272 = vpow2.f32 %v3063_v39 }
 0x111   :  { %3274 = vpow2.f32 %v3061_v34  ;;  %v29_v34 = vld [vmem:[%s5615_s0 + $0x28] sm:$0xff] }
 0x119   :  { %v3269_v25 = vpop.eup %3268 }
 0x11a   :  { %v3271_v24 = vpop.eup %3270  ;;  %v978_v18 = vadd.f32 1.0, %v3269_v25 }
 0x11b   :  { %v990_v57 = vadd.f32 1.0, %v3271_v24 }
 0x11c   :  { %3276 = vrcp.f32 %v978_v18 }
 0x11d   :  { %v3273_v23 = vpop.eup %3272  ;;  %3278 = vrcp.f32 %v990_v57 }
 0x11e   :  { %v3275_v56 = vpop.eup %3274  ;;  %v991_v17 = vadd.f32 1.0, %v3273_v23  ;;  %v31_v23 = vld [vmem:[%s5615_s0 + $0x38] sm:$0xff] }
 0x11f   :  { %v979_v49 = vadd.f32 1.0, %v3275_v56 }
 0x120   :  { %3280 = vrcp.f32 %v991_v17 }
 0x145   :  { %v916_v13 = vpop.f32.mrf.mxu0  ;;  %v957_v39 = vpop.f32.mrf.mxu1 }
 0x146   :  { %v968_v25 = vadd.f32 %v916_v13, %v28_v55  ;;  %v970_v24 = vadd.f32 %v957_v39, %v30_v50  ;;  %v3277_v55 = vpop.eup %3276 }
 0x147   :  { %v918_v32 = vpop.f32.mrf.mxu0  ;;  %v959_v58 = vpop.f32.mrf.mxu1 }
 0x148   :  { %3282 = vtanh.f32 %v968_v25  ;;  %v969_v33 = vadd.f32 %v918_v32, %v29_v34  ;;  %v3064_v18 = vmul.f32 -1.442695, %v970_v24  ;;  %v971_v41 = vadd.f32 %v959_v58, %v31_v23  ;;  %v3279_v13 = vpop.eup %3278 }
 0x149   :  { %3284 = vrcp.f32 %v979_v49  ;;  %v920_v40 = vpop.f32.mrf.mxu0  ;;  %v961_v31 = vpop.f32.mrf.mxu1  ;;  %v1010_v39 = vmul.f32 0.0, %v3279_v13 }
 0x14a   :  { %3286 = vtanh.f32 %v969_v33  ;;  %v3065_v1 = vmul.f32 -1.442695, %v971_v41  ;;  %v3281_v12 = vpop.eup %3280 }
 0x14b   :  { %3288 = vpow2.f32 %v3064_v18  ;;  %v921_v56 = vpop.f32.mrf.mxu0  ;;  %v962_v57 = vpop.f32.mrf.mxu1  ;;  %v1011_v49 = vmul.f32 0.0, %v3281_v12 }
 0x14c   :  { %3290 = vpow2.f32 %v3065_v1 }
 0x155   :  { %v3283_v17 = vpop.eup %3282 }
 0x156   :  { %v3285_v50 = vpop.eup %3284  ;;  %v1012_v25 = vmul.f32 %v3283_v17, %v3277_v55  ;;  %v6040_v17 = vld [vmem:[#allocation68_spill] sm:$0xff] }
 0x157   :  { %v3287_v34 = vpop.eup %3286 }
 0x158   :  { %v3289_v32 = vpop.eup %3288  ;;  %v4428_v24 = vadd.f32 %v1012_v25, %v1010_v39  ;;  %v1013_v23 = vmul.f32 %v3287_v34, %v3285_v50  ;;  %v6041_v50 = vld [vmem:[#allocation69_spill] sm:$0xff]  ;;  %v6042_v39 = vld [vmem:[#allocation70_spill] sm:$0xff]  ;;  %v6043_v25 = vld [vmem:[#allocation71_spill] sm:$0xff] }
 0x159   :  { %v1004_v33 = vadd.f32 1.0, %v3289_v32  ;;  %v3291_v58 = vpop.eup %3290  ;;  %v6044_v34 = vld [vmem:[#allocation72_spill] sm:$0xff]  ;;  %v6045_v32 = vld [vmem:[#allocation73_spill] sm:$0xff] }
 0x15a   :  { %3292 = vtanh.f32 %v4428_v24  ;;  %v4431_v18 = vadd.f32 %v1013_v23, %v1011_v49  ;;  %v1005_v41 = vadd.f32 1.0, %v3291_v58  ;;  %v6046_v49 = vld [vmem:[#allocation74_spill] sm:$0xff]  ;;  %v6047_v23 = vld [vmem:[#allocation75_spill] sm:$0xff]  ;;  %v6049_v58 = vld [vmem:[#allocation77_spill] sm:$0xff] }
 0x15b   :  { %3294 = vrcp.f32 %v1004_v33  ;;  %v6048_v33 = vld [vmem:[#allocation76_spill] sm:$0xff] }
 0x15c   :  { %3296 = vtanh.f32 %v4431_v18 }
 0x15d   :  { %3298 = vrcp.f32 %v1005_v41  ;;  %v6050_v41 = vld [vmem:[#allocation78_spill] sm:$0xff] }
 0x167   :  { %v3293_v40 = vpop.eup %3292 }
 0x168   :  { %v3295_v31 = vpop.eup %3294 }
 0x169   :  { %v3297_v1 = vpop.eup %3296  ;;  %v1018_v57 = vmul.f32 %v3295_v31, %v3293_v40  ;;  %v6051_v40 = vld [vmem:[#allocation79_spill] sm:$0xff]  ;;  %v6052_v31 = vld [vmem:[#allocation80_spill] sm:$0xff] }
 0x16a   :  { %v3299_v56 = vpop.eup %3298 }
 0x16b   :  { %v1019_v12 = vmul.f32 %v3299_v56, %v3297_v1  ;;  %v4434_v13 = vpack.c.bf16 %v1018_v57, %v1018_v57  ;;  %v6053_v1 = vld [vmem:[#allocation81_spill] sm:$0xff]  ;;  %v6054_v56 = vld [vmem:[#allocation82_spill] sm:$0xff]  ;;  %v6055_v57 = vld [vmem:[#allocation83_spill] sm:$0xff] }
 0x16d   :  { %v1030_v55 = vpack.c.bf16 %v1019_v12, %v1019_v12  ;;  %v6056_v12 = vld [vmem:[#allocation84_spill] sm:$0xff] }
 0x16f   :  { %1063 = vmatprep.mubr.bf16.mxu0 %v1030_v55  ;;  %1104 = vmatprep.mubr.bf16.mxu1 %v1030_v55 }
 0x170   :  { %1064 = vmatmul.mubr.bf16.vlgmr.msra.gmra.mxu0 %v4434_v13  ;;  %1105 = vmatmul.mubr.bf16.vlgmr.msra.gmra.mxu1 %v4434_v13 }
 0x171   :  { %1114 = vmatpush1.bf16.msra.mxu0 %v6040_v17  ;;  %1155 = vmatpush1.bf16.msra.mxu1 %v6041_v50 }
 0x172   :  { %1145 = vmatprep.mubr.bf16.mxu0 %v1030_v55  ;;  %1186 = vmatprep.mubr.bf16.mxu1 %v1030_v55  ;;  %v6057_v55 = vld [vmem:[#allocation85_spill] sm:$0xff] }
 0x173   :  { %1115 = vmatprep.subr.bf16.mxu0 %v6042_v39  ;;  %1156 = vmatprep.subr.bf16.mxu1 %v6043_v25 }
 0x175   :  { %1116 = vmatpush1.bf16.msra.mxu0 %v6044_v34  ;;  %1157 = vmatpush1.bf16.msra.mxu1 %v6045_v32 }
 0x176   :  { %1117 = vmatprep.subr.bf16.mxu0 %v6046_v49  ;;  %1158 = vmatprep.subr.bf16.mxu1 %v6047_v23  ;;  %v6058_v23 = vld [vmem:[#allocation86_spill] sm:$0xff] }
 0x179   :  { %1118 = vmatpush1.bf16.msra.mxu0 %v6048_v33  ;;  %1159 = vmatpush1.bf16.msra.mxu1 %v6049_v58  ;;  %v6059_v33 = vld [vmem:[#allocation87_spill] sm:$0xff]  ;;  %v6060_v58 = vld [vmem:[#allocation88_spill] sm:$0xff] }
 0x17a   :  { %1119 = vmatprep.subr.bf16.mxu0 %v6050_v41  ;;  %1160 = vmatprep.subr.bf16.mxu1 %v6051_v40  ;;  %v6061_v41 = vld [vmem:[#allocation89_spill] sm:$0xff]  ;;  %v6062_v40 = vld [vmem:[#allocation90_spill] sm:$0xff] }
 0x17d   :  { %1120 = vmatpush1.bf16.msra.mxu0 %v6052_v31  ;;  %1161 = vmatpush1.bf16.msra.mxu1 %v6053_v1  ;;  %v6063_v31 = vld [vmem:[#allocation91_spill] sm:$0xff]  ;;  %v6064_v1 = vld [vmem:[#allocation92_spill] sm:$0xff] }
 0x17e   :  { %1121 = vmatprep.subr.bf16.mxu0 %v6054_v56  ;;  %1162 = vmatprep.subr.bf16.mxu1 %v6055_v57  ;;  %v6065_v56 = vld [vmem:[#allocation93_spill] sm:$0xff]  ;;  %v6066_v57 = vld [vmem:[#allocation94_spill] sm:$0xff] }
 0x181   :  { %1122 = vmatpush1.bf16.msra.mxu0 %v6056_v12  ;;  %1163 = vmatpush1.bf16.msra.mxu1 %v6057_v55  ;;  %v6067_v12 = vld [vmem:[#allocation95_spill] sm:$0xff]  ;;  %v6068_v55 = vld [vmem:[#allocation96_spill] sm:$0xff] }
 0x182   :  { %1123 = vmatprep.subr.bf16.mxu0 %v6058_v23  ;;  %1164 = vmatprep.subr.bf16.mxu1 %v6059_v33  ;;  %v6069_v23 = vld [vmem:[#allocation97_spill] sm:$0xff]  ;;  %v6070_v33 = vld [vmem:[#allocation98_spill] sm:$0xff] }
 0x185   :  { %1124 = vmatpush1.bf16.msra.mxu0 %v6060_v58  ;;  %1165 = vmatpush1.bf16.msra.mxu1 %v6061_v41  ;;  %v6071_v58 = vld [vmem:[#allocation99_spill] sm:$0xff]  ;;  %v6072_v41 = vld [vmem:[#allocation100_spill] sm:$0xff] }
 0x186   :  { %1125 = vmatprep.subr.bf16.mxu0 %v6062_v40  ;;  %1166 = vmatprep.subr.bf16.mxu1 %v6063_v31  ;;  %v6073_v40 = vld [vmem:[#allocation101_spill] sm:$0xff]  ;;  %v6074_v31 = vld [vmem:[#allocation102_spill] sm:$0xff] }
 0x189   :  { %1126 = vmatpush1.bf16.msra.mxu0 %v6064_v1  ;;  %1167 = vmatpush1.bf16.msra.mxu1 %v6065_v56  ;;  %v6075_v1 = vld [vmem:[#allocation103_spill] sm:$0xff]  ;;  %v6076_v56 = vld [vmem:[#allocation104_spill] sm:$0xff] }
 0x18a   :  { %1127 = vmatprep.subr.bf16.mxu0 %v6066_v57  ;;  %1168 = vmatprep.subr.bf16.mxu1 %v6067_v12  ;;  %v6077_v57 = vld [vmem:[#allocation105_spill] sm:$0xff]  ;;  %v6078_v12 = vld [vmem:[#allocation106_spill] sm:$0xff] }
 0x18d   :  { %1128 = vmatpush1.bf16.msra.mxu0 %v6068_v55  ;;  %1169 = vmatpush1.bf16.msra.mxu1 %v6069_v23  ;;  %v6079_v55 = vld [vmem:[#allocation107_spill] sm:$0xff]  ;;  %v6080_v23 = vld [vmem:[#allocation108_spill] sm:$0xff] }
 0x18e   :  { %1129 = vmatprep.subr.bf16.mxu0 %v6070_v33  ;;  %1170 = vmatprep.subr.bf16.mxu1 %v6071_v58  ;;  %v6081_v33 = vld [vmem:[#allocation109_spill] sm:$0xff]  ;;  %v6082_v58 = vld [vmem:[#allocation110_spill] sm:$0xff] }
 0x191   :  { %1130 = vmatpush2.bf16.msra.mxu0 %v6072_v41  ;;  %1171 = vmatpush2.bf16.msra.mxu1 %v6073_v40  ;;  %v6083_v41 = vld [vmem:[#allocation111_spill] sm:$0xff]  ;;  %v6084_v40 = vld [vmem:[#allocation112_spill] sm:$0xff] }
 0x192   :  { %1131 = vmatprep.subr.bf16.mxu0 %v6074_v31  ;;  %1172 = vmatprep.subr.bf16.mxu1 %v6075_v1  ;;  %v6085_v31 = vld [vmem:[#allocation113_spill] sm:$0xff]  ;;  %v6086_v1 = vld [vmem:[#allocation114_spill] sm:$0xff] }
 0x195   :  { %1132 = vmatpush2.bf16.msra.mxu0 %v6076_v56  ;;  %1173 = vmatpush2.bf16.msra.mxu1 %v6077_v57  ;;  %v6087_v56 = vld [vmem:[#allocation115_spill] sm:$0xff]  ;;  %v6088_v57 = vld [vmem:[#allocation116_spill] sm:$0xff] }
 0x196   :  { %1133 = vmatprep.subr.bf16.mxu0 %v6078_v12  ;;  %1174 = vmatprep.subr.bf16.mxu1 %v6079_v55  ;;  %v6089_v12 = vld [vmem:[#allocation117_spill] sm:$0xff]  ;;  %v6090_v55 = vld [vmem:[#allocation118_spill] sm:$0xff] }
 0x199   :  { %1134 = vmatpush2.bf16.msra.mxu0 %v6080_v23  ;;  %1175 = vmatpush2.bf16.msra.mxu1 %v6081_v33  ;;  %v6091_v23 = vld [vmem:[#allocation119_spill] sm:$0xff] }
 0x19a   :  { %1135 = vmatprep.subr.bf16.mxu0 %v6082_v58  ;;  %1176 = vmatprep.subr.bf16.mxu1 %v6083_v41 }
 0x19d   :  { %1136 = vmatpush2.bf16.msra.mxu0 %v6084_v40  ;;  %1177 = vmatpush2.bf16.msra.mxu1 %v6085_v31 }
 0x19e   :  { %1137 = vmatprep.subr.bf16.mxu0 %v6086_v1  ;;  %1178 = vmatprep.subr.bf16.mxu1 %v6087_v56 }
 0x1a1   :  { %1138 = vmatpush2.bf16.msra.mxu0 %v6088_v57  ;;  %1179 = vmatpush2.bf16.msra.mxu1 %v6089_v12 }
 0x1a2   :  { %1139 = vmatprep.subr.bf16.mxu0 %v6090_v55  ;;  %1180 = vmatprep.subr.bf16.mxu1 %v6091_v23 }
 0x1a5   :  { %1140 = vmatpush2.bf16.msra.mxu0 %v4291_v26  ;;  %1181 = vmatpush2.bf16.msra.mxu1 %v4295_v16 }
 0x1a6   :  { %1141 = vmatprep.subr.bf16.mxu0 %v4297_v14  ;;  %1182 = vmatprep.subr.bf16.mxu1 %v4300_v0 }
 0x1a9   :  { %1142 = vmatpush2.bf16.msra.mxu0 %v4315_v63  ;;  %1183 = vmatpush2.bf16.msra.mxu1 %v4319_v48 }
 0x1aa   :  { %1143 = vmatprep.subr.bf16.mxu0 %v4321_v47  ;;  %1184 = vmatprep.subr.bf16.mxu1 %v4324_v42 }
 0x1ad   :  { %1144 = vmatpush2.bf16.msra.mxu0 %v4327_v3  ;;  %1185 = vmatpush2.bf16.msra.mxu1 %v4331_v2 }
 0x1ae   :  { %1262 = vmatprep.subr.bf16.mxu0 %v3573_v4  ;;  %1303 = vmatprep.subr.bf16.mxu1 %v3586_v9 }
 0x1b0   :  { %1146 = vmatmul.mubr.bf16.vlgmr.msra.gmra.mxu0 %v4434_v13  ;;  %1187 = vmatmul.mubr.bf16.vlgmr.msra.gmra.mxu1 %v4434_v13  ;;  %v6092_v13 = vld [vmem:[#allocation35_spill] sm:$0xff] }
 0x1b1   :  { %1263 = vmatpush1.bf16.msra.mxu0 %v3578_v6  ;;  %1304 = vmatpush1.bf16.msra.mxu1 %v3588_v10 }
 0x1b2   :  { %1264 = vmatprep.subr.bf16.mxu0 %v3590_v11  ;;  %1305 = vmatprep.subr.bf16.mxu1 %v3602_v15 }
 0x1b5   :  { %1265 = vmatpush1.bf16.msra.mxu0 %v3615_v19  ;;  %1306 = vmatpush1.bf16.msra.mxu1 %v3619_v20 }
 0x1b6   :  { %1266 = vmatprep.subr.bf16.mxu0 %v3621_v21  ;;  %1307 = vmatprep.subr.bf16.mxu1 %v3624_v22 }
 0x1b9   :  { %1267 = vmatpush1.bf16.msra.mxu0 %v3639_v27  ;;  %1308 = vmatpush1.bf16.msra.mxu1 %v3643_v28 }
 0x1ba   :  { %1268 = vmatprep.subr.bf16.mxu0 %v3645_v29  ;;  %1309 = vmatprep.subr.bf16.mxu1 %v3648_v30 }
 0x1bd   :  { %1269 = vmatpush1.bf16.msra.mxu0 %v3663_v35  ;;  %1310 = vmatpush1.bf16.msra.mxu1 %v3667_v36 }
 0x1be   :  { %1270 = vmatprep.subr.bf16.mxu0 %v3669_v37  ;;  %1311 = vmatprep.subr.bf16.mxu1 %v3672_v38 }
 0x1c1   :  { %1271 = vmatpush1.bf16.msra.mxu0 %v3687_v43  ;;  %1312 = vmatpush1.bf16.msra.mxu1 %v3691_v44 }
 0x1c2   :  { %1272 = vmatprep.subr.bf16.mxu0 %v3693_v45  ;;  %1313 = vmatprep.subr.bf16.mxu1 %v3696_v46 }
 0x1c5   :  { %1273 = vmatpush1.bf16.msra.mxu0 %v3711_v51  ;;  %1314 = vmatpush1.bf16.msra.mxu1 %v3715_v52  ;;  %v6093_v52 = vld [vmem:[#allocation36_spill] sm:$0xff] }
 0x1c6   :  { %1274 = vmatprep.subr.bf16.mxu0 %v3717_v53  ;;  %1315 = vmatprep.subr.bf16.mxu1 %v3720_v54  ;;  %v6094_v53 = vld [vmem:[#allocation37_spill] sm:$0xff]  ;;  %v6095_v54 = vld [vmem:[#allocation38_spill] sm:$0xff] }
 0x1c9   :  { %1275 = vmatpush1.bf16.msra.mxu0 %v3735_v59  ;;  %1316 = vmatpush1.bf16.msra.mxu1 %v3739_v60  ;;  %v6096_v59 = vld [vmem:[#allocation39_spill] sm:$0xff]  ;;  %v6097_v60 = vld [vmem:[#allocation40_spill] sm:$0xff] }
 0x1ca   :  { %1276 = vmatprep.subr.bf16.mxu0 %v3741_v61  ;;  %1317 = vmatprep.subr.bf16.mxu1 %v3744_v62  ;;  %v6098_v61 = vld [vmem:[#allocation41_spill] sm:$0xff]  ;;  %v6099_v62 = vld [vmem:[#allocation42_spill] sm:$0xff] }
 0x1cd   :  { %1277 = vmatpush1.bf16.msra.mxu0 %v3759_v5  ;;  %1318 = vmatpush1.bf16.msra.mxu1 %v3763_v7  ;;  %v6100_v5 = vld [vmem:[#allocation43_spill] sm:$0xff]  ;;  %v6101_v7 = vld [vmem:[#allocation44_spill] sm:$0xff] }
 0x1ce   :  { %1278 = vmatprep.subr.bf16.mxu0 %v3765_v8  ;;  %1319 = vmatprep.subr.bf16.mxu1 %v6092_v13  ;;  %v6102_v8 = vld [vmem:[#allocation45_spill] sm:$0xff]  ;;  %v6103_v13 = vld [vmem:[#allocation46_spill] sm:$0xff] }
 0x1d1   :  { %1279 = vmatpush2.bf16.msra.mxu0 %v6093_v52  ;;  %1320 = vmatpush2.bf16.msra.mxu1 %v6094_v53  ;;  %v6104_v52 = vld [vmem:[#allocation47_spill] sm:$0xff]  ;;  %v6105_v53 = vld [vmem:[#allocation48_spill] sm:$0xff] }
 0x1d2   :  { %1280 = vmatprep.subr.bf16.mxu0 %v6095_v54  ;;  %1321 = vmatprep.subr.bf16.mxu1 %v6096_v59  ;;  %v6106_v54 = vld [vmem:[#allocation49_spill] sm:$0xff]  ;;  %v6107_v59 = vld [vmem:[#allocation50_spill] sm:$0xff] }
 0x1d5   :  { %1281 = vmatpush2.bf16.msra.mxu0 %v6097_v60  ;;  %1322 = vmatpush2.bf16.msra.mxu1 %v6098_v61  ;;  %v6108_v60 = vld [vmem:[#allocation51_spill] sm:$0xff]  ;;  %v6109_v61 = vld [vmem:[#allocation52_spill] sm:$0xff] }
 0x1d6   :  { %1282 = vmatprep.subr.bf16.mxu0 %v6099_v62  ;;  %1323 = vmatprep.subr.bf16.mxu1 %v6100_v5  ;;  %v6110_v62 = vld [vmem:[#allocation53_spill] sm:$0xff]  ;;  %v6111_v5 = vld [vmem:[#allocation54_spill] sm:$0xff] }
 0x1d9   :  { %1283 = vmatpush2.bf16.msra.mxu0 %v6101_v7  ;;  %1324 = vmatpush2.bf16.msra.mxu1 %v6102_v8  ;;  %v6112_v7 = vld [vmem:[#allocation55_spill] sm:$0xff]  ;;  %v6113_v8 = vld [vmem:[#allocation56_spill] sm:$0xff] }
 0x1da   :  { %1284 = vmatprep.subr.bf16.mxu0 %v6103_v13  ;;  %1325 = vmatprep.subr.bf16.mxu1 %v6104_v52  ;;  %v6114_v13 = vld [vmem:[#allocation57_spill] sm:$0xff]  ;;  %v6115_v52 = vld [vmem:[#allocation58_spill] sm:$0xff] }
 0x1dd   :  { %1285 = vmatpush2.bf16.msra.mxu0 %v6105_v53  ;;  %1326 = vmatpush2.bf16.msra.mxu1 %v6106_v54  ;;  %v6116_v53 = vld [vmem:[#allocation59_spill] sm:$0xff]  ;;  %v6117_v54 = vld [vmem:[#allocation60_spill] sm:$0xff] }
 0x1de   :  { %1286 = vmatprep.subr.bf16.mxu0 %v6107_v59  ;;  %1327 = vmatprep.subr.bf16.mxu1 %v6108_v60  ;;  %v6118_v59 = vld [vmem:[#allocation61_spill] sm:$0xff]  ;;  %v6119_v60 = vld [vmem:[#allocation62_spill] sm:$0xff] }
 0x1e1   :  { %1287 = vmatpush2.bf16.msra.mxu0 %v6109_v61  ;;  %1328 = vmatpush2.bf16.msra.mxu1 %v6110_v62  ;;  %v6120_v61 = vld [vmem:[#allocation63_spill] sm:$0xff]  ;;  %v6121_v62 = vld [vmem:[#allocation64_spill] sm:$0xff] }
 0x1e2   :  { %1288 = vmatprep.subr.bf16.mxu0 %v6111_v5  ;;  %1329 = vmatprep.subr.bf16.mxu1 %v6112_v7  ;;  %v6122_v5 = vld [vmem:[#allocation65_spill] sm:$0xff]  ;;  %v6123_v7 = vld [vmem:[#allocation66_spill] sm:$0xff] }
 0x1e5   :  { %1289 = vmatpush2.bf16.msra.mxu0 %v6113_v8  ;;  %1330 = vmatpush2.bf16.msra.mxu1 %v6114_v13  ;;  %v6124_v8 = vld [vmem:[#allocation67_spill] sm:$0xff] }
 0x1e6   :  { %1290 = vmatprep.subr.bf16.mxu0 %v6115_v52  ;;  %1331 = vmatprep.subr.bf16.mxu1 %v6116_v53 }
 0x1e9   :  { %1291 = vmatpush2.bf16.msra.mxu0 %v6117_v54  ;;  %1332 = vmatpush2.bf16.msra.mxu1 %v6118_v59 }
 0x1ea   :  { %1292 = vmatprep.subr.bf16.mxu0 %v6119_v60  ;;  %1333 = vmatprep.subr.bf16.mxu1 %v6120_v61  ;;  %v3066_v61 = vld [vmem:[%s5615_s0 + $0x40] sm:$0xff] }
 0x1ed   :  { %1293 = vmatpush2.bf16.msra.mxu0 %v6121_v62  ;;  %1334 = vmatpush2.bf16.msra.mxu1 %v6122_v5  ;;  %v3068_v5 = vld [vmem:[%s5615_s0 + $0x50] sm:$0xff] }
 0x1ee   :  { %1344 = vmatprep.subr.bf16.mxu0 %v6123_v7  ;;  %1385 = vmatprep.subr.bf16.mxu1 %v6124_v8  ;;  %v3067_v8 = vld [vmem:[%s5615_s0 + $0x48] sm:$0xff] }
 0x230   :  { %v1065_v13 = vpop.f32.mrf.mxu0  ;;  %v1106_v52 = vpop.f32.mrf.mxu1 }
 0x231   :  { %v1195_v7 = vadd.f32 %v3066_v61, %v1065_v13  ;;  %v1197_v62 = vadd.f32 %v3068_v5, %v1106_v52 }
 0x232   :  { %v1067_v51 = vpop.f32.mrf.mxu0  ;;  %v1108_v53 = vpop.f32.mrf.mxu1 }
 0x233   :  { %v3076_v60 = vmul.f32 -1.442695, %v1197_v62 }
 0x234   :  { %v1069_v46 = vpop.f32.mrf.mxu0  ;;  %v1110_v54 = vpop.f32.mrf.mxu1 }
 0x235   :  { %v3069_v46 = vld [vmem:[%s5615_s0 + $0x58] sm:$0xff]  ;;  %v3074_v54 = vmul.f32 -1.442695, %v1195_v7 }
 0x236   :  { %v1070_v45 = vpop.f32.mrf.mxu0  ;;  %v1111_v59 = vpop.f32.mrf.mxu1 }
 0x237   :  { %v1196_v45 = vadd.f32 %v3067_v8, %v1067_v51  ;;  %v1198_v59 = vadd.f32 %v3069_v46, %v1108_v53  ;;  %3300 = vpow2.f32 %v3074_v54  ;;  %v3070_v51 = vld [vmem:[%s5615_s0 + $0x60] sm:$0xff]  ;;  %v3072_v53 = vld [vmem:[%s5615_s0 + $0x70] sm:$0xff] }
 0x238   :  { %3302 = vpow2.f32 %v3076_v60 }
 0x239   :  { %v3075_v44 = vmul.f32 -1.442695, %v1196_v45  ;;  %v3077_v43 = vmul.f32 -1.442695, %v1198_v59 }
 0x23b   :  { %3304 = vpow2.f32 %v3075_v44 }
 0x23c   :  { %3306 = vpow2.f32 %v3077_v43  ;;  %v3071_v43 = vld [vmem:[%s5615_s0 + $0x68] sm:$0xff] }
 0x244   :  { %v3301_v38 = vpop.eup %3300 }
 0x245   :  { %v3303_v37 = vpop.eup %3302  ;;  %v1209_v35 = vadd.f32 1.0, %v3301_v38 }
 0x246   :  { %v1221_v52 = vadd.f32 1.0, %v3303_v37 }
 0x247   :  { %3308 = vrcp.f32 %v1209_v35 }
 0x248   :  { %v3305_v36 = vpop.eup %3304  ;;  %3310 = vrcp.f32 %v1221_v52 }
 0x249   :  { %v3307_v61 = vpop.eup %3306  ;;  %v1210_v5 = vadd.f32 1.0, %v3305_v36  ;;  %v3073_v36 = vld [vmem:[%s5615_s0 + $0x78] sm:$0xff] }
 0x24a   :  { %v1222_v62 = vadd.f32 1.0, %v3307_v61 }
 0x24b   :  { %3312 = vrcp.f32 %v1210_v5 }
 0x254   :  { %v3309_v29 = vpop.eup %3308 }
 0x255   :  { %v3311_v52 = vpop.eup %3310 }
 0x270   :  { %v1147_v60 = vpop.f32.mrf.mxu0  ;;  %v1188_v44 = vpop.f32.mrf.mxu1 }
 0x271   :  { %v1199_v37 = vadd.f32 %v3070_v51, %v1147_v60  ;;  %v1201_v38 = vadd.f32 %v3072_v53, %v1188_v44  ;;  %v3313_v51 = vpop.eup %3312  ;;  %v1241_v60 = vmul.f32 %v3311_v52, %v4428_v24  ;;  %v6126_v52 = vld [vmem:[#allocation76_spill] sm:$0xff] }
 0x272   :  { %v1149_v7 = vpop.f32.mrf.mxu0  ;;  %v1190_v8 = vpop.f32.mrf.mxu1 }
 0x273   :  { %3314 = vtanh.f32 %v1199_v37  ;;  %v3078_v13 = vmul.f32 -1.442695, %v1201_v38  ;;  %v1200_v35 = vadd.f32 %v3071_v43, %v1149_v7  ;;  %v1202_v46 = vadd.f32 %v3073_v36, %v1190_v8 }
 0x274   :  { %3316 = vrcp.f32 %v1222_v62  ;;  %v1151_v45 = vpop.f32.mrf.mxu0  ;;  %v1192_v54 = vpop.f32.mrf.mxu1 }
 0x275   :  { %3318 = vpow2.f32 %v3078_v13  ;;  %v3079_v59 = vmul.f32 -1.442695, %v1202_v46 }
 0x276   :  { %3320 = vtanh.f32 %v1200_v35  ;;  %v1152_v61 = vpop.f32.mrf.mxu0  ;;  %v1193_v30 = vpop.f32.mrf.mxu1 }
 0x277   :  { %3322 = vpow2.f32 %v3079_v59 }
 0x280   :  { %v3315_v53 = vpop.eup %3314 }
 0x281   :  { %v3317_v5 = vpop.eup %3316  ;;  %v1243_v44 = vmul.f32 %v3315_v53, %v3309_v29  ;;  %v6128_v53 = vld [vmem:[#allocation78_spill] sm:$0xff] }
 0x282   :  { %v3319_v37 = vpop.eup %3318  ;;  %v1242_v7 = vmul.f32 %v3317_v5, %v4431_v18  ;;  %v6125_v18 = vld [vmem:[#allocation75_spill] sm:$0xff] }
 0x283   :  { %v3321_v43 = vpop.eup %3320  ;;  %v4593_v36 = vadd.f32 %v1243_v44, %v1241_v60  ;;  %v1235_v62 = vadd.f32 1.0, %v3319_v37  ;;  %v6129_v5 = vld [vmem:[#allocation79_spill] sm:$0xff]  ;;  %v6130_v60 = vld [vmem:[#allocation80_spill] sm:$0xff]  ;;  %v6131_v44 = vld [vmem:[#allocation81_spill] sm:$0xff] }
 0x284   :  { %v3323_v38 = vpop.eup %3322  ;;  %v1244_v8 = vmul.f32 %v3321_v43, %v3313_v51  ;;  %v6127_v51 = vld [vmem:[#allocation77_spill] sm:$0xff]  ;;  %v6132_v37 = vld [vmem:[#allocation82_spill] sm:$0xff]  ;;  %v6133_v43 = vld [vmem:[#allocation83_spill] sm:$0xff] }
 0x285   :  { %3324 = vtanh.f32 %v4593_v36  ;;  %v1236_v30 = vadd.f32 1.0, %v3323_v38  ;;  %v6135_v38 = vld [vmem:[#allocation85_spill] sm:$0xff] }
 0x286   :  { %3326 = vrcp.f32 %v1235_v62  ;;  %v4597_v13 = vadd.f32 %v1244_v8, %v1242_v7  ;;  %v6134_v62 = vld [vmem:[#allocation84_spill] sm:$0xff]  ;;  %v6136_v7 = vld [vmem:[#allocation86_spill] sm:$0xff]  ;;  %v6137_v8 = vld [vmem:[#allocation87_spill] sm:$0xff] }
 0x287   :  { %3328 = vrcp.f32 %v1236_v30  ;;  %v6138_v30 = vld [vmem:[#allocation88_spill] sm:$0xff] }
 0x288   :  { %3330 = vtanh.f32 %v4597_v13 }
 0x292   :  { %v3325_v24 = vpop.eup %3324 }
 0x293   :  { %v3327_v29 = vpop.eup %3326 }
 0x294   :  { %v3329_v35 = vpop.eup %3328  ;;  %v1249_v45 = vmul.f32 %v3327_v29, %v3325_v24  ;;  %v6139_v24 = vld [vmem:[#allocation89_spill] sm:$0xff]  ;;  %v6140_v29 = vld [vmem:[#allocation90_spill] sm:$0xff] }
 0x295   :  { %v3331_v46 = vpop.eup %3330 }
 0x296   :  { %v1250_v54 = vmul.f32 %v3331_v46, %v3329_v35  ;;  %v4600_v61 = vpack.c.bf16 %v1249_v45, %v1249_v45  ;;  %v6141_v35 = vld [vmem:[#allocation91_spill] sm:$0xff]  ;;  %v6142_v46 = vld [vmem:[#allocation92_spill] sm:$0xff]  ;;  %v6143_v45 = vld [vmem:[#allocation93_spill] sm:$0xff] }
 0x298   :  { %v1261_v59 = vpack.c.bf16 %v1250_v54, %v1250_v54  ;;  %v6144_v54 = vld [vmem:[#allocation94_spill] sm:$0xff] }
 0x29a   :  { %1294 = vmatprep.mubr.bf16.mxu0 %v1261_v59  ;;  %1335 = vmatprep.mubr.bf16.mxu1 %v1261_v59 }
 0x29b   :  { %1295 = vmatmul.mubr.bf16.vlgmr.msra.gmra.mxu0 %v4600_v61  ;;  %1336 = vmatmul.mubr.bf16.vlgmr.msra.gmra.mxu1 %v4600_v61 }
 0x29c   :  { %1345 = vmatpush1.bf16.msra.mxu0 %v6040_v17  ;;  %1386 = vmatpush1.bf16.msra.mxu1 %v6041_v50 }
 0x29d   :  { %1376 = vmatprep.mubr.bf16.mxu0 %v1261_v59  ;;  %1417 = vmatprep.mubr.bf16.mxu1 %v1261_v59  ;;  %v6145_v59 = vld [vmem:[#allocation95_spill] sm:$0xff] }
 0x29e   :  { %1346 = vmatprep.subr.bf16.mxu0 %v6042_v39  ;;  %1387 = vmatprep.subr.bf16.mxu1 %v6043_v25 }
 0x2a0   :  { %1347 = vmatpush1.bf16.msra.mxu0 %v6044_v34  ;;  %1388 = vmatpush1.bf16.msra.mxu1 %v6045_v32 }
 0x2a1   :  { %1348 = vmatprep.subr.bf16.mxu0 %v6046_v49  ;;  %1389 = vmatprep.subr.bf16.mxu1 %v6125_v18 }
 0x2a4   :  { %1349 = vmatpush1.bf16.msra.mxu0 %v6126_v52  ;;  %1390 = vmatpush1.bf16.msra.mxu1 %v6127_v51 }
 0x2a5   :  { %1350 = vmatprep.subr.bf16.mxu0 %v6128_v53  ;;  %1391 = vmatprep.subr.bf16.mxu1 %v6129_v5 }
 0x2a8   :  { %1351 = vmatpush1.bf16.msra.mxu0 %v6130_v60  ;;  %1392 = vmatpush1.bf16.msra.mxu1 %v6131_v44 }
 0x2a9   :  { %1352 = vmatprep.subr.bf16.mxu0 %v6132_v37  ;;  %1393 = vmatprep.subr.bf16.mxu1 %v6133_v43 }
 0x2ac   :  { %1353 = vmatpush1.bf16.msra.mxu0 %v6134_v62  ;;  %1394 = vmatpush1.bf16.msra.mxu1 %v6135_v38  ;;  %v6146_v38 = vld [vmem:[#allocation96_spill] sm:$0xff] }
 0x2ad   :  { %1354 = vmatprep.subr.bf16.mxu0 %v6136_v7  ;;  %1395 = vmatprep.subr.bf16.mxu1 %v6137_v8  ;;  %v6147_v7 = vld [vmem:[#allocation97_spill] sm:$0xff]  ;;  %v6148_v8 = vld [vmem:[#allocation98_spill] sm:$0xff] }
 0x2b0   :  { %1355 = vmatpush1.bf16.msra.mxu0 %v6138_v30  ;;  %1396 = vmatpush1.bf16.msra.mxu1 %v6139_v24  ;;  %v6149_v30 = vld [vmem:[#allocation99_spill] sm:$0xff]  ;;  %v6150_v24 = vld [vmem:[#allocation100_spill] sm:$0xff] }
 0x2b1   :  { %1356 = vmatprep.subr.bf16.mxu0 %v6140_v29  ;;  %1397 = vmatprep.subr.bf16.mxu1 %v6141_v35  ;;  %v6151_v29 = vld [vmem:[#allocation101_spill] sm:$0xff]  ;;  %v6152_v35 = vld [vmem:[#allocation102_spill] sm:$0xff] }
 0x2b4   :  { %1357 = vmatpush1.bf16.msra.mxu0 %v6142_v46  ;;  %1398 = vmatpush1.bf16.msra.mxu1 %v6143_v45  ;;  %v6153_v46 = vld [vmem:[#allocation103_spill] sm:$0xff]  ;;  %v6154_v45 = vld [vmem:[#allocation104_spill] sm:$0xff] }
 0x2b5   :  { %1358 = vmatprep.subr.bf16.mxu0 %v6144_v54  ;;  %1399 = vmatprep.subr.bf16.mxu1 %v6145_v59  ;;  %v6155_v54 = vld [vmem:[#allocation105_spill] sm:$0xff]  ;;  %v6156_v59 = vld [vmem:[#allocation106_spill] sm:$0xff] }
 0x2b8   :  { %1359 = vmatpush1.bf16.msra.mxu0 %v6146_v38  ;;  %1400 = vmatpush1.bf16.msra.mxu1 %v6147_v7  ;;  %v6157_v38 = vld [vmem:[#allocation107_spill] sm:$0xff]  ;;  %v6158_v7 = vld [vmem:[#allocation108_spill] sm:$0xff] }
 0x2b9   :  { %1360 = vmatprep.subr.bf16.mxu0 %v6148_v8  ;;  %1401 = vmatprep.subr.bf16.mxu1 %v6149_v30 }
 0x2bc   :  { %1361 = vmatpush2.bf16.msra.mxu0 %v6150_v24  ;;  %1402 = vmatpush2.bf16.msra.mxu1 %v6151_v29 }
 0x2bd   :  { %1362 = vmatprep.subr.bf16.mxu0 %v6152_v35  ;;  %1403 = vmatprep.subr.bf16.mxu1 %v6153_v46 }
 0x2c0   :  { %1363 = vmatpush2.bf16.msra.mxu0 %v6154_v45  ;;  %1404 = vmatpush2.bf16.msra.mxu1 %v6155_v54 }
 0x2c1   :  { %1364 = vmatprep.subr.bf16.mxu0 %v6156_v59  ;;  %1405 = vmatprep.subr.bf16.mxu1 %v6157_v38 }
 0x2c4   :  { %1365 = vmatpush2.bf16.msra.mxu0 %v6158_v7  ;;  %1406 = vmatpush2.bf16.msra.mxu1 %v6081_v33 }
 0x2c5   :  { %1366 = vmatprep.subr.bf16.mxu0 %v6082_v58  ;;  %1407 = vmatprep.subr.bf16.mxu1 %v6083_v41 }
 0x2c8   :  { %1367 = vmatpush2.bf16.msra.mxu0 %v6084_v40  ;;  %1408 = vmatpush2.bf16.msra.mxu1 %v6085_v31 }
 0x2c9   :  { %1368 = vmatprep.subr.bf16.mxu0 %v6086_v1  ;;  %1409 = vmatprep.subr.bf16.mxu1 %v6087_v56 }
 0x2cc   :  { %1369 = vmatpush2.bf16.msra.mxu0 %v6088_v57  ;;  %1410 = vmatpush2.bf16.msra.mxu1 %v6089_v12 }
 0x2cd   :  { %1370 = vmatprep.subr.bf16.mxu0 %v6090_v55  ;;  %1411 = vmatprep.subr.bf16.mxu1 %v6091_v23 }
 0x2d0   :  { %1371 = vmatpush2.bf16.msra.mxu0 %v4291_v26  ;;  %1412 = vmatpush2.bf16.msra.mxu1 %v4295_v16 }
 0x2d1   :  { %1372 = vmatprep.subr.bf16.mxu0 %v4297_v14  ;;  %1413 = vmatprep.subr.bf16.mxu1 %v4300_v0 }
 0x2d4   :  { %1373 = vmatpush2.bf16.msra.mxu0 %v4315_v63  ;;  %1414 = vmatpush2.bf16.msra.mxu1 %v4319_v48 }
 0x2d5   :  { %1374 = vmatprep.subr.bf16.mxu0 %v4321_v47  ;;  %1415 = vmatprep.subr.bf16.mxu1 %v4324_v42 }
 0x2d8   :  { %1375 = vmatpush2.bf16.msra.mxu0 %v4327_v3  ;;  %1416 = vmatpush2.bf16.msra.mxu1 %v4331_v2 }
 0x2d9   :  { %1493 = vmatprep.subr.bf16.mxu0 %v3573_v4  ;;  %1534 = vmatprep.subr.bf16.mxu1 %v3586_v9 }
 0x2db   :  { %1377 = vmatmul.mubr.bf16.vlgmr.msra.gmra.mxu0 %v4600_v61  ;;  %1418 = vmatmul.mubr.bf16.vlgmr.msra.gmra.mxu1 %v4600_v61  ;;  %v6159_v61 = vld [vmem:[#allocation14_spill] sm:$0xff] }
 0x2dc   :  { %1494 = vmatpush1.bf16.msra.mxu0 %v3578_v6  ;;  %1535 = vmatpush1.bf16.msra.mxu1 %v3588_v10  ;;  %v6160_v6 = vld [vmem:[#allocation15_spill] sm:$0xff]  ;;  %v6161_v10 = vld [vmem:[#allocation16_spill] sm:$0xff] }
 0x2dd   :  { %1495 = vmatprep.subr.bf16.mxu0 %v3590_v11  ;;  %1536 = vmatprep.subr.bf16.mxu1 %v3602_v15  ;;  %v6162_v11 = vld [vmem:[#allocation17_spill] sm:$0xff]  ;;  %v6163_v15 = vld [vmem:[#allocation18_spill] sm:$0xff] }
 0x2e0   :  { %1496 = vmatpush1.bf16.msra.mxu0 %v3615_v19  ;;  %1537 = vmatpush1.bf16.msra.mxu1 %v3619_v20  ;;  %v6164_v19 = vld [vmem:[#allocation19_spill] sm:$0xff]  ;;  %v6165_v20 = vld [vmem:[#allocation20_spill] sm:$0xff] }
 0x2e1   :  { %1497 = vmatprep.subr.bf16.mxu0 %v3621_v21  ;;  %1538 = vmatprep.subr.bf16.mxu1 %v3624_v22  ;;  %v6166_v21 = vld [vmem:[#allocation21_spill] sm:$0xff]  ;;  %v6167_v22 = vld [vmem:[#allocation22_spill] sm:$0xff] }
 0x2e4   :  { %1498 = vmatpush1.bf16.msra.mxu0 %v3639_v27  ;;  %1539 = vmatpush1.bf16.msra.mxu1 %v3643_v28  ;;  %v6168_v27 = vld [vmem:[#allocation23_spill] sm:$0xff]  ;;  %v6169_v28 = vld [vmem:[#allocation24_spill] sm:$0xff] }
 0x2e5   :  { %1499 = vmatprep.subr.bf16.mxu0 %v6159_v61  ;;  %1540 = vmatprep.subr.bf16.mxu1 %v6160_v6  ;;  %v6170_v61 = vld [vmem:[#allocation25_spill] sm:$0xff]  ;;  %v6171_v6 = vld [vmem:[#allocation26_spill] sm:$0xff] }
 0x2e8   :  { %1500 = vmatpush1.bf16.msra.mxu0 %v6161_v10  ;;  %1541 = vmatpush1.bf16.msra.mxu1 %v6162_v11  ;;  %v6172_v10 = vld [vmem:[#allocation27_spill] sm:$0xff]  ;;  %v6173_v11 = vld [vmem:[#allocation28_spill] sm:$0xff] }
 0x2e9   :  { %1501 = vmatprep.subr.bf16.mxu0 %v6163_v15  ;;  %1542 = vmatprep.subr.bf16.mxu1 %v6164_v19  ;;  %v6174_v15 = vld [vmem:[#allocation29_spill] sm:$0xff]  ;;  %v6175_v19 = vld [vmem:[#allocation30_spill] sm:$0xff] }
 0x2ec   :  { %1502 = vmatpush1.bf16.msra.mxu0 %v6165_v20  ;;  %1543 = vmatpush1.bf16.msra.mxu1 %v6166_v21  ;;  %v6176_v20 = vld [vmem:[#allocation31_spill] sm:$0xff]  ;;  %v6177_v21 = vld [vmem:[#allocation32_spill] sm:$0xff] }
 0x2ed   :  { %1503 = vmatprep.subr.bf16.mxu0 %v6167_v22  ;;  %1544 = vmatprep.subr.bf16.mxu1 %v6168_v27  ;;  %v6178_v22 = vld [vmem:[#allocation33_spill] sm:$0xff]  ;;  %v6179_v27 = vld [vmem:[#allocation34_spill] sm:$0xff] }
 0x2f0   :  { %1504 = vmatpush1.bf16.msra.mxu0 %v6169_v28  ;;  %1545 = vmatpush1.bf16.msra.mxu1 %v6170_v61  ;;  %v6180_v28 = vld [vmem:[#allocation35_spill] sm:$0xff]  ;;  %v6181_v61 = vld [vmem:[#allocation36_spill] sm:$0xff] }
 0x2f1   :  { %1505 = vmatprep.subr.bf16.mxu0 %v6171_v6  ;;  %1546 = vmatprep.subr.bf16.mxu1 %v6172_v10  ;;  %v6182_v6 = vld [vmem:[#allocation37_spill] sm:$0xff]  ;;  %v6183_v10 = vld [vmem:[#allocation38_spill] sm:$0xff] }
 0x2f4   :  { %1506 = vmatpush1.bf16.msra.mxu0 %v6173_v11  ;;  %1547 = vmatpush1.bf16.msra.mxu1 %v6174_v15  ;;  %v6184_v11 = vld [vmem:[#allocation39_spill] sm:$0xff]  ;;  %v6185_v15 = vld [vmem:[#allocation40_spill] sm:$0xff] }
 0x2f5   :  { %1507 = vmatprep.subr.bf16.mxu0 %v6175_v19  ;;  %1548 = vmatprep.subr.bf16.mxu1 %v6176_v20  ;;  %v6186_v19 = vld [vmem:[#allocation41_spill] sm:$0xff]  ;;  %v6187_v20 = vld [vmem:[#allocation42_spill] sm:$0xff] }
 0x2f8   :  { %1508 = vmatpush1.bf16.msra.mxu0 %v6177_v21  ;;  %1549 = vmatpush1.bf16.msra.mxu1 %v6178_v22  ;;  %v6188_v21 = vld [vmem:[#allocation43_spill] sm:$0xff]  ;;  %v6189_v22 = vld [vmem:[#allocation44_spill] sm:$0xff] }
 0x2f9   :  { %1509 = vmatprep.subr.bf16.mxu0 %v6179_v27  ;;  %1550 = vmatprep.subr.bf16.mxu1 %v6180_v28  ;;  %v6190_v27 = vld [vmem:[#allocation45_spill] sm:$0xff]  ;;  %v6191_v28 = vld [vmem:[#allocation46_spill] sm:$0xff] }
 0x2fc   :  { %1510 = vmatpush2.bf16.msra.mxu0 %v6181_v61  ;;  %1551 = vmatpush2.bf16.msra.mxu1 %v6182_v6  ;;  %v6192_v61 = vld [vmem:[#allocation47_spill] sm:$0xff]  ;;  %v6193_v6 = vld [vmem:[#allocation48_spill] sm:$0xff] }
 0x2fd   :  { %1511 = vmatprep.subr.bf16.mxu0 %v6183_v10  ;;  %1552 = vmatprep.subr.bf16.mxu1 %v6184_v11  ;;  %v6194_v10 = vld [vmem:[#allocation49_spill] sm:$0xff]  ;;  %v6195_v11 = vld [vmem:[#allocation50_spill] sm:$0xff] }
 0x300   :  { %1512 = vmatpush2.bf16.msra.mxu0 %v6185_v15  ;;  %1553 = vmatpush2.bf16.msra.mxu1 %v6186_v19  ;;  %v6196_v15 = vld [vmem:[#allocation51_spill] sm:$0xff]  ;;  %v6197_v19 = vld [vmem:[#allocation52_spill] sm:$0xff] }
 0x301   :  { %1513 = vmatprep.subr.bf16.mxu0 %v6187_v20  ;;  %1554 = vmatprep.subr.bf16.mxu1 %v6188_v21  ;;  %v6198_v20 = vld [vmem:[#allocation53_spill] sm:$0xff]  ;;  %v6199_v21 = vld [vmem:[#allocation54_spill] sm:$0xff] }
 0x304   :  { %1514 = vmatpush2.bf16.msra.mxu0 %v6189_v22  ;;  %1555 = vmatpush2.bf16.msra.mxu1 %v6190_v27  ;;  %v6200_v22 = vld [vmem:[#allocation55_spill] sm:$0xff]  ;;  %v6201_v27 = vld [vmem:[#allocation56_spill] sm:$0xff] }
 0x305   :  { %1515 = vmatprep.subr.bf16.mxu0 %v6191_v28  ;;  %1556 = vmatprep.subr.bf16.mxu1 %v6192_v61  ;;  %v6202_v28 = vld [vmem:[#allocation57_spill] sm:$0xff]  ;;  %v6203_v61 = vld [vmem:[#allocation58_spill] sm:$0xff] }
 0x308   :  { %1516 = vmatpush2.bf16.msra.mxu0 %v6193_v6  ;;  %1557 = vmatpush2.bf16.msra.mxu1 %v6194_v10  ;;  %v6204_v6 = vld [vmem:[#allocation59_spill] sm:$0xff]  ;;  %v6205_v10 = vld [vmem:[#allocation60_spill] sm:$0xff] }
 0x309   :  { %1517 = vmatprep.subr.bf16.mxu0 %v6195_v11  ;;  %1558 = vmatprep.subr.bf16.mxu1 %v6196_v15  ;;  %v6206_v11 = vld [vmem:[#allocation61_spill] sm:$0xff]  ;;  %v6207_v15 = vld [vmem:[#allocation62_spill] sm:$0xff] }
 0x30c   :  { %1518 = vmatpush2.bf16.msra.mxu0 %v6197_v19  ;;  %1559 = vmatpush2.bf16.msra.mxu1 %v6198_v20  ;;  %v6208_v19 = vld [vmem:[#allocation63_spill] sm:$0xff]  ;;  %v6209_v20 = vld [vmem:[#allocation64_spill] sm:$0xff] }
 0x30d   :  { %1519 = vmatprep.subr.bf16.mxu0 %v6199_v21  ;;  %1560 = vmatprep.subr.bf16.mxu1 %v6200_v22  ;;  %v6210_v21 = vld [vmem:[#allocation65_spill] sm:$0xff]  ;;  %v6211_v22 = vld [vmem:[#allocation66_spill] sm:$0xff] }
 0x310   :  { %1520 = vmatpush2.bf16.msra.mxu0 %v6201_v27  ;;  %1561 = vmatpush2.bf16.msra.mxu1 %v6202_v28  ;;  %v6212_v27 = vld [vmem:[#allocation67_spill] sm:$0xff] }
 0x311   :  { %1521 = vmatprep.subr.bf16.mxu0 %v6203_v61  ;;  %1562 = vmatprep.subr.bf16.mxu1 %v6204_v6 }
 0x314   :  { %1522 = vmatpush2.bf16.msra.mxu0 %v6205_v10  ;;  %1563 = vmatpush2.bf16.msra.mxu1 %v6206_v11 }
 0x315   :  { %1523 = vmatprep.subr.bf16.mxu0 %v6207_v15  ;;  %1564 = vmatprep.subr.bf16.mxu1 %v6208_v19  ;;  %v3080_v19 = vld [vmem:[%s5615_s0 + $0x80] sm:$0xff] }
 0x318   :  { %1524 = vmatpush2.bf16.msra.mxu0 %v6209_v20  ;;  %1565 = vmatpush2.bf16.msra.mxu1 %v6210_v21  ;;  %v3082_v21 = vld [vmem:[%s5615_s0 + $0x90] sm:$0xff] }
 0x319   :  { %1575 = vmatprep.subr.bf16.mxu0 %v6211_v22  ;;  %1616 = vmatprep.subr.bf16.mxu1 %v6212_v27  ;;  %v3081_v27 = vld [vmem:[%s5615_s0 + $0x88] sm:$0xff] }
 0x35b   :  { %v1296_v28 = vpop.f32.mrf.mxu0  ;;  %v1337_v61 = vpop.f32.mrf.mxu1 }
 0x35c   :  { %v1426_v22 = vadd.f32 %v3080_v19, %v1296_v28  ;;  %v1428_v20 = vadd.f32 %v3082_v21, %v1337_v61 }
 0x35d   :  { %v1298_v9 = vpop.f32.mrf.mxu0  ;;  %v1339_v6 = vpop.f32.mrf.mxu1 }
 0x35e   :  { %v3090_v15 = vmul.f32 -1.442695, %v1428_v20 }
 0x35f   :  { %v1300_v4 = vpop.f32.mrf.mxu0  ;;  %v1341_v10 = vpop.f32.mrf.mxu1 }
 0x360   :  { %v3083_v4 = vld [vmem:[%s5615_s0 + $0x98] sm:$0xff]  ;;  %v1427_v10 = vadd.f32 %v3081_v27, %v1298_v9  ;;  %v3084_v9 = vld [vmem:[%s5615_s0 + $0xa0] sm:$0xff]  ;;  %v3085_v27 = vld [vmem:[%s5615_s0 + $0xa8] sm:$0xff] }
 0x361   :  { %v1301_v2 = vpop.f32.mrf.mxu0  ;;  %v1342_v11 = vpop.f32.mrf.mxu1 }
 0x362   :  { %v3088_v11 = vmul.f32 -1.442695, %v1426_v22  ;;  %v1429_v2 = vadd.f32 %v3083_v4, %v1339_v6  ;;  %v3089_v3 = vmul.f32 -1.442695, %v1427_v10  ;;  %v3086_v6 = vld [vmem:[%s5615_s0 + $0xb0] sm:$0xff] }
 0x364   :  { %3332 = vpow2.f32 %v3088_v11  ;;  %v3091_v42 = vmul.f32 -1.442695, %v1429_v2 }
 0x365   :  { %3334 = vpow2.f32 %v3090_v15 }
 0x366   :  { %3336 = vpow2.f32 %v3089_v3 }
 0x367   :  { %3338 = vpow2.f32 %v3091_v42  ;;  %v3087_v42 = vld [vmem:[%s5615_s0 + $0xb8] sm:$0xff] }
 0x371   :  { %v3333_v47 = vpop.eup %3332 }
 0x372   :  { %v3335_v48 = vpop.eup %3334  ;;  %v1440_v0 = vadd.f32 1.0, %v3333_v47 }
 0x373   :  { %v3337_v63 = vpop.eup %3336  ;;  %v1452_v21 = vadd.f32 1.0, %v3335_v48 }
 0x374   :  { %v3339_v19 = vpop.eup %3338  ;;  %v1441_v28 = vadd.f32 1.0, %v3337_v63  ;;  %3340 = vrcp.f32 %v1440_v0 }
 0x375   :  { %v1453_v20 = vadd.f32 1.0, %v3339_v19  ;;  %3342 = vrcp.f32 %v1452_v21 }
 0x376   :  { %3344 = vrcp.f32 %v1441_v28 }
 0x381   :  { %v3341_v16 = vpop.eup %3340 }
 0x382   :  { %v3343_v21 = vpop.eup %3342 }
 0x39b   :  { %v1378_v15 = vpop.f32.mrf.mxu0  ;;  %v1419_v22 = vpop.f32.mrf.mxu1 }
 0x39c   :  { %v1430_v47 = vadd.f32 %v3084_v9, %v1378_v15  ;;  %v1432_v48 = vadd.f32 %v3086_v6, %v1419_v22  ;;  %v3345_v9 = vpop.eup %3344  ;;  %v1472_v15 = vmul.f32 %v3343_v21, %v4593_v36  ;;  %v6214_v21 = vld [vmem:[#allocation86_spill] sm:$0xff] }
 0x39d   :  { %v1380_v3 = vpop.f32.mrf.mxu0  ;;  %v1421_v63 = vpop.f32.mrf.mxu1 }
 0x39e   :  { %3346 = vtanh.f32 %v1430_v47  ;;  %v3092_v61 = vmul.f32 -1.442695, %v1432_v48  ;;  %v1431_v0 = vadd.f32 %v3085_v27, %v1380_v3  ;;  %v1433_v4 = vadd.f32 %v3087_v42, %v1421_v63 }
 0x39f   :  { %3348 = vrcp.f32 %v1453_v20  ;;  %v1382_v10 = vpop.f32.mrf.mxu0  ;;  %v1423_v11 = vpop.f32.mrf.mxu1 }
 0x3a0   :  { %3350 = vpow2.f32 %v3092_v61  ;;  %v3093_v2 = vmul.f32 -1.442695, %v1433_v4 }
 0x3a1   :  { %3352 = vtanh.f32 %v1431_v0  ;;  %v1383_v19 = vpop.f32.mrf.mxu0  ;;  %v1424_v14 = vpop.f32.mrf.mxu1 }
 0x3a2   :  { %3354 = vpow2.f32 %v3093_v2 }
 0x3ab   :  { %v3347_v6 = vpop.eup %3346 }
 0x3ac   :  { %v3349_v28 = vpop.eup %3348  ;;  %v1474_v22 = vmul.f32 %v3347_v6, %v3341_v16  ;;  %v6216_v6 = vld [vmem:[#allocation88_spill] sm:$0xff] }
 0x3ad   :  { %v3351_v47 = vpop.eup %3350  ;;  %v1473_v3 = vmul.f32 %v3349_v28, %v4597_v13  ;;  %v6213_v13 = vld [vmem:[#allocation85_spill] sm:$0xff] }
 0x3ae   :  { %v3353_v27 = vpop.eup %3352  ;;  %v4759_v42 = vadd.f32 %v1474_v22, %v1472_v15  ;;  %v1466_v20 = vadd.f32 1.0, %v3351_v47  ;;  %v6217_v28 = vld [vmem:[#allocation89_spill] sm:$0xff]  ;;  %v6218_v15 = vld [vmem:[#allocation90_spill] sm:$0xff]  ;;  %v6219_v22 = vld [vmem:[#allocation91_spill] sm:$0xff] }
 0x3af   :  { %v3355_v48 = vpop.eup %3354  ;;  %v1475_v63 = vmul.f32 %v3353_v27, %v3345_v9  ;;  %v6215_v9 = vld [vmem:[#allocation87_spill] sm:$0xff]  ;;  %v6220_v47 = vld [vmem:[#allocation92_spill] sm:$0xff]  ;;  %v6221_v27 = vld [vmem:[#allocation93_spill] sm:$0xff] }
 0x3b0   :  { %3356 = vtanh.f32 %v4759_v42  ;;  %v1467_v14 = vadd.f32 1.0, %v3355_v48  ;;  %v6223_v48 = vld [vmem:[#allocation95_spill] sm:$0xff] }
 0x3b1   :  { %3358 = vrcp.f32 %v1466_v20  ;;  %v4763_v61 = vadd.f32 %v1475_v63, %v1473_v3  ;;  %v6222_v20 = vld [vmem:[#allocation94_spill] sm:$0xff]  ;;  %v6224_v3 = vld [vmem:[#allocation96_spill] sm:$0xff]  ;;  %v6225_v63 = vld [vmem:[#allocation97_spill] sm:$0xff] }
 0x3b2   :  { %3360 = vrcp.f32 %v1467_v14  ;;  %v6226_v14 = vld [vmem:[#allocation121_spill] sm:$0xff] }
 0x3b3   :  { %3362 = vtanh.f32 %v4763_v61 }
 0x3bd   :  { %v3357_v36 = vpop.eup %3356 }
 0x3be   :  { %v3359_v16 = vpop.eup %3358 }
 0x3bf   :  { %v3361_v0 = vpop.eup %3360  ;;  %v1480_v10 = vmul.f32 %v3359_v16, %v3357_v36  ;;  %v6227_v36 = vld [vmem:[#allocation122_spill] sm:$0xff]  ;;  %v6228_v16 = vld [vmem:[#allocation123_spill] sm:$0xff] }
 0x3c0   :  { %v3363_v4 = vpop.eup %3362 }
 0x3c1   :  { %v1481_v11 = vmul.f32 %v3363_v4, %v3361_v0  ;;  %v4766_v19 = vpack.c.bf16 %v1480_v10, %v1480_v10  ;;  %v6229_v0 = vld [vmem:[#allocation124_spill] sm:$0xff]  ;;  %v6230_v4 = vld [vmem:[#allocation125_spill] sm:$0xff]  ;;  %v6231_v10 = vld [vmem:[#allocation126_spill] sm:$0xff] }
 0x3c3   :  { %v1492_v2 = vpack.c.bf16 %v1481_v11, %v1481_v11  ;;  %v6232_v11 = vld [vmem:[#allocation127_spill] sm:$0xff] }
 0x3c5   :  { %1525 = vmatprep.mubr.bf16.mxu0 %v1492_v2  ;;  %1566 = vmatprep.mubr.bf16.mxu1 %v1492_v2 }
 0x3c6   :  { %1526 = vmatmul.mubr.bf16.vlgmr.msra.gmra.mxu0 %v4766_v19  ;;  %1567 = vmatmul.mubr.bf16.vlgmr.msra.gmra.mxu1 %v4766_v19 }
 0x3c7   :  { %1576 = vmatpush1.bf16.msra.mxu0 %v6040_v17  ;;  %1617 = vmatpush1.bf16.msra.mxu1 %v6041_v50 }
 0x3c8   :  { %1607 = vmatprep.mubr.bf16.mxu0 %v1492_v2  ;;  %1648 = vmatprep.mubr.bf16.mxu1 %v1492_v2  ;;  %v6233_v2 = vld [vmem:[#allocation128_spill] sm:$0xff] }
 0x3c9   :  { %1577 = vmatprep.subr.bf16.mxu0 %v6042_v39  ;;  %1618 = vmatprep.subr.bf16.mxu1 %v6043_v25 }
 0x3cb   :  { %1578 = vmatpush1.bf16.msra.mxu0 %v6044_v34  ;;  %1619 = vmatpush1.bf16.msra.mxu1 %v6045_v32 }
 0x3cc   :  { %1579 = vmatprep.subr.bf16.mxu0 %v6046_v49  ;;  %1620 = vmatprep.subr.bf16.mxu1 %v6125_v18 }
 0x3cf   :  { %1580 = vmatpush1.bf16.msra.mxu0 %v6126_v52  ;;  %1621 = vmatpush1.bf16.msra.mxu1 %v6127_v51 }
 0x3d0   :  { %1581 = vmatprep.subr.bf16.mxu0 %v6128_v53  ;;  %1622 = vmatprep.subr.bf16.mxu1 %v6129_v5 }
 0x3d3   :  { %1582 = vmatpush1.bf16.msra.mxu0 %v6130_v60  ;;  %1623 = vmatpush1.bf16.msra.mxu1 %v6131_v44 }
 0x3d4   :  { %1583 = vmatprep.subr.bf16.mxu0 %v6132_v37  ;;  %1624 = vmatprep.subr.bf16.mxu1 %v6133_v43 }
 0x3d7   :  { %1584 = vmatpush1.bf16.msra.mxu0 %v6134_v62  ;;  %1625 = vmatpush1.bf16.msra.mxu1 %v6213_v13 }
 0x3d8   :  { %1585 = vmatprep.subr.bf16.mxu0 %v6214_v21  ;;  %1626 = vmatprep.subr.bf16.mxu1 %v6215_v9 }
 0x3db   :  { %1586 = vmatpush1.bf16.msra.mxu0 %v6216_v6  ;;  %1627 = vmatpush1.bf16.msra.mxu1 %v6217_v28 }
 0x3dc   :  { %1587 = vmatprep.subr.bf16.mxu0 %v6218_v15  ;;  %1628 = vmatprep.subr.bf16.mxu1 %v6219_v22 }
 0x3df   :  { %1588 = vmatpush1.bf16.msra.mxu0 %v6220_v47  ;;  %1629 = vmatpush1.bf16.msra.mxu1 %v6221_v27 }
 0x3e0   :  { %1589 = vmatprep.subr.bf16.mxu0 %v6222_v20  ;;  %1630 = vmatprep.subr.bf16.mxu1 %v6223_v48 }
 0x3e3   :  { %1590 = vmatpush1.bf16.msra.mxu0 %v6224_v3  ;;  %1631 = vmatpush1.bf16.msra.mxu1 %v6225_v63 }
 0x3e4   :  { %1591 = vmatprep.subr.bf16.mxu0 %v6148_v8  ;;  %1632 = vmatprep.subr.bf16.mxu1 %v6149_v30 }
 0x3e7   :  { %1592 = vmatpush2.bf16.msra.mxu0 %v6150_v24  ;;  %1633 = vmatpush2.bf16.msra.mxu1 %v6151_v29 }
 0x3e8   :  { %1593 = vmatprep.subr.bf16.mxu0 %v6152_v35  ;;  %1634 = vmatprep.subr.bf16.mxu1 %v6153_v46 }
 0x3eb   :  { %1594 = vmatpush2.bf16.msra.mxu0 %v6154_v45  ;;  %1635 = vmatpush2.bf16.msra.mxu1 %v6155_v54 }
 0x3ec   :  { %1595 = vmatprep.subr.bf16.mxu0 %v6156_v59  ;;  %1636 = vmatprep.subr.bf16.mxu1 %v6157_v38 }
 0x3ef   :  { %1596 = vmatpush2.bf16.msra.mxu0 %v6158_v7  ;;  %1637 = vmatpush2.bf16.msra.mxu1 %v6081_v33 }
 0x3f0   :  { %1597 = vmatprep.subr.bf16.mxu0 %v6082_v58  ;;  %1638 = vmatprep.subr.bf16.mxu1 %v6083_v41 }
 0x3f3   :  { %1598 = vmatpush2.bf16.msra.mxu0 %v6084_v40  ;;  %1639 = vmatpush2.bf16.msra.mxu1 %v6085_v31 }
 0x3f4   :  { %1599 = vmatprep.subr.bf16.mxu0 %v6086_v1  ;;  %1640 = vmatprep.subr.bf16.mxu1 %v6087_v56 }
 0x3f7   :  { %1600 = vmatpush2.bf16.msra.mxu0 %v6088_v57  ;;  %1641 = vmatpush2.bf16.msra.mxu1 %v6089_v12 }
 0x3f8   :  { %1601 = vmatprep.subr.bf16.mxu0 %v6090_v55  ;;  %1642 = vmatprep.subr.bf16.mxu1 %v6091_v23  ;;  %v6234_v55 = vld [vmem:[#allocation129_spill] sm:$0xff]  ;;  %v6235_v23 = vld [vmem:[#allocation2_spill] sm:$0xff] }
 0x3fb   :  { %1602 = vmatpush2.bf16.msra.mxu0 %v4291_v26  ;;  %1643 = vmatpush2.bf16.msra.mxu1 %v6226_v14  ;;  %v6236_v26 = vld [vmem:[#allocation4_spill] sm:$0xff] }
 0x3fc   :  { %1603 = vmatprep.subr.bf16.mxu0 %v6227_v36  ;;  %1644 = vmatprep.subr.bf16.mxu1 %v6228_v16  ;;  %v6237_v16 = vld [vmem:[#allocation3_spill] sm:$0xff]  ;;  %v6246_v36 = vld [vmem:[#allocation13_spill] sm:$0xff] }
 0x3ff   :  { %1604 = vmatpush2.bf16.msra.mxu0 %v6229_v0  ;;  %1645 = vmatpush2.bf16.msra.mxu1 %v6230_v4  ;;  %v6238_v0 = vld [vmem:[#allocation5_spill] sm:$0xff]  ;;  %v6239_v4 = vld [vmem:[#allocation6_spill] sm:$0xff] }
 0x400   :  { %1605 = vmatprep.subr.bf16.mxu0 %v6231_v10  ;;  %1646 = vmatprep.subr.bf16.mxu1 %v6232_v11  ;;  %v6240_v10 = vld [vmem:[#allocation7_spill] sm:$0xff]  ;;  %v6241_v11 = vld [vmem:[#allocation8_spill] sm:$0xff] }
 0x403   :  { %1606 = vmatpush2.bf16.msra.mxu0 %v6233_v2  ;;  %1647 = vmatpush2.bf16.msra.mxu1 %v6234_v55  ;;  %v6242_v2 = vld [vmem:[#allocation9_spill] sm:$0xff]  ;;  %v6243_v55 = vld [vmem:[#allocation10_spill] sm:$0xff] }
 0x404   :  { %1724 = vmatprep.subr.bf16.mxu0 %v6235_v23  ;;  %1765 = vmatprep.subr.bf16.mxu1 %v6236_v26  ;;  %v6244_v23 = vld [vmem:[#allocation11_spill] sm:$0xff]  ;;  %v6245_v26 = vld [vmem:[#allocation12_spill] sm:$0xff] }
 0x406   :  { %1608 = vmatmul.mubr.bf16.vlgmr.msra.gmra.mxu0 %v4766_v19  ;;  %1649 = vmatmul.mubr.bf16.vlgmr.msra.gmra.mxu1 %v4766_v19  ;;  %v6247_v19 = vld [vmem:[#allocation14_spill] sm:$0xff] }
 0x407   :  { %1725 = vmatpush1.bf16.msra.mxu0 %v6237_v16  ;;  %1766 = vmatpush1.bf16.msra.mxu1 %v6238_v0  ;;  %v6248_v16 = vld [vmem:[#allocation15_spill] sm:$0xff]  ;;  %v6249_v0 = vld [vmem:[#allocation16_spill] sm:$0xff] }
 0x408   :  { %1726 = vmatprep.subr.bf16.mxu0 %v6239_v4  ;;  %1767 = vmatprep.subr.bf16.mxu1 %v6240_v10  ;;  %v6250_v4 = vld [vmem:[#allocation17_spill] sm:$0xff]  ;;  %v6251_v10 = vld [vmem:[#allocation18_spill] sm:$0xff] }
 0x40b   :  { %1727 = vmatpush1.bf16.msra.mxu0 %v6241_v11  ;;  %1768 = vmatpush1.bf16.msra.mxu1 %v6242_v2  ;;  %v6252_v11 = vld [vmem:[#allocation19_spill] sm:$0xff]  ;;  %v6253_v2 = vld [vmem:[#allocation20_spill] sm:$0xff] }
 0x40c   :  { %1728 = vmatprep.subr.bf16.mxu0 %v6243_v55  ;;  %1769 = vmatprep.subr.bf16.mxu1 %v6244_v23  ;;  %v6254_v55 = vld [vmem:[#allocation21_spill] sm:$0xff]  ;;  %v6255_v23 = vld [vmem:[#allocation22_spill] sm:$0xff] }
 0x40f   :  { %1729 = vmatpush1.bf16.msra.mxu0 %v6245_v26  ;;  %1770 = vmatpush1.bf16.msra.mxu1 %v6246_v36  ;;  %v6256_v26 = vld [vmem:[#allocation23_spill] sm:$0xff]  ;;  %v6257_v36 = vld [vmem:[#allocation24_spill] sm:$0xff] }
 0x410   :  { %1730 = vmatprep.subr.bf16.mxu0 %v6247_v19  ;;  %1771 = vmatprep.subr.bf16.mxu1 %v6248_v16  ;;  %v6258_v19 = vld [vmem:[#allocation25_spill] sm:$0xff]  ;;  %v6259_v16 = vld [vmem:[#allocation26_spill] sm:$0xff] }
 0x413   :  { %1731 = vmatpush1.bf16.msra.mxu0 %v6249_v0  ;;  %1772 = vmatpush1.bf16.msra.mxu1 %v6250_v4  ;;  %v6260_v0 = vld [vmem:[#allocation27_spill] sm:$0xff]  ;;  %v6261_v4 = vld [vmem:[#allocation28_spill] sm:$0xff] }
 0x414   :  { %1732 = vmatprep.subr.bf16.mxu0 %v6251_v10  ;;  %1773 = vmatprep.subr.bf16.mxu1 %v6252_v11  ;;  %v6262_v10 = vld [vmem:[#allocation29_spill] sm:$0xff]  ;;  %v6263_v11 = vld [vmem:[#allocation30_spill] sm:$0xff] }
 0x417   :  { %1733 = vmatpush1.bf16.msra.mxu0 %v6253_v2  ;;  %1774 = vmatpush1.bf16.msra.mxu1 %v6254_v55  ;;  %v6264_v2 = vld [vmem:[#allocation31_spill] sm:$0xff]  ;;  %v6265_v55 = vld [vmem:[#allocation32_spill] sm:$0xff] }
 0x418   :  { %1734 = vmatprep.subr.bf16.mxu0 %v6255_v23  ;;  %1775 = vmatprep.subr.bf16.mxu1 %v6256_v26  ;;  %v6266_v23 = vld [vmem:[#allocation33_spill] sm:$0xff]  ;;  %v6267_v26 = vld [vmem:[#allocation34_spill] sm:$0xff] }
 0x41b   :  { %1735 = vmatpush1.bf16.msra.mxu0 %v6257_v36  ;;  %1776 = vmatpush1.bf16.msra.mxu1 %v6258_v19  ;;  %v6268_v36 = vld [vmem:[#allocation35_spill] sm:$0xff]  ;;  %v6269_v19 = vld [vmem:[#allocation36_spill] sm:$0xff] }
 0x41c   :  { %1736 = vmatprep.subr.bf16.mxu0 %v6259_v16  ;;  %1777 = vmatprep.subr.bf16.mxu1 %v6260_v0  ;;  %v6270_v16 = vld [vmem:[#allocation37_spill] sm:$0xff]  ;;  %v6271_v0 = vld [vmem:[#allocation38_spill] sm:$0xff] }
 0x41f   :  { %1737 = vmatpush1.bf16.msra.mxu0 %v6261_v4  ;;  %1778 = vmatpush1.bf16.msra.mxu1 %v6262_v10  ;;  %v6272_v4 = vld [vmem:[#allocation39_spill] sm:$0xff]  ;;  %v6273_v10 = vld [vmem:[#allocation40_spill] sm:$0xff] }
 0x420   :  { %1738 = vmatprep.subr.bf16.mxu0 %v6263_v11  ;;  %1779 = vmatprep.subr.bf16.mxu1 %v6264_v2  ;;  %v6274_v11 = vld [vmem:[#allocation41_spill] sm:$0xff]  ;;  %v6275_v2 = vld [vmem:[#allocation42_spill] sm:$0xff] }
 0x423   :  { %1739 = vmatpush1.bf16.msra.mxu0 %v6265_v55  ;;  %1780 = vmatpush1.bf16.msra.mxu1 %v6266_v23  ;;  %v6276_v55 = vld [vmem:[#allocation43_spill] sm:$0xff]  ;;  %v6277_v23 = vld [vmem:[#allocation44_spill] sm:$0xff] }
 0x424   :  { %1740 = vmatprep.subr.bf16.mxu0 %v6267_v26  ;;  %1781 = vmatprep.subr.bf16.mxu1 %v6268_v36  ;;  %v6278_v26 = vld [vmem:[#allocation45_spill] sm:$0xff]  ;;  %v6279_v36 = vld [vmem:[#allocation46_spill] sm:$0xff] }
 0x427   :  { %1741 = vmatpush2.bf16.msra.mxu0 %v6269_v19  ;;  %1782 = vmatpush2.bf16.msra.mxu1 %v6270_v16  ;;  %v6280_v19 = vld [vmem:[#allocation47_spill] sm:$0xff]  ;;  %v6281_v16 = vld [vmem:[#allocation48_spill] sm:$0xff] }
 0x428   :  { %1742 = vmatprep.subr.bf16.mxu0 %v6271_v0  ;;  %1783 = vmatprep.subr.bf16.mxu1 %v6272_v4  ;;  %v6282_v0 = vld [vmem:[#allocation49_spill] sm:$0xff]  ;;  %v6283_v4 = vld [vmem:[#allocation50_spill] sm:$0xff] }
 0x42b   :  { %1743 = vmatpush2.bf16.msra.mxu0 %v6273_v10  ;;  %1784 = vmatpush2.bf16.msra.mxu1 %v6274_v11  ;;  %v6284_v10 = vld [vmem:[#allocation51_spill] sm:$0xff]  ;;  %v6285_v11 = vld [vmem:[#allocation52_spill] sm:$0xff] }
 0x42c   :  { %1744 = vmatprep.subr.bf16.mxu0 %v6275_v2  ;;  %1785 = vmatprep.subr.bf16.mxu1 %v6276_v55  ;;  %v6286_v2 = vld [vmem:[#allocation53_spill] sm:$0xff]  ;;  %v6287_v55 = vld [vmem:[#allocation54_spill] sm:$0xff] }
 0x42f   :  { %1745 = vmatpush2.bf16.msra.mxu0 %v6277_v23  ;;  %1786 = vmatpush2.bf16.msra.mxu1 %v6278_v26  ;;  %v6288_v23 = vld [vmem:[#allocation55_spill] sm:$0xff]  ;;  %v6289_v26 = vld [vmem:[#allocation56_spill] sm:$0xff] }
 0x430   :  { %1746 = vmatprep.subr.bf16.mxu0 %v6279_v36  ;;  %1787 = vmatprep.subr.bf16.mxu1 %v6280_v19  ;;  %v6290_v36 = vld [vmem:[#allocation57_spill] sm:$0xff]  ;;  %v6291_v19 = vld [vmem:[#allocation58_spill] sm:$0xff] }
 0x433   :  { %1747 = vmatpush2.bf16.msra.mxu0 %v6281_v16  ;;  %1788 = vmatpush2.bf16.msra.mxu1 %v6282_v0  ;;  %v6292_v16 = vld [vmem:[#allocation59_spill] sm:$0xff]  ;;  %v6293_v0 = vld [vmem:[#allocation60_spill] sm:$0xff] }
 0x434   :  { %1748 = vmatprep.subr.bf16.mxu0 %v6283_v4  ;;  %1789 = vmatprep.subr.bf16.mxu1 %v6284_v10  ;;  %v6294_v4 = vld [vmem:[#allocation61_spill] sm:$0xff]  ;;  %v6295_v10 = vld [vmem:[#allocation62_spill] sm:$0xff] }
 0x437   :  { %1749 = vmatpush2.bf16.msra.mxu0 %v6285_v11  ;;  %1790 = vmatpush2.bf16.msra.mxu1 %v6286_v2  ;;  %v6296_v11 = vld [vmem:[#allocation63_spill] sm:$0xff]  ;;  %v6297_v2 = vld [vmem:[#allocation64_spill] sm:$0xff] }
 0x438   :  { %1750 = vmatprep.subr.bf16.mxu0 %v6287_v55  ;;  %1791 = vmatprep.subr.bf16.mxu1 %v6288_v23  ;;  %v6298_v55 = vld [vmem:[#allocation65_spill] sm:$0xff]  ;;  %v6299_v23 = vld [vmem:[#allocation66_spill] sm:$0xff] }
 0x43b   :  { %1751 = vmatpush2.bf16.msra.mxu0 %v6289_v26  ;;  %1792 = vmatpush2.bf16.msra.mxu1 %v6290_v36  ;;  %v6300_v26 = vld [vmem:[#allocation67_spill] sm:$0xff] }
 0x43c   :  { %1752 = vmatprep.subr.bf16.mxu0 %v6291_v19  ;;  %1793 = vmatprep.subr.bf16.mxu1 %v6292_v16 }
 0x43f   :  { %1753 = vmatpush2.bf16.msra.mxu0 %v6293_v0  ;;  %1794 = vmatpush2.bf16.msra.mxu1 %v6294_v4 }
 0x440   :  { %1754 = vmatprep.subr.bf16.mxu0 %v6295_v10  ;;  %1795 = vmatprep.subr.bf16.mxu1 %v6296_v11  ;;  %v3094_v11 = vld [vmem:[%s5615_s0 + $0xc0] sm:$0xff] }
 0x443   :  { %1755 = vmatpush2.bf16.msra.mxu0 %v6297_v2  ;;  %1796 = vmatpush2.bf16.msra.mxu1 %v6298_v55  ;;  %v3096_v55 = vld [vmem:[%s5615_s0 + $0xd0] sm:$0xff] }
 0x444   :  { %1806 = vmatprep.subr.bf16.mxu0 %v6299_v23  ;;  %1847 = vmatprep.subr.bf16.mxu1 %v6300_v26  ;;  %v3095_v26 = vld [vmem:[%s5615_s0 + $0xc8] sm:$0xff] }
 0x486   :  { %v1527_v36 = vpop.f32.mrf.mxu0  ;;  %v1568_v19 = vpop.f32.mrf.mxu1 }
 0x487   :  { %v1657_v23 = vadd.f32 %v3094_v11, %v1527_v36  ;;  %v1659_v2 = vadd.f32 %v3096_v55, %v1568_v19 }
 0x488   :  { %v1529_v14 = vpop.f32.mrf.mxu0  ;;  %v1570_v16 = vpop.f32.mrf.mxu1 }
 0x489   :  { %v3104_v10 = vmul.f32 -1.442695, %v1659_v2 }
 0x48a   :  { %v1531_v12 = vpop.f32.mrf.mxu0  ;;  %v1572_v0 = vpop.f32.mrf.mxu1 }
 0x48b   :  { %v3097_v12 = vld [vmem:[%s5615_s0 + $0xd8] sm:$0xff]  ;;  %v3102_v0 = vmul.f32 -1.442695, %v1657_v23  ;;  %v3100_v23 = vld [vmem:[%s5615_s0 + $0xf0] sm:$0xff] }
 0x48c   :  { %v1532_v57 = vpop.f32.mrf.mxu0  ;;  %v1573_v4 = vpop.f32.mrf.mxu1 }
 0x48d   :  { %v1658_v57 = vadd.f32 %v3095_v26, %v1529_v14  ;;  %v1660_v4 = vadd.f32 %v3097_v12, %v1570_v16  ;;  %3364 = vpow2.f32 %v3102_v0  ;;  %v3098_v26 = vld [vmem:[%s5615_s0 + $0xe0] sm:$0xff] }
 0x48e   :  { %3366 = vpow2.f32 %v3104_v10 }
 0x48f   :  { %v3103_v56 = vmul.f32 -1.442695, %v1658_v57  ;;  %v3105_v1 = vmul.f32 -1.442695, %v1660_v4 }
 0x491   :  { %3368 = vpow2.f32 %v3103_v56 }
 0x492   :  { %3370 = vpow2.f32 %v3105_v1  ;;  %v3099_v1 = vld [vmem:[%s5615_s0 + $0xe8] sm:$0xff] }
 0x49a   :  { %v3365_v31 = vpop.eup %3364 }
 0x49b   :  { %v3367_v40 = vpop.eup %3366  ;;  %v1671_v58 = vadd.f32 1.0, %v3365_v31 }
 0x49c   :  { %v1683_v55 = vadd.f32 1.0, %v3367_v40 }
 0x49d   :  { %3372 = vrcp.f32 %v1671_v58 }
 0x49e   :  { %v3369_v41 = vpop.eup %3368  ;;  %3374 = vrcp.f32 %v1683_v55 }
 0x49f   :  { %v3371_v36 = vpop.eup %3370  ;;  %v1672_v11 = vadd.f32 1.0, %v3369_v41  ;;  %v3101_v41 = vld [vmem:[%s5615_s0 + $0xf8] sm:$0xff] }
 0x4a0   :  { %v1684_v14 = vadd.f32 1.0, %v3371_v36 }
 0x4a1   :  { %3376 = vrcp.f32 %v1672_v11 }
 0x4aa   :  { %v3373_v7 = vpop.eup %3372 }
 0x4ab   :  { %v3375_v55 = vpop.eup %3374 }
 0x4c6   :  { %v1609_v16 = vpop.f32.mrf.mxu0  ;;  %v1650_v56 = vpop.f32.mrf.mxu1 }
 0x4c7   :  { %v1661_v40 = vadd.f32 %v3098_v26, %v1609_v16  ;;  %v1663_v31 = vadd.f32 %v3100_v23, %v1650_v56  ;;  %v3377_v26 = vpop.eup %3376  ;;  %v1703_v16 = vmul.f32 %v3375_v55, %v4759_v42  ;;  %v6302_v55 = vld [vmem:[#allocation109_spill] sm:$0xff] }
 0x4c8   :  { %v1611_v10 = vpop.f32.mrf.mxu0  ;;  %v1652_v2 = vpop.f32.mrf.mxu1 }
 0x4c9   :  { %3378 = vtanh.f32 %v1661_v40  ;;  %v3106_v19 = vmul.f32 -1.442695, %v1663_v31  ;;  %v1662_v58 = vadd.f32 %v3099_v1, %v1611_v10  ;;  %v1664_v12 = vadd.f32 %v3101_v41, %v1652_v2 }
 0x4ca   :  { %3380 = vrcp.f32 %v1684_v14  ;;  %v1613_v57 = vpop.f32.mrf.mxu0  ;;  %v1654_v0 = vpop.f32.mrf.mxu1 }
 0x4cb   :  { %3382 = vpow2.f32 %v3106_v19  ;;  %v3107_v4 = vmul.f32 -1.442695, %v1664_v12 }
 0x4cc   :  { %3384 = vtanh.f32 %v1662_v58  ;;  %v1614_v36 = vpop.f32.mrf.mxu0  ;;  %v1655_v33 = vpop.f32.mrf.mxu1 }
 0x4cd   :  { %3386 = vpow2.f32 %v3107_v4 }
 0x4d6   :  { %v3379_v23 = vpop.eup %3378 }
 0x4d7   :  { %v3381_v11 = vpop.eup %3380  ;;  %v1705_v56 = vmul.f32 %v3379_v23, %v3373_v7  ;;  %v6304_v23 = vld [vmem:[#allocation111_spill] sm:$0xff] }
 0x4d8   :  { %v3383_v40 = vpop.eup %3382  ;;  %v1704_v10 = vmul.f32 %v3381_v11, %v4763_v61  ;;  %v6301_v61 = vld [vmem:[#allocation108_spill] sm:$0xff] }
 0x4d9   :  { %v3385_v1 = vpop.eup %3384  ;;  %v4925_v41 = vadd.f32 %v1705_v56, %v1703_v16  ;;  %v1697_v14 = vadd.f32 1.0, %v3383_v40  ;;  %v6305_v11 = vld [vmem:[#allocation112_spill] sm:$0xff]  ;;  %v6306_v16 = vld [vmem:[#allocation113_spill] sm:$0xff]  ;;  %v6307_v56 = vld [vmem:[#allocation114_spill] sm:$0xff] }
 0x4da   :  { %v3387_v31 = vpop.eup %3386  ;;  %v1706_v2 = vmul.f32 %v3385_v1, %v3377_v26  ;;  %v6303_v26 = vld [vmem:[#allocation110_spill] sm:$0xff]  ;;  %v6308_v40 = vld [vmem:[#allocation115_spill] sm:$0xff]  ;;  %v6309_v1 = vld [vmem:[#allocation116_spill] sm:$0xff] }
 0x4db   :  { %3388 = vtanh.f32 %v4925_v41  ;;  %v1698_v33 = vadd.f32 1.0, %v3387_v31  ;;  %v6311_v31 = vld [vmem:[#allocation118_spill] sm:$0xff] }
 0x4dc   :  { %3390 = vrcp.f32 %v1697_v14  ;;  %v4929_v19 = vadd.f32 %v1706_v2, %v1704_v10  ;;  %v6310_v14 = vld [vmem:[#allocation117_spill] sm:$0xff]  ;;  %v6312_v10 = vld [vmem:[#allocation119_spill] sm:$0xff]  ;;  %v6313_v2 = vld [vmem:[#allocation120_spill] sm:$0xff] }
 0x4dd   :  { %3392 = vrcp.f32 %v1698_v33  ;;  %v6314_v33 = vld [vmem:[#allocation121_spill] sm:$0xff] }
 0x4de   :  { %3394 = vtanh.f32 %v4929_v19 }
 0x4e8   :  { %v3389_v42 = vpop.eup %3388 }
 0x4e9   :  { %v3391_v7 = vpop.eup %3390 }
 0x4ea   :  { %v3393_v58 = vpop.eup %3392  ;;  %v1711_v57 = vmul.f32 %v3391_v7, %v3389_v42  ;;  %v6315_v42 = vld [vmem:[#allocation122_spill] sm:$0xff]  ;;  %v6316_v7 = vld [vmem:[#allocation123_spill] sm:$0xff] }
 0x4eb   :  { %v3395_v12 = vpop.eup %3394 }
 0x4ec   :  { %v1712_v0 = vmul.f32 %v3395_v12, %v3393_v58  ;;  %v4932_v36 = vpack.c.bf16 %v1711_v57, %v1711_v57  ;;  %v6317_v58 = vld [vmem:[#allocation124_spill] sm:$0xff]  ;;  %v6318_v12 = vld [vmem:[#allocation125_spill] sm:$0xff]  ;;  %v6319_v57 = vld [vmem:[#allocation126_spill] sm:$0xff] }
 0x4ee   :  { %v1723_v4 = vpack.c.bf16 %v1712_v0, %v1712_v0  ;;  %v6320_v0 = vld [vmem:[#allocation127_spill] sm:$0xff] }
 0x4f0   :  { %1756 = vmatprep.mubr.bf16.mxu0 %v1723_v4  ;;  %1797 = vmatprep.mubr.bf16.mxu1 %v1723_v4 }
 0x4f1   :  { %1757 = vmatmul.mubr.bf16.vlgmr.msra.gmra.mxu0 %v4932_v36  ;;  %1798 = vmatmul.mubr.bf16.vlgmr.msra.gmra.mxu1 %v4932_v36 }
 0x4f2   :  { %1807 = vmatpush1.bf16.msra.mxu0 %v6040_v17  ;;  %1848 = vmatpush1.bf16.msra.mxu1 %v6041_v50 }
 0x4f3   :  { %1838 = vmatprep.mubr.bf16.mxu0 %v1723_v4  ;;  %1879 = vmatprep.mubr.bf16.mxu1 %v1723_v4  ;;  %v6321_v4 = vld [vmem:[#allocation128_spill] sm:$0xff] }
 0x4f4   :  { %1808 = vmatprep.subr.bf16.mxu0 %v6042_v39  ;;  %1849 = vmatprep.subr.bf16.mxu1 %v6043_v25 }
 0x4f6   :  { %1809 = vmatpush1.bf16.msra.mxu0 %v6044_v34  ;;  %1850 = vmatpush1.bf16.msra.mxu1 %v6045_v32 }
 0x4f7   :  { %1810 = vmatprep.subr.bf16.mxu0 %v6046_v49  ;;  %1851 = vmatprep.subr.bf16.mxu1 %v6125_v18 }
 0x4fa   :  { %1811 = vmatpush1.bf16.msra.mxu0 %v6126_v52  ;;  %1852 = vmatpush1.bf16.msra.mxu1 %v6127_v51 }
 0x4fb   :  { %1812 = vmatprep.subr.bf16.mxu0 %v6128_v53  ;;  %1853 = vmatprep.subr.bf16.mxu1 %v6129_v5 }
 0x4fe   :  { %1813 = vmatpush1.bf16.msra.mxu0 %v6130_v60  ;;  %1854 = vmatpush1.bf16.msra.mxu1 %v6131_v44 }
 0x4ff   :  { %1814 = vmatprep.subr.bf16.mxu0 %v6132_v37  ;;  %1855 = vmatprep.subr.bf16.mxu1 %v6133_v43 }
 0x502   :  { %1815 = vmatpush1.bf16.msra.mxu0 %v6134_v62  ;;  %1856 = vmatpush1.bf16.msra.mxu1 %v6213_v13 }
 0x503   :  { %1816 = vmatprep.subr.bf16.mxu0 %v6214_v21  ;;  %1857 = vmatprep.subr.bf16.mxu1 %v6215_v9 }
 0x506   :  { %1817 = vmatpush1.bf16.msra.mxu0 %v6216_v6  ;;  %1858 = vmatpush1.bf16.msra.mxu1 %v6217_v28 }
 0x507   :  { %1818 = vmatprep.subr.bf16.mxu0 %v6218_v15  ;;  %1859 = vmatprep.subr.bf16.mxu1 %v6219_v22 }
 0x50a   :  { %1819 = vmatpush1.bf16.msra.mxu0 %v6220_v47  ;;  %1860 = vmatpush1.bf16.msra.mxu1 %v6221_v27 }
 0x50b   :  { %1820 = vmatprep.subr.bf16.mxu0 %v6222_v20  ;;  %1861 = vmatprep.subr.bf16.mxu1 %v6223_v48 }
 0x50e   :  { %1821 = vmatpush1.bf16.msra.mxu0 %v6224_v3  ;;  %1862 = vmatpush1.bf16.msra.mxu1 %v6225_v63 }
 0x50f   :  { %1822 = vmatprep.subr.bf16.mxu0 %v6148_v8  ;;  %1863 = vmatprep.subr.bf16.mxu1 %v6149_v30 }
 0x512   :  { %1823 = vmatpush2.bf16.msra.mxu0 %v6150_v24  ;;  %1864 = vmatpush2.bf16.msra.mxu1 %v6151_v29 }
 0x513   :  { %1824 = vmatprep.subr.bf16.mxu0 %v6152_v35  ;;  %1865 = vmatprep.subr.bf16.mxu1 %v6153_v46 }
 0x516   :  { %1825 = vmatpush2.bf16.msra.mxu0 %v6154_v45  ;;  %1866 = vmatpush2.bf16.msra.mxu1 %v6155_v54 }
 0x517   :  { %1826 = vmatprep.subr.bf16.mxu0 %v6156_v59  ;;  %1867 = vmatprep.subr.bf16.mxu1 %v6157_v38 }
 0x51a   :  { %1827 = vmatpush2.bf16.msra.mxu0 %v6301_v61  ;;  %1868 = vmatpush2.bf16.msra.mxu1 %v6302_v55 }
 0x51b   :  { %1828 = vmatprep.subr.bf16.mxu0 %v6303_v26  ;;  %1869 = vmatprep.subr.bf16.mxu1 %v6304_v23 }
 0x51e   :  { %1829 = vmatpush2.bf16.msra.mxu0 %v6305_v11  ;;  %1870 = vmatpush2.bf16.msra.mxu1 %v6306_v16 }
 0x51f   :  { %1830 = vmatprep.subr.bf16.mxu0 %v6307_v56  ;;  %1871 = vmatprep.subr.bf16.mxu1 %v6308_v40 }
 0x522   :  { %1831 = vmatpush2.bf16.msra.mxu0 %v6309_v1  ;;  %1872 = vmatpush2.bf16.msra.mxu1 %v6310_v14 }
 0x523   :  { %1832 = vmatprep.subr.bf16.mxu0 %v6311_v31  ;;  %1873 = vmatprep.subr.bf16.mxu1 %v6312_v10  ;;  %v6322_v31 = vld [vmem:[#allocation129_spill] sm:$0xff]  ;;  %v6323_v10 = vld [vmem:[#allocation2_spill] sm:$0xff] }
 0x526   :  { %1833 = vmatpush2.bf16.msra.mxu0 %v6313_v2  ;;  %1874 = vmatpush2.bf16.msra.mxu1 %v6314_v33  ;;  %v6324_v2 = vld [vmem:[#allocation4_spill] sm:$0xff] }
 0x527   :  { %1834 = vmatprep.subr.bf16.mxu0 %v6315_v42  ;;  %1875 = vmatprep.subr.bf16.mxu1 %v6316_v7  ;;  %v6325_v7 = vld [vmem:[#allocation3_spill] sm:$0xff]  ;;  %v6334_v42 = vld [vmem:[#allocation13_spill] sm:$0xff] }
 0x52a   :  { %1835 = vmatpush2.bf16.msra.mxu0 %v6317_v58  ;;  %1876 = vmatpush2.bf16.msra.mxu1 %v6318_v12  ;;  %v6326_v58 = vld [vmem:[#allocation5_spill] sm:$0xff]  ;;  %v6327_v12 = vld [vmem:[#allocation6_spill] sm:$0xff] }
 0x52b   :  { %1836 = vmatprep.subr.bf16.mxu0 %v6319_v57  ;;  %1877 = vmatprep.subr.bf16.mxu1 %v6320_v0  ;;  %v6328_v57 = vld [vmem:[#allocation7_spill] sm:$0xff]  ;;  %v6329_v0 = vld [vmem:[#allocation8_spill] sm:$0xff] }
 0x52e   :  { %1837 = vmatpush2.bf16.msra.mxu0 %v6321_v4  ;;  %1878 = vmatpush2.bf16.msra.mxu1 %v6322_v31  ;;  %v6330_v4 = vld [vmem:[#allocation9_spill] sm:$0xff]  ;;  %v6331_v31 = vld [vmem:[#allocation10_spill] sm:$0xff] }
 0x52f   :  { %1955 = vmatprep.subr.bf16.mxu0 %v6323_v10  ;;  %1996 = vmatprep.subr.bf16.mxu1 %v6324_v2  ;;  %v6332_v10 = vld [vmem:[#allocation11_spill] sm:$0xff]  ;;  %v6333_v2 = vld [vmem:[#allocation12_spill] sm:$0xff] }
 0x531   :  { %1839 = vmatmul.mubr.bf16.vlgmr.msra.gmra.mxu0 %v4932_v36  ;;  %1880 = vmatmul.mubr.bf16.vlgmr.msra.gmra.mxu1 %v4932_v36  ;;  %v6335_v36 = vld [vmem:[#allocation14_spill] sm:$0xff] }
 0x532   :  { %1956 = vmatpush1.bf16.msra.mxu0 %v6325_v7  ;;  %1997 = vmatpush1.bf16.msra.mxu1 %v6326_v58  ;;  %v6336_v7 = vld [vmem:[#allocation15_spill] sm:$0xff]  ;;  %v6337_v58 = vld [vmem:[#allocation16_spill] sm:$0xff] }
 0x533   :  { %1957 = vmatprep.subr.bf16.mxu0 %v6327_v12  ;;  %1998 = vmatprep.subr.bf16.mxu1 %v6328_v57  ;;  %v6338_v12 = vld [vmem:[#allocation17_spill] sm:$0xff]  ;;  %v6339_v57 = vld [vmem:[#allocation18_spill] sm:$0xff] }
 0x536   :  { %1958 = vmatpush1.bf16.msra.mxu0 %v6329_v0  ;;  %1999 = vmatpush1.bf16.msra.mxu1 %v6330_v4  ;;  %v6340_v0 = vld [vmem:[#allocation19_spill] sm:$0xff]  ;;  %v6341_v4 = vld [vmem:[#allocation20_spill] sm:$0xff] }
 0x537   :  { %1959 = vmatprep.subr.bf16.mxu0 %v6331_v31  ;;  %2000 = vmatprep.subr.bf16.mxu1 %v6332_v10  ;;  %v6342_v31 = vld [vmem:[#allocation21_spill] sm:$0xff]  ;;  %v6343_v10 = vld [vmem:[#allocation22_spill] sm:$0xff] }
 0x53a   :  { %1960 = vmatpush1.bf16.msra.mxu0 %v6333_v2  ;;  %2001 = vmatpush1.bf16.msra.mxu1 %v6334_v42  ;;  %v6344_v2 = vld [vmem:[#allocation23_spill] sm:$0xff]  ;;  %v6345_v42 = vld [vmem:[#allocation24_spill] sm:$0xff] }
 0x53b   :  { %1961 = vmatprep.subr.bf16.mxu0 %v6335_v36  ;;  %2002 = vmatprep.subr.bf16.mxu1 %v6336_v7  ;;  %v6346_v36 = vld [vmem:[#allocation25_spill] sm:$0xff]  ;;  %v6347_v7 = vld [vmem:[#allocation26_spill] sm:$0xff] }
 0x53e   :  { %1962 = vmatpush1.bf16.msra.mxu0 %v6337_v58  ;;  %2003 = vmatpush1.bf16.msra.mxu1 %v6338_v12  ;;  %v6348_v58 = vld [vmem:[#allocation27_spill] sm:$0xff]  ;;  %v6349_v12 = vld [vmem:[#allocation28_spill] sm:$0xff] }
 0x53f   :  { %1963 = vmatprep.subr.bf16.mxu0 %v6339_v57  ;;  %2004 = vmatprep.subr.bf16.mxu1 %v6340_v0  ;;  %v6350_v57 = vld [vmem:[#allocation29_spill] sm:$0xff]  ;;  %v6351_v0 = vld [vmem:[#allocation30_spill] sm:$0xff] }
 0x542   :  { %1964 = vmatpush1.bf16.msra.mxu0 %v6341_v4  ;;  %2005 = vmatpush1.bf16.msra.mxu1 %v6342_v31  ;;  %v6352_v4 = vld [vmem:[#allocation31_spill] sm:$0xff]  ;;  %v6353_v31 = vld [vmem:[#allocation32_spill] sm:$0xff] }
 0x543   :  { %1965 = vmatprep.subr.bf16.mxu0 %v6343_v10  ;;  %2006 = vmatprep.subr.bf16.mxu1 %v6344_v2  ;;  %v6354_v10 = vld [vmem:[#allocation33_spill] sm:$0xff]  ;;  %v6355_v2 = vld [vmem:[#allocation34_spill] sm:$0xff] }
 0x546   :  { %1966 = vmatpush1.bf16.msra.mxu0 %v6345_v42  ;;  %2007 = vmatpush1.bf16.msra.mxu1 %v6346_v36  ;;  %v6356_v42 = vld [vmem:[#allocation35_spill] sm:$0xff]  ;;  %v6357_v36 = vld [vmem:[#allocation36_spill] sm:$0xff] }
 0x547   :  { %1967 = vmatprep.subr.bf16.mxu0 %v6347_v7  ;;  %2008 = vmatprep.subr.bf16.mxu1 %v6348_v58  ;;  %v6358_v7 = vld [vmem:[#allocation37_spill] sm:$0xff]  ;;  %v6359_v58 = vld [vmem:[#allocation38_spill] sm:$0xff] }
 0x54a   :  { %1968 = vmatpush1.bf16.msra.mxu0 %v6349_v12  ;;  %2009 = vmatpush1.bf16.msra.mxu1 %v6350_v57  ;;  %v6360_v12 = vld [vmem:[#allocation39_spill] sm:$0xff]  ;;  %v6361_v57 = vld [vmem:[#allocation40_spill] sm:$0xff] }
 0x54b   :  { %1969 = vmatprep.subr.bf16.mxu0 %v6351_v0  ;;  %2010 = vmatprep.subr.bf16.mxu1 %v6352_v4  ;;  %v6362_v0 = vld [vmem:[#allocation41_spill] sm:$0xff]  ;;  %v6363_v4 = vld [vmem:[#allocation42_spill] sm:$0xff] }
 0x54e   :  { %1970 = vmatpush1.bf16.msra.mxu0 %v6353_v31  ;;  %2011 = vmatpush1.bf16.msra.mxu1 %v6354_v10  ;;  %v6364_v31 = vld [vmem:[#allocation43_spill] sm:$0xff]  ;;  %v6365_v10 = vld [vmem:[#allocation44_spill] sm:$0xff] }
 0x54f   :  { %1971 = vmatprep.subr.bf16.mxu0 %v6355_v2  ;;  %2012 = vmatprep.subr.bf16.mxu1 %v6356_v42  ;;  %v6366_v2 = vld [vmem:[#allocation45_spill] sm:$0xff]  ;;  %v6367_v42 = vld [vmem:[#allocation46_spill] sm:$0xff] }
 0x552   :  { %1972 = vmatpush2.bf16.msra.mxu0 %v6357_v36  ;;  %2013 = vmatpush2.bf16.msra.mxu1 %v6358_v7  ;;  %v6368_v36 = vld [vmem:[#allocation47_spill] sm:$0xff]  ;;  %v6369_v7 = vld [vmem:[#allocation48_spill] sm:$0xff] }
 0x553   :  { %1973 = vmatprep.subr.bf16.mxu0 %v6359_v58  ;;  %2014 = vmatprep.subr.bf16.mxu1 %v6360_v12  ;;  %v6370_v58 = vld [vmem:[#allocation49_spill] sm:$0xff]  ;;  %v6371_v12 = vld [vmem:[#allocation50_spill] sm:$0xff] }
 0x556   :  { %1974 = vmatpush2.bf16.msra.mxu0 %v6361_v57  ;;  %2015 = vmatpush2.bf16.msra.mxu1 %v6362_v0  ;;  %v6372_v57 = vld [vmem:[#allocation51_spill] sm:$0xff]  ;;  %v6373_v0 = vld [vmem:[#allocation52_spill] sm:$0xff] }
 0x557   :  { %1975 = vmatprep.subr.bf16.mxu0 %v6363_v4  ;;  %2016 = vmatprep.subr.bf16.mxu1 %v6364_v31  ;;  %v6374_v4 = vld [vmem:[#allocation53_spill] sm:$0xff]  ;;  %v6375_v31 = vld [vmem:[#allocation54_spill] sm:$0xff] }
 0x55a   :  { %1976 = vmatpush2.bf16.msra.mxu0 %v6365_v10  ;;  %2017 = vmatpush2.bf16.msra.mxu1 %v6366_v2  ;;  %v6376_v10 = vld [vmem:[#allocation55_spill] sm:$0xff]  ;;  %v6377_v2 = vld [vmem:[#allocation56_spill] sm:$0xff] }
 0x55b   :  { %1977 = vmatprep.subr.bf16.mxu0 %v6367_v42  ;;  %2018 = vmatprep.subr.bf16.mxu1 %v6368_v36  ;;  %v6378_v42 = vld [vmem:[#allocation57_spill] sm:$0xff]  ;;  %v6379_v36 = vld [vmem:[#allocation58_spill] sm:$0xff] }
 0x55e   :  { %1978 = vmatpush2.bf16.msra.mxu0 %v6369_v7  ;;  %2019 = vmatpush2.bf16.msra.mxu1 %v6370_v58  ;;  %v6380_v7 = vld [vmem:[#allocation59_spill] sm:$0xff]  ;;  %v6381_v58 = vld [vmem:[#allocation60_spill] sm:$0xff] }
 0x55f   :  { %1979 = vmatprep.subr.bf16.mxu0 %v6371_v12  ;;  %2020 = vmatprep.subr.bf16.mxu1 %v6372_v57  ;;  %v6382_v12 = vld [vmem:[#allocation61_spill] sm:$0xff]  ;;  %v6383_v57 = vld [vmem:[#allocation62_spill] sm:$0xff] }
 0x562   :  { %1980 = vmatpush2.bf16.msra.mxu0 %v6373_v0  ;;  %2021 = vmatpush2.bf16.msra.mxu1 %v6374_v4  ;;  %v6384_v0 = vld [vmem:[#allocation63_spill] sm:$0xff]  ;;  %v6385_v4 = vld [vmem:[#allocation64_spill] sm:$0xff] }
 0x563   :  { %1981 = vmatprep.subr.bf16.mxu0 %v6375_v31  ;;  %2022 = vmatprep.subr.bf16.mxu1 %v6376_v10  ;;  %v6386_v31 = vld [vmem:[#allocation65_spill] sm:$0xff]  ;;  %v6387_v10 = vld [vmem:[#allocation66_spill] sm:$0xff] }
 0x566   :  { %1982 = vmatpush2.bf16.msra.mxu0 %v6377_v2  ;;  %2023 = vmatpush2.bf16.msra.mxu1 %v6378_v42  ;;  %v6388_v2 = vld [vmem:[#allocation67_spill] sm:$0xff] }
 0x567   :  { %1983 = vmatprep.subr.bf16.mxu0 %v6379_v36  ;;  %2024 = vmatprep.subr.bf16.mxu1 %v6380_v7 }
 0x56a   :  { %1984 = vmatpush2.bf16.msra.mxu0 %v6381_v58  ;;  %2025 = vmatpush2.bf16.msra.mxu1 %v6382_v12 }
 0x56b   :  { %1985 = vmatprep.subr.bf16.mxu0 %v6383_v57  ;;  %2026 = vmatprep.subr.bf16.mxu1 %v6384_v0  ;;  %v3108_v0 = vld [vmem:[%s5615_s0 + $0x100] sm:$0xff] }
 0x56e   :  { %1986 = vmatpush2.bf16.msra.mxu0 %v6385_v4  ;;  %2027 = vmatpush2.bf16.msra.mxu1 %v6386_v31  ;;  %v3110_v31 = vld [vmem:[%s5615_s0 + $0x110] sm:$0xff] }
 0x56f   :  { %2037 = vmatprep.subr.bf16.mxu0 %v6387_v10  ;;  %2078 = vmatprep.subr.bf16.mxu1 %v6388_v2  ;;  %v3109_v2 = vld [vmem:[%s5615_s0 + $0x108] sm:$0xff] }
 0x5b1   :  { %v1758_v42 = vpop.f32.mrf.mxu0  ;;  %v1799_v36 = vpop.f32.mrf.mxu1 }
 0x5b2   :  { %v1888_v10 = vadd.f32 %v3108_v0, %v1758_v42  ;;  %v1890_v4 = vadd.f32 %v3110_v31, %v1799_v36 }
 0x5b3   :  { %v1760_v33 = vpop.f32.mrf.mxu0  ;;  %v1801_v7 = vpop.f32.mrf.mxu1 }
 0x5b4   :  { %v3118_v57 = vmul.f32 -1.442695, %v1890_v4 }
 0x5b5   :  { %v1762_v14 = vpop.f32.mrf.mxu0  ;;  %v1803_v58 = vpop.f32.mrf.mxu1 }
 0x5b6   :  { %v3111_v14 = vld [vmem:[%s5615_s0 + $0x118] sm:$0xff]  ;;  %v3116_v58 = vmul.f32 -1.442695, %v1888_v10  ;;  %v3114_v10 = vld [vmem:[%s5615_s0 + $0x130] sm:$0xff] }
 0x5b7   :  { %v1763_v1 = vpop.f32.mrf.mxu0  ;;  %v1804_v12 = vpop.f32.mrf.mxu1 }
 0x5b8   :  { %v1889_v1 = vadd.f32 %v3109_v2, %v1760_v33  ;;  %v1891_v12 = vadd.f32 %v3111_v14, %v1801_v7  ;;  %3396 = vpow2.f32 %v3116_v58  ;;  %v3112_v2 = vld [vmem:[%s5615_s0 + $0x120] sm:$0xff] }
 0x5b9   :  { %3398 = vpow2.f32 %v3118_v57 }
 0x5ba   :  { %v3117_v40 = vmul.f32 -1.442695, %v1889_v1  ;;  %v3119_v56 = vmul.f32 -1.442695, %v1891_v12 }
 0x5bc   :  { %3400 = vpow2.f32 %v3117_v40 }
 0x5bd   :  { %3402 = vpow2.f32 %v3119_v56  ;;  %v3113_v56 = vld [vmem:[%s5615_s0 + $0x128] sm:$0xff] }
 0x5c5   :  { %v3397_v16 = vpop.eup %3396 }
 0x5c6   :  { %v3399_v11 = vpop.eup %3398  ;;  %v1902_v26 = vadd.f32 1.0, %v3397_v16 }
 0x5c7   :  { %v1914_v31 = vadd.f32 1.0, %v3399_v11 }
 0x5c8   :  { %3404 = vrcp.f32 %v1902_v26 }
 0x5c9   :  { %v3401_v23 = vpop.eup %3400  ;;  %3406 = vrcp.f32 %v1914_v31 }
 0x5ca   :  { %v3403_v42 = vpop.eup %3402  ;;  %v1903_v0 = vadd.f32 1.0, %v3401_v23  ;;  %v3115_v23 = vld [vmem:[%s5615_s0 + $0x138] sm:$0xff] }
 0x5cb   :  { %v1915_v33 = vadd.f32 1.0, %v3403_v42 }
 0x5cc   :  { %3408 = vrcp.f32 %v1903_v0 }
 0x5d5   :  { %v3405_v61 = vpop.eup %3404 }
 0x5d6   :  { %v3407_v31 = vpop.eup %3406 }
 0x5f1   :  { %v1840_v7 = vpop.f32.mrf.mxu0  ;;  %v1881_v40 = vpop.f32.mrf.mxu1 }
 0x5f2   :  { %v1892_v11 = vadd.f32 %v3112_v2, %v1840_v7  ;;  %v1894_v16 = vadd.f32 %v3114_v10, %v1881_v40  ;;  %v3409_v2 = vpop.eup %3408  ;;  %v1934_v7 = vmul.f32 %v3407_v31, %v4925_v41  ;;  %v6390_v31 = vld [vmem:[#allocation109_spill] sm:$0xff] }
 0x5f3   :  { %v1842_v57 = vpop.f32.mrf.mxu0  ;;  %v1883_v4 = vpop.f32.mrf.mxu1 }
 0x5f4   :  { %3410 = vtanh.f32 %v1892_v11  ;;  %v3120_v36 = vmul.f32 -1.442695, %v1894_v16  ;;  %v1893_v26 = vadd.f32 %v3113_v56, %v1842_v57  ;;  %v1895_v14 = vadd.f32 %v3115_v23, %v1883_v4 }
 0x5f5   :  { %3412 = vrcp.f32 %v1915_v33  ;;  %v1844_v1 = vpop.f32.mrf.mxu0  ;;  %v1885_v58 = vpop.f32.mrf.mxu1 }
 0x5f6   :  { %3414 = vpow2.f32 %v3120_v36  ;;  %v3121_v12 = vmul.f32 -1.442695, %v1895_v14 }
 0x5f7   :  { %3416 = vtanh.f32 %v1893_v26  ;;  %v1845_v42 = vpop.f32.mrf.mxu0  ;;  %v1886_v55 = vpop.f32.mrf.mxu1 }
 0x5f8   :  { %3418 = vpow2.f32 %v3121_v12 }
 0x601   :  { %v3411_v10 = vpop.eup %3410 }
 0x602   :  { %v3413_v0 = vpop.eup %3412  ;;  %v1936_v40 = vmul.f32 %v3411_v10, %v3405_v61  ;;  %v6392_v10 = vld [vmem:[#allocation111_spill] sm:$0xff] }
 0x603   :  { %v3415_v11 = vpop.eup %3414  ;;  %v1935_v57 = vmul.f32 %v3413_v0, %v4929_v19  ;;  %v6389_v19 = vld [vmem:[#allocation108_spill] sm:$0xff] }
 0x604   :  { %v3417_v56 = vpop.eup %3416  ;;  %v5091_v23 = vadd.f32 %v1936_v40, %v1934_v7  ;;  %v1928_v33 = vadd.f32 1.0, %v3415_v11  ;;  %v6393_v0 = vld [vmem:[#allocation112_spill] sm:$0xff]  ;;  %v6394_v7 = vld [vmem:[#allocation113_spill] sm:$0xff]  ;;  %v6395_v40 = vld [vmem:[#allocation114_spill] sm:$0xff] }
 0x605   :  { %v3419_v16 = vpop.eup %3418  ;;  %v1937_v4 = vmul.f32 %v3417_v56, %v3409_v2  ;;  %v6391_v2 = vld [vmem:[#allocation110_spill] sm:$0xff]  ;;  %v6396_v11 = vld [vmem:[#allocation115_spill] sm:$0xff]  ;;  %v6397_v56 = vld [vmem:[#allocation116_spill] sm:$0xff] }
 0x606   :  { %3420 = vtanh.f32 %v5091_v23  ;;  %v1929_v55 = vadd.f32 1.0, %v3419_v16  ;;  %v6399_v16 = vld [vmem:[#allocation118_spill] sm:$0xff] }
 0x607   :  { %3422 = vrcp.f32 %v1928_v33  ;;  %v5095_v36 = vadd.f32 %v1937_v4, %v1935_v57  ;;  %v6398_v33 = vld [vmem:[#allocation117_spill] sm:$0xff]  ;;  %v6400_v57 = vld [vmem:[#allocation119_spill] sm:$0xff]  ;;  %v6401_v4 = vld [vmem:[#allocation120_spill] sm:$0xff] }
 0x608   :  { %3424 = vrcp.f32 %v1929_v55  ;;  %v6402_v55 = vld [vmem:[#allocation121_spill] sm:$0xff] }
 0x609   :  { %3426 = vtanh.f32 %v5095_v36 }
 0x613   :  { %v3421_v41 = vpop.eup %3420 }
 0x614   :  { %v3423_v61 = vpop.eup %3422 }
 0x615   :  { %v3425_v26 = vpop.eup %3424  ;;  %v1942_v1 = vmul.f32 %v3423_v61, %v3421_v41  ;;  %v6403_v41 = vld [vmem:[#allocation122_spill] sm:$0xff]  ;;  %v6404_v61 = vld [vmem:[#allocation123_spill] sm:$0xff] }
 0x616   :  { %v3427_v14 = vpop.eup %3426 }
 0x617   :  { %v1943_v58 = vmul.f32 %v3427_v14, %v3425_v26  ;;  %v5098_v42 = vpack.c.bf16 %v1942_v1, %v1942_v1  ;;  %v6405_v26 = vld [vmem:[#allocation124_spill] sm:$0xff]  ;;  %v6406_v14 = vld [vmem:[#allocation125_spill] sm:$0xff]  ;;  %v6407_v1 = vld [vmem:[#allocation126_spill] sm:$0xff] }
 0x619   :  { %v1954_v12 = vpack.c.bf16 %v1943_v58, %v1943_v58  ;;  %v6408_v58 = vld [vmem:[#allocation127_spill] sm:$0xff] }
 0x61b   :  { %1987 = vmatprep.mubr.bf16.mxu0 %v1954_v12  ;;  %2028 = vmatprep.mubr.bf16.mxu1 %v1954_v12 }
 0x61c   :  { %1988 = vmatmul.mubr.bf16.vlgmr.msra.gmra.mxu0 %v5098_v42  ;;  %2029 = vmatmul.mubr.bf16.vlgmr.msra.gmra.mxu1 %v5098_v42 }
 0x61d   :  { %2038 = vmatpush1.bf16.msra.mxu0 %v6040_v17  ;;  %2079 = vmatpush1.bf16.msra.mxu1 %v6041_v50 }
 0x61e   :  { %2069 = vmatprep.mubr.bf16.mxu0 %v1954_v12  ;;  %2110 = vmatprep.mubr.bf16.mxu1 %v1954_v12  ;;  %v6409_v12 = vld [vmem:[#allocation128_spill] sm:$0xff] }
 0x61f   :  { %2039 = vmatprep.subr.bf16.mxu0 %v6042_v39  ;;  %2080 = vmatprep.subr.bf16.mxu1 %v6043_v25 }
 0x621   :  { %2040 = vmatpush1.bf16.msra.mxu0 %v6044_v34  ;;  %2081 = vmatpush1.bf16.msra.mxu1 %v6045_v32 }
 0x622   :  { %2041 = vmatprep.subr.bf16.mxu0 %v6046_v49  ;;  %2082 = vmatprep.subr.bf16.mxu1 %v6125_v18 }
 0x625   :  { %2042 = vmatpush1.bf16.msra.mxu0 %v6126_v52  ;;  %2083 = vmatpush1.bf16.msra.mxu1 %v6127_v51 }
 0x626   :  { %2043 = vmatprep.subr.bf16.mxu0 %v6128_v53  ;;  %2084 = vmatprep.subr.bf16.mxu1 %v6129_v5 }
 0x629   :  { %2044 = vmatpush1.bf16.msra.mxu0 %v6130_v60  ;;  %2085 = vmatpush1.bf16.msra.mxu1 %v6131_v44 }
 0x62a   :  { %2045 = vmatprep.subr.bf16.mxu0 %v6132_v37  ;;  %2086 = vmatprep.subr.bf16.mxu1 %v6133_v43 }
 0x62d   :  { %2046 = vmatpush1.bf16.msra.mxu0 %v6134_v62  ;;  %2087 = vmatpush1.bf16.msra.mxu1 %v6213_v13 }
 0x62e   :  { %2047 = vmatprep.subr.bf16.mxu0 %v6214_v21  ;;  %2088 = vmatprep.subr.bf16.mxu1 %v6215_v9 }
 0x631   :  { %2048 = vmatpush1.bf16.msra.mxu0 %v6216_v6  ;;  %2089 = vmatpush1.bf16.msra.mxu1 %v6217_v28 }
 0x632   :  { %2049 = vmatprep.subr.bf16.mxu0 %v6218_v15  ;;  %2090 = vmatprep.subr.bf16.mxu1 %v6219_v22 }
 0x635   :  { %2050 = vmatpush1.bf16.msra.mxu0 %v6220_v47  ;;  %2091 = vmatpush1.bf16.msra.mxu1 %v6221_v27 }
 0x636   :  { %2051 = vmatprep.subr.bf16.mxu0 %v6222_v20  ;;  %2092 = vmatprep.subr.bf16.mxu1 %v6223_v48 }
 0x639   :  { %2052 = vmatpush1.bf16.msra.mxu0 %v6224_v3  ;;  %2093 = vmatpush1.bf16.msra.mxu1 %v6225_v63 }
 0x63a   :  { %2053 = vmatprep.subr.bf16.mxu0 %v6148_v8  ;;  %2094 = vmatprep.subr.bf16.mxu1 %v6149_v30 }
 0x63d   :  { %2054 = vmatpush2.bf16.msra.mxu0 %v6150_v24  ;;  %2095 = vmatpush2.bf16.msra.mxu1 %v6151_v29 }
 0x63e   :  { %2055 = vmatprep.subr.bf16.mxu0 %v6152_v35  ;;  %2096 = vmatprep.subr.bf16.mxu1 %v6153_v46 }
 0x641   :  { %2056 = vmatpush2.bf16.msra.mxu0 %v6154_v45  ;;  %2097 = vmatpush2.bf16.msra.mxu1 %v6155_v54 }
 0x642   :  { %2057 = vmatprep.subr.bf16.mxu0 %v6156_v59  ;;  %2098 = vmatprep.subr.bf16.mxu1 %v6157_v38 }
 0x645   :  { %2058 = vmatpush2.bf16.msra.mxu0 %v6389_v19  ;;  %2099 = vmatpush2.bf16.msra.mxu1 %v6390_v31 }
 0x646   :  { %2059 = vmatprep.subr.bf16.mxu0 %v6391_v2  ;;  %2100 = vmatprep.subr.bf16.mxu1 %v6392_v10 }
 0x649   :  { %2060 = vmatpush2.bf16.msra.mxu0 %v6393_v0  ;;  %2101 = vmatpush2.bf16.msra.mxu1 %v6394_v7 }
 0x64a   :  { %2061 = vmatprep.subr.bf16.mxu0 %v6395_v40  ;;  %2102 = vmatprep.subr.bf16.mxu1 %v6396_v11 }
 0x64d   :  { %2062 = vmatpush2.bf16.msra.mxu0 %v6397_v56  ;;  %2103 = vmatpush2.bf16.msra.mxu1 %v6398_v33 }
 0x64e   :  { %2063 = vmatprep.subr.bf16.mxu0 %v6399_v16  ;;  %2104 = vmatprep.subr.bf16.mxu1 %v6400_v57  ;;  %v6410_v16 = vld [vmem:[#allocation129_spill] sm:$0xff]  ;;  %v6411_v57 = vld [vmem:[#allocation2_spill] sm:$0xff] }
 0x651   :  { %2064 = vmatpush2.bf16.msra.mxu0 %v6401_v4  ;;  %2105 = vmatpush2.bf16.msra.mxu1 %v6402_v55  ;;  %v6412_v4 = vld [vmem:[#allocation4_spill] sm:$0xff] }
 0x652   :  { %2065 = vmatprep.subr.bf16.mxu0 %v6403_v41  ;;  %2106 = vmatprep.subr.bf16.mxu1 %v6404_v61  ;;  %v6413_v61 = vld [vmem:[#allocation3_spill] sm:$0xff]  ;;  %v6422_v41 = vld [vmem:[#allocation13_spill] sm:$0xff] }
 0x655   :  { %2066 = vmatpush2.bf16.msra.mxu0 %v6405_v26  ;;  %2107 = vmatpush2.bf16.msra.mxu1 %v6406_v14  ;;  %v6414_v26 = vld [vmem:[#allocation5_spill] sm:$0xff]  ;;  %v6415_v14 = vld [vmem:[#allocation6_spill] sm:$0xff] }
 0x656   :  { %2067 = vmatprep.subr.bf16.mxu0 %v6407_v1  ;;  %2108 = vmatprep.subr.bf16.mxu1 %v6408_v58  ;;  %v6416_v1 = vld [vmem:[#allocation7_spill] sm:$0xff]  ;;  %v6417_v58 = vld [vmem:[#allocation8_spill] sm:$0xff] }
 0x659   :  { %2068 = vmatpush2.bf16.msra.mxu0 %v6409_v12  ;;  %2109 = vmatpush2.bf16.msra.mxu1 %v6410_v16  ;;  %v6418_v12 = vld [vmem:[#allocation9_spill] sm:$0xff]  ;;  %v6419_v16 = vld [vmem:[#allocation10_spill] sm:$0xff] }
 0x65a   :  { %2186 = vmatprep.subr.bf16.mxu0 %v6411_v57  ;;  %2227 = vmatprep.subr.bf16.mxu1 %v6412_v4  ;;  %v6420_v57 = vld [vmem:[#allocation11_spill] sm:$0xff]  ;;  %v6421_v4 = vld [vmem:[#allocation12_spill] sm:$0xff] }
 0x65c   :  { %2070 = vmatmul.mubr.bf16.vlgmr.msra.gmra.mxu0 %v5098_v42  ;;  %2111 = vmatmul.mubr.bf16.vlgmr.msra.gmra.mxu1 %v5098_v42  ;;  %v6423_v42 = vld [vmem:[#allocation14_spill] sm:$0xff] }
 0x65d   :  { %2187 = vmatpush1.bf16.msra.mxu0 %v6413_v61  ;;  %2228 = vmatpush1.bf16.msra.mxu1 %v6414_v26  ;;  %v6424_v61 = vld [vmem:[#allocation15_spill] sm:$0xff]  ;;  %v6425_v26 = vld [vmem:[#allocation16_spill] sm:$0xff] }
 0x65e   :  { %2188 = vmatprep.subr.bf16.mxu0 %v6415_v14  ;;  %2229 = vmatprep.subr.bf16.mxu1 %v6416_v1  ;;  %v6426_v14 = vld [vmem:[#allocation17_spill] sm:$0xff]  ;;  %v6427_v1 = vld [vmem:[#allocation18_spill] sm:$0xff] }
 0x661   :  { %2189 = vmatpush1.bf16.msra.mxu0 %v6417_v58  ;;  %2230 = vmatpush1.bf16.msra.mxu1 %v6418_v12  ;;  %v6428_v58 = vld [vmem:[#allocation19_spill] sm:$0xff]  ;;  %v6429_v12 = vld [vmem:[#allocation20_spill] sm:$0xff] }
 0x662   :  { %2190 = vmatprep.subr.bf16.mxu0 %v6419_v16  ;;  %2231 = vmatprep.subr.bf16.mxu1 %v6420_v57  ;;  %v6430_v16 = vld [vmem:[#allocation21_spill] sm:$0xff]  ;;  %v6431_v57 = vld [vmem:[#allocation22_spill] sm:$0xff] }
 0x665   :  { %2191 = vmatpush1.bf16.msra.mxu0 %v6421_v4  ;;  %2232 = vmatpush1.bf16.msra.mxu1 %v6422_v41  ;;  %v6432_v4 = vld [vmem:[#allocation23_spill] sm:$0xff]  ;;  %v6433_v41 = vld [vmem:[#allocation24_spill] sm:$0xff] }
 0x666   :  { %2192 = vmatprep.subr.bf16.mxu0 %v6423_v42  ;;  %2233 = vmatprep.subr.bf16.mxu1 %v6424_v61  ;;  %v6434_v42 = vld [vmem:[#allocation25_spill] sm:$0xff]  ;;  %v6435_v61 = vld [vmem:[#allocation26_spill] sm:$0xff] }
 0x669   :  { %2193 = vmatpush1.bf16.msra.mxu0 %v6425_v26  ;;  %2234 = vmatpush1.bf16.msra.mxu1 %v6426_v14  ;;  %v6436_v26 = vld [vmem:[#allocation27_spill] sm:$0xff]  ;;  %v6437_v14 = vld [vmem:[#allocation28_spill] sm:$0xff] }
 0x66a   :  { %2194 = vmatprep.subr.bf16.mxu0 %v6427_v1  ;;  %2235 = vmatprep.subr.bf16.mxu1 %v6428_v58  ;;  %v6438_v1 = vld [vmem:[#allocation29_spill] sm:$0xff]  ;;  %v6439_v58 = vld [vmem:[#allocation30_spill] sm:$0xff] }
 0x66d   :  { %2195 = vmatpush1.bf16.msra.mxu0 %v6429_v12  ;;  %2236 = vmatpush1.bf16.msra.mxu1 %v6430_v16  ;;  %v6440_v12 = vld [vmem:[#allocation31_spill] sm:$0xff]  ;;  %v6441_v16 = vld [vmem:[#allocation32_spill] sm:$0xff] }
 0x66e   :  { %2196 = vmatprep.subr.bf16.mxu0 %v6431_v57  ;;  %2237 = vmatprep.subr.bf16.mxu1 %v6432_v4  ;;  %v6442_v57 = vld [vmem:[#allocation33_spill] sm:$0xff]  ;;  %v6443_v4 = vld [vmem:[#allocation34_spill] sm:$0xff] }
 0x671   :  { %2197 = vmatpush1.bf16.msra.mxu0 %v6433_v41  ;;  %2238 = vmatpush1.bf16.msra.mxu1 %v6434_v42  ;;  %v6444_v41 = vld [vmem:[#allocation35_spill] sm:$0xff]  ;;  %v6445_v42 = vld [vmem:[#allocation36_spill] sm:$0xff] }
 0x672   :  { %2198 = vmatprep.subr.bf16.mxu0 %v6435_v61  ;;  %2239 = vmatprep.subr.bf16.mxu1 %v6436_v26  ;;  %v6446_v61 = vld [vmem:[#allocation37_spill] sm:$0xff]  ;;  %v6447_v26 = vld [vmem:[#allocation38_spill] sm:$0xff] }
 0x675   :  { %2199 = vmatpush1.bf16.msra.mxu0 %v6437_v14  ;;  %2240 = vmatpush1.bf16.msra.mxu1 %v6438_v1  ;;  %v6448_v14 = vld [vmem:[#allocation39_spill] sm:$0xff]  ;;  %v6449_v1 = vld [vmem:[#allocation40_spill] sm:$0xff] }
 0x676   :  { %2200 = vmatprep.subr.bf16.mxu0 %v6439_v58  ;;  %2241 = vmatprep.subr.bf16.mxu1 %v6440_v12  ;;  %v6450_v58 = vld [vmem:[#allocation41_spill] sm:$0xff]  ;;  %v6451_v12 = vld [vmem:[#allocation42_spill] sm:$0xff] }
 0x679   :  { %2201 = vmatpush1.bf16.msra.mxu0 %v6441_v16  ;;  %2242 = vmatpush1.bf16.msra.mxu1 %v6442_v57  ;;  %v6452_v16 = vld [vmem:[#allocation43_spill] sm:$0xff]  ;;  %v6453_v57 = vld [vmem:[#allocation44_spill] sm:$0xff] }
 0x67a   :  { %2202 = vmatprep.subr.bf16.mxu0 %v6443_v4  ;;  %2243 = vmatprep.subr.bf16.mxu1 %v6444_v41  ;;  %v6454_v4 = vld [vmem:[#allocation45_spill] sm:$0xff]  ;;  %v6455_v41 = vld [vmem:[#allocation46_spill] sm:$0xff] }
 0x67d   :  { %2203 = vmatpush2.bf16.msra.mxu0 %v6445_v42  ;;  %2244 = vmatpush2.bf16.msra.mxu1 %v6446_v61  ;;  %v6456_v42 = vld [vmem:[#allocation47_spill] sm:$0xff]  ;;  %v6457_v61 = vld [vmem:[#allocation48_spill] sm:$0xff] }
 0x67e   :  { %2204 = vmatprep.subr.bf16.mxu0 %v6447_v26  ;;  %2245 = vmatprep.subr.bf16.mxu1 %v6448_v14  ;;  %v6458_v26 = vld [vmem:[#allocation49_spill] sm:$0xff]  ;;  %v6459_v14 = vld [vmem:[#allocation50_spill] sm:$0xff] }
 0x681   :  { %2205 = vmatpush2.bf16.msra.mxu0 %v6449_v1  ;;  %2246 = vmatpush2.bf16.msra.mxu1 %v6450_v58  ;;  %v6460_v1 = vld [vmem:[#allocation51_spill] sm:$0xff]  ;;  %v6461_v58 = vld [vmem:[#allocation52_spill] sm:$0xff] }
 0x682   :  { %2206 = vmatprep.subr.bf16.mxu0 %v6451_v12  ;;  %2247 = vmatprep.subr.bf16.mxu1 %v6452_v16  ;;  %v6462_v12 = vld [vmem:[#allocation53_spill] sm:$0xff]  ;;  %v6463_v16 = vld [vmem:[#allocation54_spill] sm:$0xff] }
 0x685   :  { %2207 = vmatpush2.bf16.msra.mxu0 %v6453_v57  ;;  %2248 = vmatpush2.bf16.msra.mxu1 %v6454_v4  ;;  %v6464_v57 = vld [vmem:[#allocation55_spill] sm:$0xff]  ;;  %v6465_v4 = vld [vmem:[#allocation56_spill] sm:$0xff] }
 0x686   :  { %2208 = vmatprep.subr.bf16.mxu0 %v6455_v41  ;;  %2249 = vmatprep.subr.bf16.mxu1 %v6456_v42  ;;  %v6466_v41 = vld [vmem:[#allocation57_spill] sm:$0xff]  ;;  %v6467_v42 = vld [vmem:[#allocation58_spill] sm:$0xff] }
 0x689   :  { %2209 = vmatpush2.bf16.msra.mxu0 %v6457_v61  ;;  %2250 = vmatpush2.bf16.msra.mxu1 %v6458_v26  ;;  %v6468_v61 = vld [vmem:[#allocation59_spill] sm:$0xff]  ;;  %v6469_v26 = vld [vmem:[#allocation60_spill] sm:$0xff] }
 0x68a   :  { %2210 = vmatprep.subr.bf16.mxu0 %v6459_v14  ;;  %2251 = vmatprep.subr.bf16.mxu1 %v6460_v1  ;;  %v6470_v14 = vld [vmem:[#allocation61_spill] sm:$0xff]  ;;  %v6471_v1 = vld [vmem:[#allocation62_spill] sm:$0xff] }
 0x68d   :  { %2211 = vmatpush2.bf16.msra.mxu0 %v6461_v58  ;;  %2252 = vmatpush2.bf16.msra.mxu1 %v6462_v12  ;;  %v6472_v58 = vld [vmem:[#allocation63_spill] sm:$0xff]  ;;  %v6473_v12 = vld [vmem:[#allocation64_spill] sm:$0xff] }
 0x68e   :  { %2212 = vmatprep.subr.bf16.mxu0 %v6463_v16  ;;  %2253 = vmatprep.subr.bf16.mxu1 %v6464_v57  ;;  %v6474_v16 = vld [vmem:[#allocation65_spill] sm:$0xff]  ;;  %v6475_v57 = vld [vmem:[#allocation66_spill] sm:$0xff] }
 0x691   :  { %2213 = vmatpush2.bf16.msra.mxu0 %v6465_v4  ;;  %2254 = vmatpush2.bf16.msra.mxu1 %v6466_v41  ;;  %v6476_v4 = vld [vmem:[#allocation67_spill] sm:$0xff] }
 0x692   :  { %2214 = vmatprep.subr.bf16.mxu0 %v6467_v42  ;;  %2255 = vmatprep.subr.bf16.mxu1 %v6468_v61 }
 0x695   :  { %2215 = vmatpush2.bf16.msra.mxu0 %v6469_v26  ;;  %2256 = vmatpush2.bf16.msra.mxu1 %v6470_v14 }
 0x696   :  { %2216 = vmatprep.subr.bf16.mxu0 %v6471_v1  ;;  %2257 = vmatprep.subr.bf16.mxu1 %v6472_v58  ;;  %v3122_v58 = vld [vmem:[%s5615_s0 + $0x140] sm:$0xff] }
 0x699   :  { %2217 = vmatpush2.bf16.msra.mxu0 %v6473_v12  ;;  %2258 = vmatpush2.bf16.msra.mxu1 %v6474_v16  ;;  %v3124_v16 = vld [vmem:[%s5615_s0 + $0x150] sm:$0xff] }
 0x69a   :  { %2268 = vmatprep.subr.bf16.mxu0 %v6475_v57  ;;  %2309 = vmatprep.subr.bf16.mxu1 %v6476_v4  ;;  %v3123_v4 = vld [vmem:[%s5615_s0 + $0x148] sm:$0xff] }
 0x6dc   :  { %v1989_v41 = vpop.f32.mrf.mxu0  ;;  %v2030_v42 = vpop.f32.mrf.mxu1 }
 0x6dd   :  { %v2119_v57 = vadd.f32 %v3122_v58, %v1989_v41  ;;  %v2121_v12 = vadd.f32 %v3124_v16, %v2030_v42 }
 0x6de   :  { %v1991_v55 = vpop.f32.mrf.mxu0  ;;  %v2032_v61 = vpop.f32.mrf.mxu1 }
 0x6df   :  { %v3132_v1 = vmul.f32 -1.442695, %v2121_v12 }
 0x6e0   :  { %v1993_v33 = vpop.f32.mrf.mxu0  ;;  %v2034_v26 = vpop.f32.mrf.mxu1 }
 0x6e1   :  { %v3125_v33 = vld [vmem:[%s5615_s0 + $0x158] sm:$0xff]  ;;  %v3130_v26 = vmul.f32 -1.442695, %v2119_v57  ;;  %v3128_v57 = vld [vmem:[%s5615_s0 + $0x170] sm:$0xff] }
 0x6e2   :  { %v1994_v56 = vpop.f32.mrf.mxu0  ;;  %v2035_v14 = vpop.f32.mrf.mxu1 }
 0x6e3   :  { %v2120_v56 = vadd.f32 %v3123_v4, %v1991_v55  ;;  %v2122_v14 = vadd.f32 %v3125_v33, %v2032_v61  ;;  %3428 = vpow2.f32 %v3130_v26  ;;  %v3126_v4 = vld [vmem:[%s5615_s0 + $0x160] sm:$0xff] }
 0x6e4   :  { %3430 = vpow2.f32 %v3132_v1 }
 0x6e5   :  { %v3131_v11 = vmul.f32 -1.442695, %v2120_v56  ;;  %v3133_v40 = vmul.f32 -1.442695, %v2122_v14 }
 0x6e7   :  { %3432 = vpow2.f32 %v3131_v11 }
 0x6e8   :  { %3434 = vpow2.f32 %v3133_v40  ;;  %v3127_v40 = vld [vmem:[%s5615_s0 + $0x168] sm:$0xff] }
 0x6f0   :  { %v3429_v7 = vpop.eup %3428 }
 0x6f1   :  { %v3431_v0 = vpop.eup %3430  ;;  %v2133_v2 = vadd.f32 1.0, %v3429_v7 }
 0x6f2   :  { %v2145_v16 = vadd.f32 1.0, %v3431_v0 }
 0x6f3   :  { %3436 = vrcp.f32 %v2133_v2 }
 0x6f4   :  { %v3433_v10 = vpop.eup %3432  ;;  %3438 = vrcp.f32 %v2145_v16 }
 0x6f5   :  { %v3435_v41 = vpop.eup %3434  ;;  %v2134_v58 = vadd.f32 1.0, %v3433_v10  ;;  %v3129_v10 = vld [vmem:[%s5615_s0 + $0x178] sm:$0xff] }
 0x6f6   :  { %v2146_v55 = vadd.f32 1.0, %v3435_v41 }
 0x6f7   :  { %3440 = vrcp.f32 %v2134_v58 }
 0x700   :  { %v3437_v19 = vpop.eup %3436 }
 0x701   :  { %v3439_v16 = vpop.eup %3438 }
 0x71c   :  { %v2071_v61 = vpop.f32.mrf.mxu0  ;;  %v2112_v11 = vpop.f32.mrf.mxu1 }
 0x71d   :  { %v2123_v0 = vadd.f32 %v3126_v4, %v2071_v61  ;;  %v2125_v7 = vadd.f32 %v3128_v57, %v2112_v11  ;;  %v3441_v4 = vpop.eup %3440  ;;  %v2165_v61 = vmul.f32 %v3439_v16, %v5091_v23  ;;  %v6478_v16 = vld [vmem:[#allocation109_spill] sm:$0xff] }
 0x71e   :  { %v2073_v1 = vpop.f32.mrf.mxu0  ;;  %v2114_v12 = vpop.f32.mrf.mxu1 }
 0x71f   :  { %3442 = vtanh.f32 %v2123_v0  ;;  %v3134_v42 = vmul.f32 -1.442695, %v2125_v7  ;;  %v2124_v2 = vadd.f32 %v3127_v40, %v2073_v1  ;;  %v2126_v33 = vadd.f32 %v3129_v10, %v2114_v12 }
 0x720   :  { %3444 = vrcp.f32 %v2146_v55  ;;  %v2075_v56 = vpop.f32.mrf.mxu0  ;;  %v2116_v26 = vpop.f32.mrf.mxu1 }
 0x721   :  { %3446 = vpow2.f32 %v3134_v42  ;;  %v3135_v14 = vmul.f32 -1.442695, %v2126_v33 }
 0x722   :  { %3448 = vtanh.f32 %v2124_v2  ;;  %v2076_v41 = vpop.f32.mrf.mxu0  ;;  %v2117_v31 = vpop.f32.mrf.mxu1 }
 0x723   :  { %3450 = vpow2.f32 %v3135_v14 }
 0x72c   :  { %v3443_v57 = vpop.eup %3442 }
 0x72d   :  { %v3445_v58 = vpop.eup %3444  ;;  %v2167_v11 = vmul.f32 %v3443_v57, %v3437_v19  ;;  %v6480_v57 = vld [vmem:[#allocation111_spill] sm:$0xff] }
 0x72e   :  { %v3447_v0 = vpop.eup %3446  ;;  %v2166_v1 = vmul.f32 %v3445_v58, %v5095_v36  ;;  %v6477_v36 = vld [vmem:[#allocation108_spill] sm:$0xff] }
 0x72f   :  { %v3449_v40 = vpop.eup %3448  ;;  %v5257_v10 = vadd.f32 %v2167_v11, %v2165_v61  ;;  %v2159_v55 = vadd.f32 1.0, %v3447_v0  ;;  %v6481_v58 = vld [vmem:[#allocation112_spill] sm:$0xff]  ;;  %v6482_v61 = vld [vmem:[#allocation113_spill] sm:$0xff]  ;;  %v6483_v11 = vld [vmem:[#allocation114_spill] sm:$0xff] }
 0x730   :  { %v3451_v7 = vpop.eup %3450  ;;  %v2168_v12 = vmul.f32 %v3449_v40, %v3441_v4  ;;  %v6479_v4 = vld [vmem:[#allocation110_spill] sm:$0xff]  ;;  %v6484_v0 = vld [vmem:[#allocation115_spill] sm:$0xff]  ;;  %v6485_v40 = vld [vmem:[#allocation116_spill] sm:$0xff] }
 0x731   :  { %3452 = vtanh.f32 %v5257_v10  ;;  %v2160_v31 = vadd.f32 1.0, %v3451_v7  ;;  %v6487_v7 = vld [vmem:[#allocation118_spill] sm:$0xff] }
 0x732   :  { %3454 = vrcp.f32 %v2159_v55  ;;  %v5261_v42 = vadd.f32 %v2168_v12, %v2166_v1  ;;  %v6486_v55 = vld [vmem:[#allocation117_spill] sm:$0xff]  ;;  %v6488_v1 = vld [vmem:[#allocation119_spill] sm:$0xff]  ;;  %v6489_v12 = vld [vmem:[#allocation120_spill] sm:$0xff] }
 0x733   :  { %3456 = vrcp.f32 %v2160_v31  ;;  %v6490_v31 = vld [vmem:[#allocation121_spill] sm:$0xff] }
 0x734   :  { %3458 = vtanh.f32 %v5261_v42 }
 0x73e   :  { %v3453_v23 = vpop.eup %3452 }
 0x73f   :  { %v3455_v19 = vpop.eup %3454 }
 0x740   :  { %v3457_v2 = vpop.eup %3456  ;;  %v2173_v56 = vmul.f32 %v3455_v19, %v3453_v23  ;;  %v6491_v23 = vld [vmem:[#allocation122_spill] sm:$0xff]  ;;  %v6492_v19 = vld [vmem:[#allocation123_spill] sm:$0xff] }
 0x741   :  { %v3459_v33 = vpop.eup %3458 }
 0x742   :  { %v2174_v26 = vmul.f32 %v3459_v33, %v3457_v2  ;;  %v5264_v41 = vpack.c.bf16 %v2173_v56, %v2173_v56  ;;  %v6493_v2 = vld [vmem:[#allocation124_spill] sm:$0xff]  ;;  %v6494_v33 = vld [vmem:[#allocation125_spill] sm:$0xff]  ;;  %v6495_v56 = vld [vmem:[#allocation126_spill] sm:$0xff] }
 0x744   :  { %v2185_v14 = vpack.c.bf16 %v2174_v26, %v2174_v26  ;;  %v6496_v26 = vld [vmem:[#allocation127_spill] sm:$0xff] }
 0x746   :  { %2218 = vmatprep.mubr.bf16.mxu0 %v2185_v14  ;;  %2259 = vmatprep.mubr.bf16.mxu1 %v2185_v14 }
 0x747   :  { %2219 = vmatmul.mubr.bf16.vlgmr.msra.gmra.mxu0 %v5264_v41  ;;  %2260 = vmatmul.mubr.bf16.vlgmr.msra.gmra.mxu1 %v5264_v41 }
 0x748   :  { %2269 = vmatpush1.bf16.msra.mxu0 %v6040_v17  ;;  %2310 = vmatpush1.bf16.msra.mxu1 %v6041_v50 }
 0x749   :  { %2300 = vmatprep.mubr.bf16.mxu0 %v2185_v14  ;;  %2341 = vmatprep.mubr.bf16.mxu1 %v2185_v14  ;;  %v6497_v14 = vld [vmem:[#allocation128_spill] sm:$0xff] }
 0x74a   :  { %2270 = vmatprep.subr.bf16.mxu0 %v6042_v39  ;;  %2311 = vmatprep.subr.bf16.mxu1 %v6043_v25 }
 0x74c   :  { %2271 = vmatpush1.bf16.msra.mxu0 %v6044_v34  ;;  %2312 = vmatpush1.bf16.msra.mxu1 %v6045_v32 }
 0x74d   :  { %2272 = vmatprep.subr.bf16.mxu0 %v6046_v49  ;;  %2313 = vmatprep.subr.bf16.mxu1 %v6125_v18 }
 0x750   :  { %2273 = vmatpush1.bf16.msra.mxu0 %v6126_v52  ;;  %2314 = vmatpush1.bf16.msra.mxu1 %v6127_v51 }
 0x751   :  { %2274 = vmatprep.subr.bf16.mxu0 %v6128_v53  ;;  %2315 = vmatprep.subr.bf16.mxu1 %v6129_v5 }
 0x754   :  { %2275 = vmatpush1.bf16.msra.mxu0 %v6130_v60  ;;  %2316 = vmatpush1.bf16.msra.mxu1 %v6131_v44 }
 0x755   :  { %2276 = vmatprep.subr.bf16.mxu0 %v6132_v37  ;;  %2317 = vmatprep.subr.bf16.mxu1 %v6133_v43 }
 0x758   :  { %2277 = vmatpush1.bf16.msra.mxu0 %v6134_v62  ;;  %2318 = vmatpush1.bf16.msra.mxu1 %v6213_v13 }
 0x759   :  { %2278 = vmatprep.subr.bf16.mxu0 %v6214_v21  ;;  %2319 = vmatprep.subr.bf16.mxu1 %v6215_v9 }
 0x75c   :  { %2279 = vmatpush1.bf16.msra.mxu0 %v6216_v6  ;;  %2320 = vmatpush1.bf16.msra.mxu1 %v6217_v28 }
 0x75d   :  { %2280 = vmatprep.subr.bf16.mxu0 %v6218_v15  ;;  %2321 = vmatprep.subr.bf16.mxu1 %v6219_v22 }
 0x760   :  { %2281 = vmatpush1.bf16.msra.mxu0 %v6220_v47  ;;  %2322 = vmatpush1.bf16.msra.mxu1 %v6221_v27 }
 0x761   :  { %2282 = vmatprep.subr.bf16.mxu0 %v6222_v20  ;;  %2323 = vmatprep.subr.bf16.mxu1 %v6223_v48 }
 0x764   :  { %2283 = vmatpush1.bf16.msra.mxu0 %v6224_v3  ;;  %2324 = vmatpush1.bf16.msra.mxu1 %v6225_v63 }
 0x765   :  { %2284 = vmatprep.subr.bf16.mxu0 %v6148_v8  ;;  %2325 = vmatprep.subr.bf16.mxu1 %v6149_v30 }
 0x768   :  { %2285 = vmatpush2.bf16.msra.mxu0 %v6150_v24  ;;  %2326 = vmatpush2.bf16.msra.mxu1 %v6151_v29 }
 0x769   :  { %2286 = vmatprep.subr.bf16.mxu0 %v6152_v35  ;;  %2327 = vmatprep.subr.bf16.mxu1 %v6153_v46 }
 0x76c   :  { %2287 = vmatpush2.bf16.msra.mxu0 %v6154_v45  ;;  %2328 = vmatpush2.bf16.msra.mxu1 %v6155_v54 }
 0x76d   :  { %2288 = vmatprep.subr.bf16.mxu0 %v6156_v59  ;;  %2329 = vmatprep.subr.bf16.mxu1 %v6157_v38 }
 0x770   :  { %2289 = vmatpush2.bf16.msra.mxu0 %v6477_v36  ;;  %2330 = vmatpush2.bf16.msra.mxu1 %v6478_v16 }
 0x771   :  { %2290 = vmatprep.subr.bf16.mxu0 %v6479_v4  ;;  %2331 = vmatprep.subr.bf16.mxu1 %v6480_v57 }
 0x774   :  { %2291 = vmatpush2.bf16.msra.mxu0 %v6481_v58  ;;  %2332 = vmatpush2.bf16.msra.mxu1 %v6482_v61 }
 0x775   :  { %2292 = vmatprep.subr.bf16.mxu0 %v6483_v11  ;;  %2333 = vmatprep.subr.bf16.mxu1 %v6484_v0 }
 0x778   :  { %2293 = vmatpush2.bf16.msra.mxu0 %v6485_v40  ;;  %2334 = vmatpush2.bf16.msra.mxu1 %v6486_v55 }
 0x779   :  { %2294 = vmatprep.subr.bf16.mxu0 %v6487_v7  ;;  %2335 = vmatprep.subr.bf16.mxu1 %v6488_v1  ;;  %v6498_v7 = vld [vmem:[#allocation129_spill] sm:$0xff]  ;;  %v6499_v1 = vld [vmem:[#allocation2_spill] sm:$0xff] }
 0x77c   :  { %2295 = vmatpush2.bf16.msra.mxu0 %v6489_v12  ;;  %2336 = vmatpush2.bf16.msra.mxu1 %v6490_v31  ;;  %v6500_v12 = vld [vmem:[#allocation4_spill] sm:$0xff] }
 0x77d   :  { %2296 = vmatprep.subr.bf16.mxu0 %v6491_v23  ;;  %2337 = vmatprep.subr.bf16.mxu1 %v6492_v19  ;;  %v6501_v19 = vld [vmem:[#allocation3_spill] sm:$0xff]  ;;  %v6510_v23 = vld [vmem:[#allocation13_spill] sm:$0xff] }
 0x780   :  { %2297 = vmatpush2.bf16.msra.mxu0 %v6493_v2  ;;  %2338 = vmatpush2.bf16.msra.mxu1 %v6494_v33  ;;  %v6502_v2 = vld [vmem:[#allocation5_spill] sm:$0xff]  ;;  %v6503_v33 = vld [vmem:[#allocation6_spill] sm:$0xff] }
 0x781   :  { %2298 = vmatprep.subr.bf16.mxu0 %v6495_v56  ;;  %2339 = vmatprep.subr.bf16.mxu1 %v6496_v26  ;;  %v6504_v56 = vld [vmem:[#allocation7_spill] sm:$0xff]  ;;  %v6505_v26 = vld [vmem:[#allocation8_spill] sm:$0xff] }
 0x784   :  { %2299 = vmatpush2.bf16.msra.mxu0 %v6497_v14  ;;  %2340 = vmatpush2.bf16.msra.mxu1 %v6498_v7  ;;  %v6506_v14 = vld [vmem:[#allocation9_spill] sm:$0xff]  ;;  %v6507_v7 = vld [vmem:[#allocation10_spill] sm:$0xff] }
 0x785   :  { %2417 = vmatprep.subr.bf16.mxu0 %v6499_v1  ;;  %2458 = vmatprep.subr.bf16.mxu1 %v6500_v12  ;;  %v6508_v1 = vld [vmem:[#allocation11_spill] sm:$0xff]  ;;  %v6509_v12 = vld [vmem:[#allocation12_spill] sm:$0xff] }
 0x787   :  { %2301 = vmatmul.mubr.bf16.vlgmr.msra.gmra.mxu0 %v5264_v41  ;;  %2342 = vmatmul.mubr.bf16.vlgmr.msra.gmra.mxu1 %v5264_v41  ;;  %v6511_v41 = vld [vmem:[#allocation14_spill] sm:$0xff] }
 0x788   :  { %2418 = vmatpush1.bf16.msra.mxu0 %v6501_v19  ;;  %2459 = vmatpush1.bf16.msra.mxu1 %v6502_v2  ;;  %v6512_v19 = vld [vmem:[#allocation15_spill] sm:$0xff]  ;;  %v6513_v2 = vld [vmem:[#allocation16_spill] sm:$0xff] }
 0x789   :  { %2419 = vmatprep.subr.bf16.mxu0 %v6503_v33  ;;  %2460 = vmatprep.subr.bf16.mxu1 %v6504_v56  ;;  %v6514_v33 = vld [vmem:[#allocation17_spill] sm:$0xff]  ;;  %v6515_v56 = vld [vmem:[#allocation18_spill] sm:$0xff] }
 0x78c   :  { %2420 = vmatpush1.bf16.msra.mxu0 %v6505_v26  ;;  %2461 = vmatpush1.bf16.msra.mxu1 %v6506_v14  ;;  %v6516_v26 = vld [vmem:[#allocation19_spill] sm:$0xff]  ;;  %v6517_v14 = vld [vmem:[#allocation20_spill] sm:$0xff] }
 0x78d   :  { %2421 = vmatprep.subr.bf16.mxu0 %v6507_v7  ;;  %2462 = vmatprep.subr.bf16.mxu1 %v6508_v1  ;;  %v6518_v7 = vld [vmem:[#allocation21_spill] sm:$0xff]  ;;  %v6519_v1 = vld [vmem:[#allocation22_spill] sm:$0xff] }
 0x790   :  { %2422 = vmatpush1.bf16.msra.mxu0 %v6509_v12  ;;  %2463 = vmatpush1.bf16.msra.mxu1 %v6510_v23  ;;  %v6520_v12 = vld [vmem:[#allocation23_spill] sm:$0xff]  ;;  %v6521_v23 = vld [vmem:[#allocation24_spill] sm:$0xff] }
 0x791   :  { %2423 = vmatprep.subr.bf16.mxu0 %v6511_v41  ;;  %2464 = vmatprep.subr.bf16.mxu1 %v6512_v19  ;;  %v6522_v41 = vld [vmem:[#allocation25_spill] sm:$0xff]  ;;  %v6523_v19 = vld [vmem:[#allocation26_spill] sm:$0xff] }
 0x794   :  { %2424 = vmatpush1.bf16.msra.mxu0 %v6513_v2  ;;  %2465 = vmatpush1.bf16.msra.mxu1 %v6514_v33  ;;  %v6524_v2 = vld [vmem:[#allocation27_spill] sm:$0xff]  ;;  %v6525_v33 = vld [vmem:[#allocation28_spill] sm:$0xff] }
 0x795   :  { %2425 = vmatprep.subr.bf16.mxu0 %v6515_v56  ;;  %2466 = vmatprep.subr.bf16.mxu1 %v6516_v26  ;;  %v6526_v56 = vld [vmem:[#allocation29_spill] sm:$0xff]  ;;  %v6527_v26 = vld [vmem:[#allocation30_spill] sm:$0xff] }
 0x798   :  { %2426 = vmatpush1.bf16.msra.mxu0 %v6517_v14  ;;  %2467 = vmatpush1.bf16.msra.mxu1 %v6518_v7  ;;  %v6528_v14 = vld [vmem:[#allocation31_spill] sm:$0xff]  ;;  %v6529_v7 = vld [vmem:[#allocation32_spill] sm:$0xff] }
 0x799   :  { %2427 = vmatprep.subr.bf16.mxu0 %v6519_v1  ;;  %2468 = vmatprep.subr.bf16.mxu1 %v6520_v12  ;;  %v6530_v1 = vld [vmem:[#allocation33_spill] sm:$0xff]  ;;  %v6531_v12 = vld [vmem:[#allocation34_spill] sm:$0xff] }
 0x79c   :  { %2428 = vmatpush1.bf16.msra.mxu0 %v6521_v23  ;;  %2469 = vmatpush1.bf16.msra.mxu1 %v6522_v41  ;;  %v6532_v23 = vld [vmem:[#allocation35_spill] sm:$0xff]  ;;  %v6533_v41 = vld [vmem:[#allocation36_spill] sm:$0xff] }
 0x79d   :  { %2429 = vmatprep.subr.bf16.mxu0 %v6523_v19  ;;  %2470 = vmatprep.subr.bf16.mxu1 %v6524_v2  ;;  %v6534_v19 = vld [vmem:[#allocation37_spill] sm:$0xff]  ;;  %v6535_v2 = vld [vmem:[#allocation38_spill] sm:$0xff] }
 0x7a0   :  { %2430 = vmatpush1.bf16.msra.mxu0 %v6525_v33  ;;  %2471 = vmatpush1.bf16.msra.mxu1 %v6526_v56  ;;  %v6536_v33 = vld [vmem:[#allocation39_spill] sm:$0xff]  ;;  %v6537_v56 = vld [vmem:[#allocation40_spill] sm:$0xff] }
 0x7a1   :  { %2431 = vmatprep.subr.bf16.mxu0 %v6527_v26  ;;  %2472 = vmatprep.subr.bf16.mxu1 %v6528_v14  ;;  %v6538_v26 = vld [vmem:[#allocation41_spill] sm:$0xff]  ;;  %v6539_v14 = vld [vmem:[#allocation42_spill] sm:$0xff] }
 0x7a4   :  { %2432 = vmatpush1.bf16.msra.mxu0 %v6529_v7  ;;  %2473 = vmatpush1.bf16.msra.mxu1 %v6530_v1  ;;  %v6540_v7 = vld [vmem:[#allocation43_spill] sm:$0xff]  ;;  %v6541_v1 = vld [vmem:[#allocation44_spill] sm:$0xff] }
 0x7a5   :  { %2433 = vmatprep.subr.bf16.mxu0 %v6531_v12  ;;  %2474 = vmatprep.subr.bf16.mxu1 %v6532_v23  ;;  %v6542_v12 = vld [vmem:[#allocation45_spill] sm:$0xff]  ;;  %v6543_v23 = vld [vmem:[#allocation46_spill] sm:$0xff] }
 0x7a8   :  { %2434 = vmatpush2.bf16.msra.mxu0 %v6533_v41  ;;  %2475 = vmatpush2.bf16.msra.mxu1 %v6534_v19  ;;  %v6544_v41 = vld [vmem:[#allocation47_spill] sm:$0xff]  ;;  %v6545_v19 = vld [vmem:[#allocation48_spill] sm:$0xff] }
 0x7a9   :  { %2435 = vmatprep.subr.bf16.mxu0 %v6535_v2  ;;  %2476 = vmatprep.subr.bf16.mxu1 %v6536_v33  ;;  %v6546_v2 = vld [vmem:[#allocation49_spill] sm:$0xff]  ;;  %v6547_v33 = vld [vmem:[#allocation50_spill] sm:$0xff] }
 0x7ac   :  { %2436 = vmatpush2.bf16.msra.mxu0 %v6537_v56  ;;  %2477 = vmatpush2.bf16.msra.mxu1 %v6538_v26  ;;  %v6548_v56 = vld [vmem:[#allocation51_spill] sm:$0xff]  ;;  %v6549_v26 = vld [vmem:[#allocation52_spill] sm:$0xff] }
 0x7ad   :  { %2437 = vmatprep.subr.bf16.mxu0 %v6539_v14  ;;  %2478 = vmatprep.subr.bf16.mxu1 %v6540_v7  ;;  %v6550_v14 = vld [vmem:[#allocation53_spill] sm:$0xff]  ;;  %v6551_v7 = vld [vmem:[#allocation54_spill] sm:$0xff] }
 0x7b0   :  { %2438 = vmatpush2.bf16.msra.mxu0 %v6541_v1  ;;  %2479 = vmatpush2.bf16.msra.mxu1 %v6542_v12  ;;  %v6552_v1 = vld [vmem:[#allocation55_spill] sm:$0xff]  ;;  %v6553_v12 = vld [vmem:[#allocation56_spill] sm:$0xff] }
 0x7b1   :  { %2439 = vmatprep.subr.bf16.mxu0 %v6543_v23  ;;  %2480 = vmatprep.subr.bf16.mxu1 %v6544_v41  ;;  %v6554_v23 = vld [vmem:[#allocation57_spill] sm:$0xff]  ;;  %v6555_v41 = vld [vmem:[#allocation58_spill] sm:$0xff] }
 0x7b4   :  { %2440 = vmatpush2.bf16.msra.mxu0 %v6545_v19  ;;  %2481 = vmatpush2.bf16.msra.mxu1 %v6546_v2  ;;  %v6556_v19 = vld [vmem:[#allocation59_spill] sm:$0xff]  ;;  %v6557_v2 = vld [vmem:[#allocation60_spill] sm:$0xff] }
 0x7b5   :  { %2441 = vmatprep.subr.bf16.mxu0 %v6547_v33  ;;  %2482 = vmatprep.subr.bf16.mxu1 %v6548_v56  ;;  %v6558_v33 = vld [vmem:[#allocation61_spill] sm:$0xff]  ;;  %v6559_v56 = vld [vmem:[#allocation62_spill] sm:$0xff] }
 0x7b8   :  { %2442 = vmatpush2.bf16.msra.mxu0 %v6549_v26  ;;  %2483 = vmatpush2.bf16.msra.mxu1 %v6550_v14  ;;  %v6560_v26 = vld [vmem:[#allocation63_spill] sm:$0xff]  ;;  %v6561_v14 = vld [vmem:[#allocation64_spill] sm:$0xff] }
 0x7b9   :  { %2443 = vmatprep.subr.bf16.mxu0 %v6551_v7  ;;  %2484 = vmatprep.subr.bf16.mxu1 %v6552_v1  ;;  %v6562_v7 = vld [vmem:[#allocation65_spill] sm:$0xff]  ;;  %v6563_v1 = vld [vmem:[#allocation66_spill] sm:$0xff] }
 0x7bc   :  { %2444 = vmatpush2.bf16.msra.mxu0 %v6553_v12  ;;  %2485 = vmatpush2.bf16.msra.mxu1 %v6554_v23  ;;  %v6564_v12 = vld [vmem:[#allocation67_spill] sm:$0xff] }
 0x7bd   :  { %2445 = vmatprep.subr.bf16.mxu0 %v6555_v41  ;;  %2486 = vmatprep.subr.bf16.mxu1 %v6556_v19 }
 0x7c0   :  { %2446 = vmatpush2.bf16.msra.mxu0 %v6557_v2  ;;  %2487 = vmatpush2.bf16.msra.mxu1 %v6558_v33 }
 0x7c1   :  { %2447 = vmatprep.subr.bf16.mxu0 %v6559_v56  ;;  %2488 = vmatprep.subr.bf16.mxu1 %v6560_v26  ;;  %v3136_v56 = vld [vmem:[%s5615_s0 + $0x180] sm:$0xff]  ;;  %v3138_v26 = vld [vmem:[%s5615_s0 + $0x190] sm:$0xff] }
 0x7c4   :  { %2448 = vmatpush2.bf16.msra.mxu0 %v6561_v14  ;;  %2489 = vmatpush2.bf16.msra.mxu1 %v6562_v7  ;;  %v3137_v14 = vld [vmem:[%s5615_s0 + $0x188] sm:$0xff] }
 0x7c5   :  { %2499 = vmatprep.subr.bf16.mxu0 %v6563_v1  ;;  %2540 = vmatprep.subr.bf16.mxu1 %v6564_v12 }
 0x807   :  { %v2220_v23 = vpop.f32.mrf.mxu0  ;;  %v2261_v41 = vpop.f32.mrf.mxu1 }
 0x808   :  { %v2350_v7 = vadd.f32 %v3136_v56, %v2220_v23  ;;  %v2352_v1 = vadd.f32 %v3138_v26, %v2261_v41 }
 0x809   :  { %v2222_v31 = vpop.f32.mrf.mxu0  ;;  %v2263_v19 = vpop.f32.mrf.mxu1 }
 0x80a   :  { %v3144_v12 = vmul.f32 -1.442695, %v2350_v7 }
 0x80b   :  { %v2224_v55 = vpop.f32.mrf.mxu0  ;;  %v2265_v2 = vpop.f32.mrf.mxu1 }
 0x80c   :  { %v3139_v55 = vld [vmem:[%s5615_s0 + $0x198] sm:$0xff]  ;;  %3460 = vpow2.f32 %v3144_v12 }
 0x80d   :  { %v2225_v40 = vpop.f32.mrf.mxu0  ;;  %v2266_v33 = vpop.f32.mrf.mxu1  ;;  %v2353_v2 = vadd.f32 %v3139_v55, %v2263_v19  ;;  %v3142_v19 = vld [vmem:[%s5615_s0 + $0x1b0] sm:$0xff] }
 0x80e   :  { %v2351_v40 = vadd.f32 %v3137_v14, %v2222_v31  ;;  %v3146_v33 = vmul.f32 -1.442695, %v2352_v1  ;;  %v3140_v31 = vld [vmem:[%s5615_s0 + $0x1a0] sm:$0xff] }
 0x80f   :  { %v3147_v11 = vmul.f32 -1.442695, %v2353_v2 }
 0x810   :  { %v3145_v0 = vmul.f32 -1.442695, %v2351_v40  ;;  %3462 = vpow2.f32 %v3146_v33 }
 0x812   :  { %3464 = vpow2.f32 %v3145_v0 }
 0x813   :  { %3466 = vpow2.f32 %v3147_v11  ;;  %v3141_v11 = vld [vmem:[%s5615_s0 + $0x1a8] sm:$0xff] }
 0x819   :  { %v3461_v61 = vpop.eup %3460 }
 0x81a   :  { %v2364_v4 = vadd.f32 1.0, %v3461_v61 }
 0x81c   :  { %3468 = vrcp.f32 %v2364_v4 }
 0x81d   :  { %v3463_v58 = vpop.eup %3462 }
 0x81e   :  { %v2376_v41 = vadd.f32 1.0, %v3463_v58 }
 0x81f   :  { %v3465_v57 = vpop.eup %3464 }
 0x820   :  { %v3467_v23 = vpop.eup %3466  ;;  %v2365_v56 = vadd.f32 1.0, %v3465_v57  ;;  %v3143_v57 = vld [vmem:[%s5615_s0 + $0x1b8] sm:$0xff]  ;;  %3470 = vrcp.f32 %v2376_v41 }
 0x821   :  { %v2377_v26 = vadd.f32 1.0, %v3467_v23 }
 0x822   :  { %3472 = vrcp.f32 %v2365_v56 }
 0x829   :  { %v3469_v36 = vpop.eup %3468 }
 0x82d   :  { %v3471_v41 = vpop.eup %3470 }
 0x847   :  { %v2302_v14 = vpop.f32.mrf.mxu0  ;;  %v2343_v0 = vpop.f32.mrf.mxu1 }
 0x848   :  { %v2354_v58 = vadd.f32 %v3140_v31, %v2302_v14  ;;  %v2356_v61 = vadd.f32 %v3142_v19, %v2343_v0  ;;  %v3473_v31 = vpop.eup %3472  ;;  %v2396_v14 = vmul.f32 %v3471_v41, %v5257_v10  ;;  %v3262_v41 = vld [vmem:[%s5617_s4 + $0x28] sm:$0xff]  }
 0x849   :  { %v2304_v7 = vpop.f32.mrf.mxu0  ;;  %v2345_v1 = vpop.f32.mrf.mxu1 }
 0x84a   :  { %3474 = vtanh.f32 %v2354_v58  ;;  %v3148_v55 = vmul.f32 -1.442695, %v2356_v61  ;;  %v2355_v4 = vadd.f32 %v3141_v11, %v2304_v7  ;;  %v2357_v40 = vadd.f32 %v3143_v57, %v2345_v1 }
 0x84b   :  { %3476 = vrcp.f32 %v2377_v26  ;;  %v2306_v12 = vpop.f32.mrf.mxu0  ;;  %v2347_v2 = vpop.f32.mrf.mxu1 }
 0x84c   :  { %3478 = vpow2.f32 %v3148_v55  ;;  %v3149_v33 = vmul.f32 -1.442695, %v2357_v40 }
 0x84d   :  { %3480 = vtanh.f32 %v2355_v4  ;;  %v2307_v23 = vpop.f32.mrf.mxu0  ;;  %v2348_v16 = vpop.f32.mrf.mxu1 }
 0x84e   :  { %3482 = vpow2.f32 %v3149_v33 }
 0x857   :  { %v3475_v19 = vpop.eup %3474 }
 0x858   :  { %v3477_v56 = vpop.eup %3476  ;;  %v2398_v0 = vmul.f32 %v3475_v19, %v3469_v36  ;;  %v3264_v19 = vld [vmem:[%s5617_s4 + $0x18] sm:$0xff]  }
 0x859   :  { %v3479_v58 = vpop.eup %3478  ;;  %v2397_v7 = vmul.f32 %v3477_v56, %v5261_v42  ;;  %v3261_v42 = vld [vmem:[%s5617_s4 + $0x30] sm:$0xff]  }
 0x85a   :  { %v3481_v11 = vpop.eup %3480  ;;  %v5423_v57 = vadd.f32 %v2398_v0, %v2396_v14  ;;  %v2390_v26 = vadd.f32 1.0, %v3479_v58 }
 0x85b   :  { %v3483_v61 = vpop.eup %3482  ;;  %v2399_v1 = vmul.f32 %v3481_v11, %v3473_v31  ;;  %v3263_v31 = vld [vmem:[%s5617_s4 + $0x20] sm:$0xff]  }
 0x85c   :  { %3484 = vtanh.f32 %v5423_v57  ;;  %v2391_v16 = vadd.f32 1.0, %v3483_v61 }
 0x85d   :  { %3486 = vrcp.f32 %v2390_v26  ;;  %v5427_v55 = vadd.f32 %v2399_v1, %v2397_v7  ;;  %v3150_v1 = vld [vmem:[%s5615_s0 + $0x1c0] sm:$0xff] }
 0x85e   :  { %3488 = vrcp.f32 %v2391_v16  ;;  %v3152_v16 = vld [vmem:[%s5615_s0 + $0x1d0] sm:$0xff] }
 0x85f   :  { %3490 = vtanh.f32 %v5427_v55 }
 0x869   :  { %v3485_v10 = vpop.eup %3484 }
 0x86a   :  { %v3487_v36 = vpop.eup %3486 }
 0x86b   :  { %v3489_v4 = vpop.eup %3488  ;;  %v2404_v12 = vmul.f32 %v3487_v36, %v3485_v10  ;;  %v3151_v10 = vld [vmem:[%s5615_s0 + $0x1c8] sm:$0xff] }
 0x86c   :  { %v3491_v40 = vpop.eup %3490 }
 0x86d   :  { %v2405_v2 = vmul.f32 %v3491_v40, %v3489_v4  ;;  %v5430_v23 = vpack.c.bf16 %v2404_v12, %v2404_v12  ;;  %v3153_v40 = vld [vmem:[%s5615_s0 + $0x1d8] sm:$0xff] }
 0x86f   :  { %v2416_v33 = vpack.c.bf16 %v2405_v2, %v2405_v2 }
 0x871   :  { %2449 = vmatprep.mubr.bf16.mxu0 %v2416_v33  ;;  %2490 = vmatprep.mubr.bf16.mxu1 %v2416_v33 }
 0x872   :  { %2450 = vmatmul.mubr.bf16.vlgmr.msra.gmra.mxu0 %v5430_v23  ;;  %2491 = vmatmul.mubr.bf16.vlgmr.msra.gmra.mxu1 %v5430_v23 }
 0x873   :  { %2500 = vmatpush1.bf16.msra.mxu0 %v6040_v17  ;;  %2541 = vmatpush1.bf16.msra.mxu1 %v6041_v50  ;;  %v6565_v17 = vld [vmem:[#allocation108_spill] sm:$0xff]  ;;  %v6566_v50 = vld [vmem:[#allocation109_spill] sm:$0xff] }
 0x874   :  { %2531 = vmatprep.mubr.bf16.mxu0 %v2416_v33  ;;  %2572 = vmatprep.mubr.bf16.mxu1 %v2416_v33 }
 0x875   :  { %2501 = vmatprep.subr.bf16.mxu0 %v6042_v39  ;;  %2542 = vmatprep.subr.bf16.mxu1 %v6043_v25  ;;  %v6567_v39 = vld [vmem:[#allocation110_spill] sm:$0xff]  ;;  %v6568_v25 = vld [vmem:[#allocation111_spill] sm:$0xff] }
 0x877   :  { %2502 = vmatpush1.bf16.msra.mxu0 %v6044_v34  ;;  %2543 = vmatpush1.bf16.msra.mxu1 %v6045_v32  ;;  %v6569_v34 = vld [vmem:[#allocation112_spill] sm:$0xff]  ;;  %v6570_v32 = vld [vmem:[#allocation113_spill] sm:$0xff] }
 0x878   :  { %2503 = vmatprep.subr.bf16.mxu0 %v6046_v49  ;;  %2544 = vmatprep.subr.bf16.mxu1 %v6125_v18  ;;  %v6571_v49 = vld [vmem:[#allocation114_spill] sm:$0xff]  ;;  %v6572_v18 = vld [vmem:[#allocation115_spill] sm:$0xff] }
 0x87b   :  { %2504 = vmatpush1.bf16.msra.mxu0 %v6126_v52  ;;  %2545 = vmatpush1.bf16.msra.mxu1 %v6127_v51  ;;  %v6573_v52 = vld [vmem:[#allocation116_spill] sm:$0xff]  ;;  %v6574_v51 = vld [vmem:[#allocation117_spill] sm:$0xff] }
 0x87c   :  { %2505 = vmatprep.subr.bf16.mxu0 %v6128_v53  ;;  %2546 = vmatprep.subr.bf16.mxu1 %v6129_v5  ;;  %v6575_v53 = vld [vmem:[#allocation118_spill] sm:$0xff]  ;;  %v6576_v5 = vld [vmem:[#allocation119_spill] sm:$0xff] }
 0x87f   :  { %2506 = vmatpush1.bf16.msra.mxu0 %v6130_v60  ;;  %2547 = vmatpush1.bf16.msra.mxu1 %v6131_v44  ;;  %v6577_v60 = vld [vmem:[#allocation120_spill] sm:$0xff]  ;;  %v6578_v44 = vld [vmem:[#allocation121_spill] sm:$0xff] }
 0x880   :  { %2507 = vmatprep.subr.bf16.mxu0 %v6132_v37  ;;  %2548 = vmatprep.subr.bf16.mxu1 %v6133_v43  ;;  %v6579_v37 = vld [vmem:[#allocation122_spill] sm:$0xff]  ;;  %v6580_v43 = vld [vmem:[#allocation123_spill] sm:$0xff] }
 0x883   :  { %2508 = vmatpush1.bf16.msra.mxu0 %v6134_v62  ;;  %2549 = vmatpush1.bf16.msra.mxu1 %v6213_v13  ;;  %v6581_v62 = vld [vmem:[#allocation124_spill] sm:$0xff]  ;;  %v3249_v13 = vld [vmem:[%s5616_s2 + $0x28] sm:$0xff]  }
 0x884   :  { %2509 = vmatprep.subr.bf16.mxu0 %v6214_v21  ;;  %2550 = vmatprep.subr.bf16.mxu1 %v6215_v9  ;;  %v3250_v21 = vld [vmem:[%s5616_s2 + $0x60] sm:$0xff]  }
 0x885   :  { %v3251_v9 = vld [vmem:[%s5616_s2 + $0x20] sm:$0xff]  }
 0x887   :  { %2510 = vmatpush1.bf16.msra.mxu0 %v6216_v6  ;;  %2551 = vmatpush1.bf16.msra.mxu1 %v6217_v28  ;;  %v3252_v6 = vld [vmem:[%s5616_s2 + $0x58] sm:$0xff]  }
 0x888   :  { %2511 = vmatprep.subr.bf16.mxu0 %v6218_v15  ;;  %2552 = vmatprep.subr.bf16.mxu1 %v6219_v22  ;;  %v3253_v28 = vld [vmem:[%s5616_s2 + $0x18] sm:$0xff]   ;;  %v3254_v15 = vld [vmem:[%s5616_s2 + $0x50] sm:$0xff]  }
 0x889   :  { %v3255_v22 = vld [vmem:[%s5616_s2 + $0x10] sm:$0xff]  }
 0x88b   :  { %2512 = vmatpush1.bf16.msra.mxu0 %v6220_v47  ;;  %2553 = vmatpush1.bf16.msra.mxu1 %v6221_v27  ;;  %v3256_v47 = vld [vmem:[%s5616_s2 + $0x48] sm:$0xff]  }
 0x88c   :  { %2513 = vmatprep.subr.bf16.mxu0 %v6222_v20  ;;  %2554 = vmatprep.subr.bf16.mxu1 %v6223_v48  ;;  %v3257_v27 = vld [vmem:[%s5616_s2 + $0x8] sm:$0xff]   ;;  %v3258_v20 = vld [vmem:[%s5616_s2 + $0x40] sm:$0xff]  }
 0x88d   :  { %v3259_v48 = vld [vmem:[%s5616_s2] sm:$0xff]  }
 0x88f   :  { %2514 = vmatpush1.bf16.msra.mxu0 %v6224_v3  ;;  %2555 = vmatpush1.bf16.msra.mxu1 %v6225_v63  ;;  %v3525_v3 = vmov 0.0   ;;  %v3260_v63 = vld [vmem:[%s5617_s4 + $0x38] sm:$0xff]  }
 0x890   :  { %2515 = vmatprep.subr.bf16.mxu0 %v6148_v8  ;;  %2556 = vmatprep.subr.bf16.mxu1 %v6149_v30  ;;  %v6583_v8 = vld [vmem:[#allocation126_spill] sm:$0xff]  ;;  %v6584_v30 = vld [vmem:[#allocation127_spill] sm:$0xff] }
 0x893   :  { %2516 = vmatpush2.bf16.msra.mxu0 %v6150_v24  ;;  %2557 = vmatpush2.bf16.msra.mxu1 %v6151_v29  ;;  %v6585_v24 = vld [vmem:[#allocation128_spill] sm:$0xff]  ;;  %v6586_v29 = vld [vmem:[#allocation129_spill] sm:$0xff] }
 0x894   :  { %2517 = vmatprep.subr.bf16.mxu0 %v6152_v35  ;;  %2558 = vmatprep.subr.bf16.mxu1 %v6153_v46  ;;  %v3244_v35 = vld [vmem:[%s5616_s2 + $0x78] sm:$0xff]  }
 0x895   :  { %v3245_v46 = vld [vmem:[%s5616_s2 + $0x38] sm:$0xff]  }
 0x897   :  { %2518 = vmatpush2.bf16.msra.mxu0 %v6154_v45  ;;  %2559 = vmatpush2.bf16.msra.mxu1 %v6155_v54  ;;  %v3246_v45 = vld [vmem:[%s5616_s2 + $0x70] sm:$0xff]  }
 0x898   :  { %2519 = vmatprep.subr.bf16.mxu0 %v6156_v59  ;;  %2560 = vmatprep.subr.bf16.mxu1 %v6157_v38  ;;  %v6582_v38 = vld [vmem:[#allocation125_spill] sm:$0xff]  ;;  %v3247_v54 = vld [vmem:[%s5616_s2 + $0x30] sm:$0xff]   ;;  %v3248_v59 = vld [vmem:[%s5616_s2 + $0x68] sm:$0xff]  }
 0x89b   :  { %2520 = vmatpush2.bf16.msra.mxu0 %v6565_v17  ;;  %2561 = vmatpush2.bf16.msra.mxu1 %v6566_v50 }
 0x89c   :  { %2521 = vmatprep.subr.bf16.mxu0 %v6567_v39  ;;  %2562 = vmatprep.subr.bf16.mxu1 %v6568_v25 }
 0x89f   :  { %2522 = vmatpush2.bf16.msra.mxu0 %v6569_v34  ;;  %2563 = vmatpush2.bf16.msra.mxu1 %v6570_v32 }
 0x8a0   :  { %2523 = vmatprep.subr.bf16.mxu0 %v6571_v49  ;;  %2564 = vmatprep.subr.bf16.mxu1 %v6572_v18 }
 0x8a3   :  { %2524 = vmatpush2.bf16.msra.mxu0 %v6573_v52  ;;  %2565 = vmatpush2.bf16.msra.mxu1 %v6574_v51  ;;  %v3154_v51 = vld [vmem:[%s5615_s0 + $0x1e0] sm:$0xff] }
 0x8a4   :  { %2525 = vmatprep.subr.bf16.mxu0 %v6575_v53  ;;  %2566 = vmatprep.subr.bf16.mxu1 %v6576_v5  ;;  %v3156_v53 = vld [vmem:[%s5615_s0 + $0x1f0] sm:$0xff] }
 0x8a7   :  { %2526 = vmatpush2.bf16.msra.mxu0 %v6577_v60  ;;  %2567 = vmatpush2.bf16.msra.mxu1 %v6578_v44 }
 0x8a8   :  { %2527 = vmatprep.subr.bf16.mxu0 %v6579_v37  ;;  %2568 = vmatprep.subr.bf16.mxu1 %v6580_v43  ;;  %v3155_v37 = vld [vmem:[%s5615_s0 + $0x1e8] sm:$0xff]  ;;  %v3157_v43 = vld [vmem:[%s5615_s0 + $0x1f8] sm:$0xff] }
 0x8ab   :  { %2528 = vmatpush2.bf16.msra.mxu0 %v6581_v62  ;;  %2569 = vmatpush2.bf16.msra.mxu1 %v6582_v38 }
 0x8ac   :  { %2529 = vmatprep.subr.bf16.mxu0 %v6583_v8  ;;  %2570 = vmatprep.subr.bf16.mxu1 %v6584_v30 }
 0x8af   :  { %2530 = vmatpush2.bf16.msra.mxu0 %v6585_v24  ;;  %2571 = vmatpush2.bf16.msra.mxu1 %v6586_v29 }
 0x8b0   :  { %3190 = vmatprep.subr.bf16.mxu0 %v3244_v35  ;;  %3221 = vmatprep.subr.bf16.mxu1 %v3525_v3 }
 0x8b2   :  { %2532 = vmatmul.mubr.bf16.vlgmr.msra.gmra.mxu0 %v5430_v23  ;;  %2573 = vmatmul.mubr.bf16.vlgmr.msra.gmra.mxu1 %v5430_v23 }
 0x8b3   :  { %3191 = vmatpush3.bf16.msra.mxu0 %v3245_v46  ;;  %3222 = vmatpush3.bf16.msra.mxu1 %v3260_v63 }
 0x8b4   :  { %3192 = vmatprep.subr.bf16.mxu0 %v3246_v45  ;;  %3223 = vmatprep.subr.bf16.mxu1 %v3525_v3 }
 0x8b5   :  { %3237 = vmatprep.mubr.msk.bf16.mxu1 %vm3526_vm0, %v3525_v3 }
 0x8b7   :  { %3193 = vmatpush3.bf16.msra.mxu0 %v3247_v54  ;;  %3224 = vmatpush3.bf16.msra.mxu1 %v3261_v42 }
 0x8b8   :  { %3194 = vmatprep.subr.bf16.mxu0 %v3248_v59  ;;  %3225 = vmatprep.subr.bf16.mxu1 %v3525_v3 }
 0x8bb   :  { %3195 = vmatpush3.bf16.msra.mxu0 %v3249_v13  ;;  %3226 = vmatpush3.bf16.msra.mxu1 %v3262_v41 }
 0x8bc   :  { %3196 = vmatprep.subr.bf16.mxu0 %v3250_v21  ;;  %3227 = vmatprep.subr.bf16.mxu1 %v3525_v3 }
 0x8bf   :  { %3197 = vmatpush3.bf16.msra.mxu0 %v3251_v9  ;;  %3228 = vmatpush3.bf16.msra.mxu1 %v3263_v31 }
 0x8c0   :  { %3198 = vmatprep.subr.bf16.mxu0 %v3252_v6  ;;  %3229 = vmatprep.subr.bf16.mxu1 %v3525_v3 }
 0x8c3   :  { %3199 = vmatpush3.bf16.msra.mxu0 %v3253_v28  ;;  %3230 = vmatpush3.bf16.msra.mxu1 %v3264_v19 }
 0x8c4   :  { %3200 = vmatprep.subr.bf16.mxu0 %v3254_v15  ;;  %3231 = vmatprep.subr.bf16.mxu1 %v3525_v3 }
 0x8c7   :  { %3201 = vmatpush3.bf16.msra.mxu0 %v3255_v22 }
 0x8c8   :  { %3202 = vmatprep.subr.bf16.mxu0 %v3256_v47 }
 0x8cb   :  { %3203 = vmatpush3.bf16.msra.mxu0 %v3257_v27 }
 0x8cc   :  { %3204 = vmatprep.subr.bf16.mxu0 %v3258_v20 }
 0x8cf   :  { %3205 = vmatpush3.bf16.msra.mxu0 %v3259_v48 }
 0x932   :  { %v2451_v56 = vpop.f32.mrf.mxu0  ;;  %v2492_v14 = vpop.f32.mrf.mxu1 }
 0x933   :  { %v2581_v36 = vadd.f32 %v3150_v1, %v2451_v56  ;;  %v2583_v4 = vadd.f32 %v3152_v16, %v2492_v14  ;;  %v3266_v1 = vld [vmem:[%s5617_s4 + $0x8] sm:$0xff]   ;;  %v3267_v16 = vld [vmem:[%s5617_s4] sm:$0xff]  }
 0x934   :  { %v2453_v0 = vpop.f32.mrf.mxu0  ;;  %v2494_v58 = vpop.f32.mrf.mxu1 }
 0x935   :  { %v2582_v12 = vadd.f32 %v3151_v10, %v2453_v0  ;;  %v3158_v2 = vmul.f32 -1.442695, %v2581_v36  ;;  %v2584_v33 = vadd.f32 %v3153_v40, %v2494_v58  ;;  %v3160_v23 = vmul.f32 -1.442695, %v2583_v4  ;;  %v3164_v36 = vld [vmem:[%s5618_s3] ss:$0 sm:$0xff] }
 0x936   :  { %v2455_v11 = vpop.f32.mrf.mxu0  ;;  %v2496_v26 = vpop.f32.mrf.mxu1 }
 0x937   :  { %v3159_v17 = vmul.f32 -1.442695, %v2582_v12  ;;  %3492 = vpow2.f32 %v3158_v2  ;;  %v3161_v50 = vmul.f32 -1.442695, %v2584_v33 }
 0x938   :  { %v2456_v61 = vpop.f32.mrf.mxu0  ;;  %v2497_v7 = vpop.f32.mrf.mxu1  ;;  %3494 = vpow2.f32 %v3160_v23 }
 0x939   :  { %3496 = vpow2.f32 %v3159_v17 }
 0x93a   :  { %3498 = vpow2.f32 %v3161_v50  ;;  %v3181_v50 = vld [vmem:[%s5619_s5] ss:$0 sm:$0xff] }
 0x944   :  { %v3493_v39 = vpop.eup %3492 }
 0x945   :  { %v3495_v25 = vpop.eup %3494  ;;  %v2595_v32 = vadd.f32 1.0, %v3493_v39 }
 0x946   :  { %v3497_v34 = vpop.eup %3496  ;;  %v2607_v18 = vadd.f32 1.0, %v3495_v25 }
 0x947   :  { %v3499_v49 = vpop.eup %3498  ;;  %v2596_v52 = vadd.f32 1.0, %v3497_v34  ;;  %3500 = vrcp.f32 %v2595_v32 }
 0x948   :  { %v2608_v5 = vadd.f32 1.0, %v3499_v49  ;;  %3502 = vrcp.f32 %v2607_v18 }
 0x949   :  { %3504 = vrcp.f32 %v2596_v52 }
 0x954   :  { %v3501_v21 = vpop.eup %3500 }
 0x955   :  { %v3503_v9 = vpop.eup %3502 }
 0x956   :  { %v3505_v6 = vpop.eup %3504  ;;  %v2627_v22 = vmul.f32 %v3503_v9, %v5423_v57 }
 0x972   :  { %v2533_v60 = vpop.f32.mrf.mxu0  ;;  %v2574_v44 = vpop.f32.mrf.mxu1 }
 0x973   :  { %v2585_v62 = vadd.f32 %v3154_v51, %v2533_v60  ;;  %v2587_v38 = vadd.f32 %v3156_v53, %v2574_v44 }
 0x974   :  { %v2535_v8 = vpop.f32.mrf.mxu0  ;;  %v2576_v30 = vpop.f32.mrf.mxu1 }
 0x975   :  { %3506 = vtanh.f32 %v2585_v62  ;;  %v3162_v24 = vmul.f32 -1.442695, %v2587_v38  ;;  %v2586_v29 = vadd.f32 %v3155_v37, %v2535_v8  ;;  %v2588_v35 = vadd.f32 %v3157_v43, %v2576_v30 }
 0x976   :  { %3508 = vrcp.f32 %v2608_v5  ;;  %v2537_v46 = vpop.f32.mrf.mxu0  ;;  %v2578_v45 = vpop.f32.mrf.mxu1 }
 0x977   :  { %3510 = vpow2.f32 %v3162_v24  ;;  %v3163_v54 = vmul.f32 -1.442695, %v2588_v35 }
 0x978   :  { %3512 = vtanh.f32 %v2586_v29  ;;  %v2538_v59 = vpop.f32.mrf.mxu0  ;;  %v2579_v13 = vpop.f32.mrf.mxu1 }
 0x979   :  { %3514 = vpow2.f32 %v3163_v54 }
 0x982   :  { %v3507_v28 = vpop.eup %3506 }
 0x983   :  { %v3509_v15 = vpop.eup %3508  ;;  %v2629_v47 = vmul.f32 %v3507_v28, %v3501_v21 }
 0x984   :  { %v3511_v27 = vpop.eup %3510  ;;  %v2628_v41 = vmul.f32 %v3509_v15, %v5427_v55  ;;  %v3265_v55 = vld [vmem:[%s5617_s4 + $0x10] sm:$0xff]  }
 0x985   :  { %v3513_v20 = vpop.eup %3512  ;;  %v2631_v48 = vadd.f32 %v2629_v47, %v2627_v22  ;;  %v2621_v63 = vadd.f32 1.0, %v3511_v27  ;;  %3232 = vmatpush3.bf16.msra.mxu1 %v3265_v55 }
 0x986   :  { %v3515_v42 = vpop.eup %3514  ;;  %v2630_v31 = vmul.f32 %v3513_v20, %v3505_v6  ;;  %3233 = vmatprep.subr.bf16.mxu1 %v3525_v3 }
 0x987   :  { %3516 = vtanh.f32 %v2631_v48  ;;  %v2622_v19 = vadd.f32 1.0, %v3515_v42 }
 0x988   :  { %3518 = vrcp.f32 %v2621_v63  ;;  %v2632_v56 = vadd.f32 %v2630_v31, %v2628_v41 }
 0x989   :  { %3520 = vrcp.f32 %v2622_v19  ;;  %3234 = vmatpush3.bf16.msra.mxu1 %v3266_v1 }
 0x98a   :  { %3522 = vtanh.f32 %v2632_v56  ;;  %3235 = vmatprep.subr.bf16.mxu1 %v3525_v3 }
 0x98d   :  { %3236 = vmatpush3.bf16.msra.mxu1 %v3267_v16 }
 0x994   :  { %v3517_v14 = vpop.eup %3516 }
 0x995   :  { %v3519_v0 = vpop.eup %3518 }
 0x996   :  { %v3521_v58 = vpop.eup %3520  ;;  %v2635_v57 = vmul.f32 %v3519_v0, %v3517_v14 }
 0x997   :  { %v3523_v11 = vpop.eup %3522 }
 0x998   :  { %v2636_v26 = vmul.f32 %v3523_v11, %v3521_v58  ;;  %v2637_v7 = vpack.c.bf16 %v2635_v57, %v2635_v57 }
 0x99a   :  { %v2638_v61 = vpack.c.bf16 %v2636_v26, %v2636_v26 }
 0x99c   :  { %2806 = vmatprep.mubr.bf16.mxu0 %v2638_v61 }
 0x99d   :  { %2807 = vmatmul.mubr.bf16.vlgmr.msra.gmra.mxu0 %v2637_v7 }
 0xa5d   :  { %v3206_v10 = vpop.f32.mrf.mxu0 }
 0xa5f   :  { %v3207_v4 = vpop.f32.mrf.mxu0 }
 0xa60   :  { %v3208_v40 = vadd.f32 %v3207_v4, %v3206_v10 }
 0xa61   :  { %v3209_v12 = vpop.f32.mrf.mxu0 }
 0xa62   :  { %v2809_v2 = vadd.f32 %v3208_v40, %v3164_v36 }
 0xa63   :  { %v3210_v33 = vpop.f32.mrf.mxu0 }
 0xa64   :  { %v2814_v23 = vmax.f32 %v2809_v2, 0.0 }
 0xa66   :  { %v2815_v17 = vpack.c.bf16 %v2814_v23, %v2814_v23 }
 0xa68   :  { %3238 = vmatmul.mubr.bf16.vlgmr.msra.gmra.mxu1 %v2815_v17 }
 0xb28   :  { %v2921_v39 = vpop.f32.mrf.mxu1 }
 0xb29   :  { %v2922_v25 = vadd.f32 %v3181_v50, %v2921_v39 }
 0xb2a   :  { %v3239_v3 = vpop.f32.mrf.mxu1 }
 0xb2b   :  { %2927 = vst [vmem:[%s5620_s6] sm:$0xff] %v2922_v25 }
 0xb2c   :  { %v2924_v34 = vpop.f32.mrf.mxu1 }
 0xb2e   :  { %v3240_v32 = vpop.f32.mrf.mxu1 }

</bundles_post_ra>
